<compile_context>
chip_gen: v7x
topology: tpu7x:2x2x1
jax: 0.10.0
libtpu: 0.0.40
codegen_flags: <defaults>
</compile_context>

<pallas_src>
import math

import jax
import jax.numpy as jnp
from jax.experimental import pallas as pl
from jax.experimental.pallas import tpu as pltpu

# ----------------------------- static sizes ---------------------------------
B = 2            # batch
C_LAT = 4        # latent channels (unet.in_channels - 2)
C_ONSET = 2      # onset channels
C_IN = C_ONSET + C_LAT
H, W = 256, 16   # latent spatial dims (fixed by encode_channel / prepare_latents)
HW = H * W       # 4096 -> lane dimension
D_HID = 32       # surrogate UNet hidden width
D_TXT = 1024     # class embedding width (nn.Embedding(24, 1024))
N_CLASSES = 24
NUM_TRAIN_TIMESTEPS = 1000


# -------------------- fused kernel: noise + UNet + SSE -----------------------
def fused_kernel(a_ref, s_ref, onset_ref, lat_ref, noise_ref, temb_ref, ctx_ref,
                 w_in_on_ref, w_in_lat_ref, w_out_t_ref, sse_ref):
    # a_ref, s_ref: (B,) f32 in SMEM (per-batch sqrt(alpha_bar), sqrt(1-alpha_bar))
    # onset_ref: (1, C_ONSET, HW), lat_ref / noise_ref: (1, C_LAT, HW)
    # temb_ref / ctx_ref: (1, D_HID, 1)
    # w_in_on_ref: (D_HID, C_ONSET), w_in_lat_ref: (D_HID, C_LAT),
    # w_out_t_ref: (C_LAT, D_HID)
    # sse_ref: (1, 1, 1) per-batch sum of squared errors
    b = pl.program_id(0)
    a = a_ref[b]
    s = s_ref[b]

    onset = onset_ref[0]                        # (C_ONSET, HW)
    noise = noise_ref[0]                        # (C_LAT, HW)
    noisy = a * lat_ref[0] + s * noise          # add_noise, (C_LAT, HW)

    # cat((onset, noisy), channel) @ w_in  ==  w_in_on^T @ onset + w_in_lat^T @ noisy
    h = (jnp.dot(w_in_on_ref[...], onset, preferred_element_type=jnp.float32)
         + jnp.dot(w_in_lat_ref[...], noisy, preferred_element_type=jnp.float32))
    h = h + temb_ref[0]                         # (D_HID, 1) lane-broadcast
    h = jax.nn.silu(h)
    h = h + ctx_ref[0]                          # hoisted cross-attention context

    pred = jnp.dot(w_out_t_ref[...], h, preferred_element_type=jnp.float32)  # (C_LAT, HW)

    d = pred - noise                            # prediction_type == 'epsilon'
    sse_ref[0] = jnp.sum(d * d, keepdims=True)  # (1, 1)


def fused_loss(a, s, onset_flat, lat_flat, noise_flat, temb, ctx,
               w_in_on_t, w_in_lat_t, w_out_t):
    flops = 2 * B * HW * D_HID * (C_ONSET + C_LAT + C_LAT) + 8 * B * C_LAT * HW
    bytes_accessed = 4 * (B * (C_ONSET + 2 * C_LAT) * HW          # onset/lat/noise
                          + 2 * B * D_HID                          # temb + ctx
                          + D_HID * (C_ONSET + C_LAT + C_LAT)      # weights
                          + 3 * B)                                 # a, s, sse
    sse = pl.pallas_call(
        fused_kernel,
        out_shape=jax.ShapeDtypeStruct((B, 1, 1), jnp.float32),
        grid=(B,),
        in_specs=[
            pl.BlockSpec(memory_space=pltpu.MemorySpace.SMEM),
            pl.BlockSpec(memory_space=pltpu.MemorySpace.SMEM),
            pl.BlockSpec((1, C_ONSET, HW), lambda b: (b, 0, 0)),
            pl.BlockSpec((1, C_LAT, HW), lambda b: (b, 0, 0)),
            pl.BlockSpec((1, C_LAT, HW), lambda b: (b, 0, 0)),
            pl.BlockSpec((1, D_HID, 1), lambda b: (b, 0, 0)),
            pl.BlockSpec((1, D_HID, 1), lambda b: (b, 0, 0)),
            pl.BlockSpec((D_HID, C_ONSET), lambda b: (0, 0)),
            pl.BlockSpec((D_HID, C_LAT), lambda b: (0, 0)),
            pl.BlockSpec((C_LAT, D_HID), lambda b: (0, 0)),
        ],
        out_specs=pl.BlockSpec((1, 1, 1), lambda b: (b, 0, 0)),
        compiler_params=pltpu.CompilerParams(dimension_semantics=("parallel",)),
        cost_estimate=pl.CostEstimate(flops=flops,
                                      transcendentals=B * D_HID * HW,
                                      bytes_accessed=bytes_accessed),
    )(a, s, onset_flat, lat_flat, noise_flat, temb, ctx,
      w_in_on_t, w_in_lat_t, w_out_t)
    # snr_gamma is None -> plain mean MSE; final mean over B*HW*C_LAT elements.
    return jnp.sum(sse) * (1.0 / float(B * HW * C_LAT))


# ------------------------------ forward pass ---------------------------------
def forward(params, latents, onset, event_info, timesteps, noise):
    # DDPM scheduler (linear betas), add_noise coefficients
    betas = jnp.linspace(1e-4, 0.02, NUM_TRAIN_TIMESTEPS, dtype=jnp.float32)
    alphas_cumprod = jnp.cumprod(1.0 - betas)
    a = jnp.sqrt(alphas_cumprod)[timesteps].astype(jnp.float32)            # (B,)
    s = jnp.sqrt(1.0 - alphas_cumprod)[timesteps].astype(jnp.float32)      # (B,)

    # encode_text (class embedding gather) + hoisted single-token cross-attention
    ehs = jnp.take(params["class_emb"], event_info, axis=0)                # (B, 1024)
    ctx = (ehs @ params["wv"]) @ params["wo"]                              # (B, D_HID)
    ctx = ctx[:, :, None]                                                  # (B, D_HID, 1)

    # sinusoidal timestep embedding (glue)
    half = D_HID // 2
    freqs = jnp.exp(-math.log(10000.0) * jnp.arange(half, dtype=jnp.float32) / half)
    args = timesteps.astype(jnp.float32)[:, None] * freqs[None, :]
    temb = jnp.concatenate([jnp.sin(args), jnp.cos(args)], axis=-1)[:, :, None]  # (B, D_HID, 1)

    # encode_channel: reshape(B,2,16,256).transpose(2,3) -> (B,2,256,16) -> flatten HW
    onset_flat = jnp.swapaxes(onset.reshape(B, C_ONSET, 16, 256), 2, 3).reshape(B, C_ONSET, HW)

    # channels-first lane-dense flatten: (B, C, H, W) -> (B, C, HW), no data movement
    lat_flat = latents.reshape(B, C_LAT, HW)
    noise_flat = noise.reshape(B, C_LAT, HW)

    # transposed weight tiles for channels-first matmuls (tiny, one-time)
    w_in_on_t = params["w_in"][:C_ONSET].T        # (D_HID, C_ONSET)
    w_in_lat_t = params["w_in"][C_ONSET:].T       # (D_HID, C_LAT)
    w_out_t = params["w_out"].T                   # (C_LAT, D_HID)

    return fused_loss(a, s, onset_flat, lat_flat, noise_flat, temb, ctx,
                      w_in_on_t, w_in_lat_t, w_out_t)


# --------------------------------- main ---------------------------------------
if __name__ == "__main__":
    key = jax.random.PRNGKey(0)
    keys = jax.random.split(key, 10)

    # deterministic parameters
    params = {
        "class_emb": jax.random.normal(keys[0], (N_CLASSES, D_TXT), jnp.float32) * 0.02,
        "w_in":  jax.random.normal(keys[1], (C_IN, D_HID), jnp.float32) * 0.1,
        "wv":    jax.random.normal(keys[2], (D_TXT, D_HID), jnp.float32) * 0.02,
        "wo":    jax.random.normal(keys[3], (D_HID, D_HID), jnp.float32) * 0.1,
        "w_out": jax.random.normal(keys[4], (D_HID, C_LAT), jnp.float32) * 0.1,
    }

    # deterministic inputs (shapes implied by the module: latents (B,4,256,16),
    # onset (B, 2*16*256) = (B, 8192), event_info (B,) class ids)
    latents = jax.random.normal(keys[5], (B, C_LAT, H, W), jnp.float32)
    onset = (jax.random.uniform(keys[6], (B, C_ONSET * 16 * 256)) < 0.1).astype(jnp.float32)
    event_info = jax.random.randint(keys[7], (B,), 0, N_CLASSES)
    timesteps = jax.random.randint(keys[8], (B,), 0, NUM_TRAIN_TIMESTEPS)
    noise = jax.random.normal(keys[9], (B, C_LAT, H, W), jnp.float32)

    loss = jax.jit(forward)(params, latents, onset, event_info, timesteps, noise)
    jax.block_until_ready(loss)
    assert jnp.isfinite(loss), "loss is not finite"
    print("KERNEL_OK")
</pallas_src>

<mosaic_0001>
module attributes {stable_mosaic.version = 11 : i64} {
  func.func @fused_kernel(%arg0: i32, %arg1: memref<2xf32, #tpu.memory_space<smem>>, %arg2: memref<2xf32, #tpu.memory_space<smem>>, %arg3: memref<1x2x4096xf32, #tpu.memory_space<vmem>>, %arg4: memref<1x4x4096xf32, #tpu.memory_space<vmem>>, %arg5: memref<1x4x4096xf32, #tpu.memory_space<vmem>>, %arg6: memref<1x32x1xf32, #tpu.memory_space<vmem>>, %arg7: memref<1x32x1xf32, #tpu.memory_space<vmem>>, %arg8: memref<32x2xf32, #tpu.memory_space<vmem>>, %arg9: memref<32x4xf32, #tpu.memory_space<vmem>>, %arg10: memref<4x32xf32, #tpu.memory_space<vmem>>, %arg11: memref<1x1x1xf32, #tpu.memory_space<vmem>>) attributes {dimension_semantics = [#tpu.dimension_semantics<parallel>], iteration_bounds = array<i64: 2>, scalar_prefetch = 0 : i64, scratch_operands = 0 : i64, tpu.core_type = #tpu.core_type<tc>, window_params = [{transform_indices = @transform_0, window_bounds = array<i64: 2>}, {transform_indices = @transform_1, window_bounds = array<i64: 2>}, {transform_indices = @transform_2, window_bounds = array<i64: 1, 2, 4096>}, {transform_indices = @transform_3, window_bounds = array<i64: 1, 4, 4096>}, {transform_indices = @transform_4, window_bounds = array<i64: 1, 4, 4096>}, {transform_indices = @transform_5, window_bounds = array<i64: 1, 32, 1>}, {transform_indices = @transform_6, window_bounds = array<i64: 1, 32, 1>}, {pipeline_mode = #tpu.pipeline_mode<synchronous>, transform_indices = @transform_7, window_bounds = array<i64: 32, 2>}, {pipeline_mode = #tpu.pipeline_mode<synchronous>, transform_indices = @transform_8, window_bounds = array<i64: 32, 4>}, {pipeline_mode = #tpu.pipeline_mode<synchronous>, transform_indices = @transform_9, window_bounds = array<i64: 4, 32>}, {transform_indices = @transform_10, window_bounds = array<i64: 1, 1, 1>}]} {
    %0 = arith.index_cast %arg0 : i32 to index
    %1 = memref.load %arg1[%0] : memref<2xf32, #tpu.memory_space<smem>>
    %2 = arith.index_cast %arg0 : i32 to index
    %3 = memref.load %arg2[%2] : memref<2xf32, #tpu.memory_space<smem>>
    %c0 = arith.constant 0 : index
    %c0_0 = arith.constant 0 : index
    %c0_1 = arith.constant 0 : index
    %4 = vector.load %arg3[%c0, %c0_0, %c0_1] : memref<1x2x4096xf32, #tpu.memory_space<vmem>>, vector<1x2x4096xf32>
    %5 = vector.shape_cast %4 : vector<1x2x4096xf32> to vector<2x4096xf32>
    %c0_2 = arith.constant 0 : index
    %c0_3 = arith.constant 0 : index
    %c0_4 = arith.constant 0 : index
    %6 = vector.load %arg5[%c0_2, %c0_3, %c0_4] : memref<1x4x4096xf32, #tpu.memory_space<vmem>>, vector<1x4x4096xf32>
    %7 = vector.shape_cast %6 : vector<1x4x4096xf32> to vector<4x4096xf32>
    %c0_5 = arith.constant 0 : index
    %c0_6 = arith.constant 0 : index
    %c0_7 = arith.constant 0 : index
    %8 = vector.load %arg4[%c0_5, %c0_6, %c0_7] : memref<1x4x4096xf32, #tpu.memory_space<vmem>>, vector<1x4x4096xf32>
    %9 = vector.shape_cast %8 : vector<1x4x4096xf32> to vector<4x4096xf32>
    %10 = vector.broadcast %1 : f32 to vector<4x4096xf32>
    %11 = arith.mulf %10, %9 : vector<4x4096xf32>
    %12 = vector.broadcast %3 : f32 to vector<4x4096xf32>
    %13 = arith.mulf %12, %7 : vector<4x4096xf32>
    %14 = arith.addf %11, %13 : vector<4x4096xf32>
    %c0_8 = arith.constant 0 : index
    %c0_9 = arith.constant 0 : index
    %15 = vector.load %arg8[%c0_8, %c0_9] : memref<32x2xf32, #tpu.memory_space<vmem>>, vector<32x2xf32>
    %cst = arith.constant dense<0.000000e+00> : vector<32x4096xf32>
    %16 = tpu.matmul %15, %5, %cst {dimension_numbers = #tpu.dot_dimension_numbers<[1], [0], [0], [1], [0, 0, 1, 1], [], []>} : vector<32x2xf32>, vector<2x4096xf32>, vector<32x4096xf32> -> vector<32x4096xf32>
    %c0_10 = arith.constant 0 : index
    %c0_11 = arith.constant 0 : index
    %17 = vector.load %arg9[%c0_10, %c0_11] : memref<32x4xf32, #tpu.memory_space<vmem>>, vector<32x4xf32>
    %cst_12 = arith.constant dense<0.000000e+00> : vector<32x4096xf32>
    %18 = tpu.matmul %17, %14, %cst_12 {dimension_numbers = #tpu.dot_dimension_numbers<[1], [0], [0], [1], [0, 0, 1, 1], [], []>} : vector<32x4xf32>, vector<4x4096xf32>, vector<32x4096xf32> -> vector<32x4096xf32>
    %19 = arith.addf %16, %18 : vector<32x4096xf32>
    %c0_13 = arith.constant 0 : index
    %c0_14 = arith.constant 0 : index
    %c0_15 = arith.constant 0 : index
    %20 = vector.load %arg6[%c0_13, %c0_14, %c0_15] : memref<1x32x1xf32, #tpu.memory_space<vmem>>, vector<1x32x1xf32>
    %21 = vector.shape_cast %20 : vector<1x32x1xf32> to vector<32x1xf32>
    %22 = vector.broadcast %21 : vector<32x1xf32> to vector<32x4096xf32>
    %23 = arith.addf %19, %22 : vector<32x4096xf32>
    %24 = arith.negf %23 : vector<32x4096xf32>
    %25 = math.exp %24 : vector<32x4096xf32>
    %cst_16 = arith.constant 1.000000e+00 : f32
    %26 = vector.broadcast %cst_16 : f32 to vector<32x4096xf32>
    %27 = arith.addf %26, %25 : vector<32x4096xf32>
    %28 = arith.divf %26, %27 : vector<32x4096xf32>
    %29 = arith.mulf %23, %28 : vector<32x4096xf32>
    %c0_17 = arith.constant 0 : index
    %c0_18 = arith.constant 0 : index
    %c0_19 = arith.constant 0 : index
    %30 = vector.load %arg7[%c0_17, %c0_18, %c0_19] : memref<1x32x1xf32, #tpu.memory_space<vmem>>, vector<1x32x1xf32>
    %31 = vector.shape_cast %30 : vector<1x32x1xf32> to vector<32x1xf32>
    %32 = vector.broadcast %31 : vector<32x1xf32> to vector<32x4096xf32>
    %33 = arith.addf %29, %32 : vector<32x4096xf32>
    %c0_20 = arith.constant 0 : index
    %c0_21 = arith.constant 0 : index
    %34 = vector.load %arg10[%c0_20, %c0_21] : memref<4x32xf32, #tpu.memory_space<vmem>>, vector<4x32xf32>
    %cst_22 = arith.constant dense<0.000000e+00> : vector<4x4096xf32>
    %35 = tpu.matmul %34, %33, %cst_22 {dimension_numbers = #tpu.dot_dimension_numbers<[1], [0], [0], [1], [0, 0, 1, 1], [], []>} : vector<4x32xf32>, vector<32x4096xf32>, vector<4x4096xf32> -> vector<4x4096xf32>
    %36 = arith.subf %35, %7 : vector<4x4096xf32>
    %37 = arith.mulf %36, %36 : vector<4x4096xf32>
    %38 = vector.shape_cast %37 : vector<4x4096xf32> to vector<1x4x4096xf32>
    %cst_23 = arith.constant dense<0.000000e+00> : vector<1xf32>
    %39 = vector.multi_reduction <add>, %38, %cst_23 [1, 2] : vector<1x4x4096xf32> to vector<1xf32>
    %40 = vector.shape_cast %39 : vector<1xf32> to vector<1x1x1xf32>
    %41 = vector.extract %40[0, 0, 0] : f32 from vector<1x1x1xf32>
    %42 = vector.broadcast %41 : f32 to vector<1x1xf32>
    %c0_24 = arith.constant 0 : index
    %c0_25 = arith.constant 0 : index
    %c0_26 = arith.constant 0 : index
    %43 = vector.load %arg11[%c0_24, %c0_25, %c0_26] : memref<1x1x1xf32, #tpu.memory_space<vmem>>, vector<1x1x1xf32>
    %44 = vector.shape_cast %43 : vector<1x1x1xf32> to vector<1x1xf32>
    %45 = vector.shape_cast %42 : vector<1x1xf32> to vector<1x1x1xf32>
    tpu.vector_store %arg11[%c0_24, %c0_25, %c0_26], %45 {strides = array<i32>} : memref<1x1x1xf32, #tpu.memory_space<vmem>>, vector<1x1x1xf32>,
    return
  }
  func.func @transform_0(%arg0: i32) -> i32 {
    %c0_i32 = arith.constant 0 : i32
    %c0_i32_0 = arith.constant 0 : i32
    return %c0_i32 : i32
  }
  func.func @transform_1(%arg0: i32) -> i32 {
    %c0_i32 = arith.constant 0 : i32
    %c0_i32_0 = arith.constant 0 : i32
    return %c0_i32 : i32
  }
  func.func @transform_2(%arg0: i32) -> (i32, i32, i32) {
    %c0_i32 = arith.constant 0 : i32
    %c0_i32_0 = arith.constant 0 : i32
    %c0_i32_1 = arith.constant 0 : i32
    return %arg0, %c0_i32, %c0_i32_0 : i32, i32, i32
  }
  func.func @transform_3(%arg0: i32) -> (i32, i32, i32) {
    %c0_i32 = arith.constant 0 : i32
    %c0_i32_0 = arith.constant 0 : i32
    %c0_i32_1 = arith.constant 0 : i32
    return %arg0, %c0_i32, %c0_i32_0 : i32, i32, i32
  }
  func.func @transform_4(%arg0: i32) -> (i32, i32, i32) {
    %c0_i32 = arith.constant 0 : i32
    %c0_i32_0 = arith.constant 0 : i32
    %c0_i32_1 = arith.constant 0 : i32
    return %arg0, %c0_i32, %c0_i32_0 : i32, i32, i32
  }
  func.func @transform_5(%arg0: i32) -> (i32, i32, i32) {
    %c0_i32 = arith.constant 0 : i32
    %c0_i32_0 = arith.constant 0 : i32
    %c0_i32_1 = arith.constant 0 : i32
    return %arg0, %c0_i32, %c0_i32_0 : i32, i32, i32
  }
  func.func @transform_6(%arg0: i32) -> (i32, i32, i32) {
    %c0_i32 = arith.constant 0 : i32
    %c0_i32_0 = arith.constant 0 : i32
    %c0_i32_1 = arith.constant 0 : i32
    return %arg0, %c0_i32, %c0_i32_0 : i32, i32, i32
  }
  func.func @transform_7(%arg0: i32) -> (i32, i32) {
    %c0_i32 = arith.constant 0 : i32
    %c0_i32_0 = arith.constant 0 : i32
    %c0_i32_1 = arith.constant 0 : i32
    return %c0_i32, %c0_i32_0 : i32, i32
  }
  func.func @transform_8(%arg0: i32) -> (i32, i32) {
    %c0_i32 = arith.constant 0 : i32
    %c0_i32_0 = arith.constant 0 : i32
    %c0_i32_1 = arith.constant 0 : i32
    return %c0_i32, %c0_i32_0 : i32, i32
  }
  func.func @transform_9(%arg0: i32) -> (i32, i32) {
    %c0_i32 = arith.constant 0 : i32
    %c0_i32_0 = arith.constant 0 : i32
    %c0_i32_1 = arith.constant 0 : i32
    return %c0_i32, %c0_i32_0 : i32, i32
  }
  func.func @transform_10(%arg0: i32) -> (i32, i32, i32) {
    %c0_i32 = arith.constant 0 : i32
    %c0_i32_0 = arith.constant 0 : i32
    %c0_i32_1 = arith.constant 0 : i32
    return %arg0, %c0_i32, %c0_i32_0 : i32, i32, i32
  }
}

</mosaic_0001>

<bundles_post_ra>
// kernel: forward.1
= control target key start
LH: loop header
LB: loop body
LE: loop exit
PB: predicated region body
PF: predicated region fallthrough
CT: control target
= control target key end

     0   :  { %15 = vsyncpa [#allocation3], 0  ;;  %s9753_s0 = inlined_call_operand.vmem [shape: f32[2], index: 0, kind: input, shape index: {}]   ;;  %s9754_s1 = inlined_call_operand.vmem [shape: f32[2], index: 1, kind: input, shape index: {}]   ;;  %s9755_s2 = inlined_call_operand.vmem [shape: f32[2,2,4096], index: 2, kind: input, shape index: {}]   ;;  %s9756_s3 = inlined_call_operand.vmem [shape: f32[2,4,4096], index: 3, kind: input, shape index: {}]   ;;  %s9757_s4 = inlined_call_operand.vmem [shape: f32[2,4,4096], index: 4, kind: input, shape index: {}]   ;;  %s9758_s5 = inlined_call_operand.vmem [shape: f32[2,32,1], index: 5, kind: input, shape index: {}]   ;;  %s9759_s6 = inlined_call_operand.vmem [shape: f32[2,32,1], index: 6, kind: input, shape index: {}]   ;;  %s9760_s7 = inlined_call_operand.vmem [shape: f32[32,2], index: 7, kind: input, shape index: {}]   ;;  %s9761_s8 = inlined_call_operand.vmem [shape: f32[32,4], index: 8, kind: input, shape index: {}]   ;;  %s9762_s9 = inlined_call_operand.vmem [shape: f32[4,32], index: 9, kind: input, shape index: {}]   ;;  %s9763_s10 = inlined_call_operand.vmem [shape: f32[2,1,1], index: 10, kind: output, shape index: {}]  }
   0x1   :  { %16 = vsyncpa [#allocation5], 0  ;;  %s7702_s13 = smov 0  }
   0x2 LB: > { %s7708_s14 = sadd.s32 4294967295, %s7640_s13   ;;  %p6390_p0 = scmp.ge.s32.totalorder %s7640_s13, 1  ;;  %s7640_s13 = sphi %s7702_s13, %s22_s13  }
   0x3   : > { %p288_p1 = scmp.lt.s32.totalorder %s7640_s13, 3  ;;  %s301_s17 = sshll.u32 %s9753_s0, 4  ;;  %s302_s17 = int_to_ptr.vmem [resolvable:$true] %s301_s17 }
   0x4   : > { %p9764_p3 = scmp.eq.s32.totalorder %s7708_s14, 0  ;;  %s312_s21 = sshll.u32 %s9754_s1, 4  ;;  %s313_s21 = int_to_ptr.vmem [resolvable:$true] %s312_s21 }
   0x5   : > { %p7715_p2 = pnand %p6390_p0, %p288_p1  ;;  %s7596_s23 = scalar_lea.vmem %s302_s17, 16 }
   0x6   : > { %p7597_p6 = scmp.ne.s32.totalorder %s302_s17, %s7596_s23  ;;  %p7604_p10 = scmp.lt.s32.totalorder %s302_s17, %s302_s17 }
   0x7   : > { %s9786_s18 = scalar_select %p7715_p2, 1, 0 }
   0x8   : > { %p7016_p4 = pneg %p7715_p2  ;;  %p7605_p11 = scmp.lt.s32.totalorder %s7596_s23, %s7596_s23 }
   0xa   : > { %p7727_p5 = pnand %p9764_p3, %p7016_p4  ;;  %p7606_p12 = por %p7605_p11, %p7604_p10 }
   0xc   : > { %p7598_p7 = pneg %p7727_p5 }
   0xe   : > { %p7599_p8 = pnand %p7598_p7, %p7597_p6 }
  0x10   : > { %p7600_p9 = pneg %p7599_p8 }
  0x12   : > { %p7607_p13 = pnand %p7606_p12, %p7600_p9 }
  0x14   : > { %7610 = shalt.err (!%p7607_p13)
}
  0x15   : > { %s7642_s24 = smov [#allocation2]   ;;  %s7611_s25 = scalar_lea.vmem %s313_s21, 16 }
  0x16   : > { %7019 = dma.vmem_to_smem (!%p7727_p5), %s302_s17, 16, %s7642_s24, [#allocation3]  }
  0x17   : > { %p7612_p0 = scmp.ne.s32.totalorder %s313_s21, %s7611_s25  ;;  %p7619_p3 = scmp.lt.s32.totalorder %s313_s21, %s313_s21 }
  0x18   : > { %p7620_p2 = scmp.lt.s32.totalorder %s7611_s25, %s7611_s25 }
  0x19   : > { %p7614_p1 = pnand %p7612_p0, %p7598_p7 }
  0x1a   : > { %p7621_p6 = por %p7620_p2, %p7619_p3 }
  0x1b   : > { %p7615_p4 = pneg %p7614_p1 }
  0x1d   : > { %p7622_p8 = pnand %p7621_p6, %p7615_p4 }
  0x1f   : > { %7625 = shalt.err (!%p7622_p8)
}
  0x20   : > { %s7643_s26 = smov [#allocation4]   ;;  %p9788_p9 = scmp.ne.s32.totalorder %s9786_s18, 0 }
  0x21   : > { %7022 = dma.vmem_to_smem (!%p7727_p5), %s313_s21, 16, %s7643_s26, [#allocation5]  }
  0x22   : > { %374 = sbr.rel (%p9788_p9) target bundleno = 1122 (0x462), region = 60 }
  0x29   : > { %p9789_p10 = scmp.eq.s32.totalorder %s7708_s14, 0 }
  0x2b   : > { %7631 = dma.done.wait (%p9789_p10), [#allocation3], 16   ;;  %p9790_p11 = pmov %p9789_p10 }
  0x2c   : > { %p9791_p7 = pmov %p9789_p10 }
  0x2d   : > { %7633 = vsyncadd (%p9790_p11), [#allocation3], 4294967280 }
  0x2e   : > { %7635 = dma.done.wait (%p9791_p7), [#allocation5], 16   ;;  %p9792_p2 = pmov %p9791_p7 }
  0x30   : > { %7637 = vsyncadd (%p9792_p2), [#allocation5], 4294967280 }
  0x31   : > { %384 = sfence }
  0x32   : > { %p435_p3 = scmp.lt.s32.totalorder %s7708_s14, 1  ;;  %s463_s27 = sld [smem:[#allocation2 + %s7708_s14]]  ;;  %v9766_v0 = vmov 0.0   ;;  %vm608_vm0 = vcmask 1043456   ;;  %v7799_v34 = vld [vmem:[%s9761_s8] sm:$0xff]  ;;  %vm595_vm1 = vcmask 31744  }
  0x33   : > { %s464_s28 = sld [smem:[#allocation4 + %s7708_s14]]  ;;  %737 = vmatprep.mubr.f32.mxu0 %v9766_v0  ;;  %826 = vmatprep.mubr.f32.mxu1 %v9766_v0  ;;  %v7818_v39 = vld [vmem:[%s9761_s8 + $0x8] sm:$0xff]  ;;  %v7848_v54 = vld [vmem:[%s9761_s8 + $0x10] sm:$0xff]  ;;  %vm2254_vm2 = vcmask 1041408   ;;  %vm2241_vm3 = vcmask 15360   ;;  %vm4944_vm4 = vcmask 261120  }
  0x34   : > { %s9969_s14 = smov (!%p435_p3, %s7708_s14), 1  ;;  %vm6269_vm5 = vcmask 0  }
  0x35   : > { %s6746_s29 = sshll.u32 %s9969_s14, 7  ;;  %s6745_s26 = sshll.u32 %s9969_s14, 6 }
  0x36   : > { %s7759_s12 = scalar_lea.vmem %s9756_s3, %s6746_s29  ;;  %s7764_s17 = scalar_lea.vmem %s9757_s4, %s6746_s29 }
  0x37   : > { %v473_v1 = vld [vmem:[%s7764_s17] sm:$0xff]  ;;  %v474_v4 = vld [vmem:[%s7764_s17 + $0x8] sm:$0xff]  ;;  %v475_v8 = vld [vmem:[%s7764_s17 + $0x10] sm:$0xff]  ;;  %s8037_s29 = scalar_lea.vmem %s9755_s2, %s6745_s26  ;;  %s6748_s30 = sshll.u32 %s9969_s14, 5 }
  0x38   : > { %v489_v2 = vld [vmem:[%s7759_s12] sm:$0xff]  ;;  %v7768_v3 = vstv %s463_s27  ;;  %v490_v7 = vld [vmem:[%s7759_s12 + $0x8] sm:$0xff]  ;;  %v491_v9 = vld [vmem:[%s7759_s12 + $0x10] sm:$0xff]  ;;  %s8048_s15 = scalar_lea.vmem %s9758_s5, %s6748_s30  ;;  %s459_s19 = scalar_lea.vmem %s9759_s6, %s6748_s30 }
  0x39   : > { %v506_v5 = vmul.f32 %v7768_v3, %v489_v2  ;;  %v7772_v6 = vstv %s464_s28  ;;  %v507_v11 = vmul.f32 %v7768_v3, %v490_v7  ;;  %v508_v13 = vmul.f32 %v7768_v3, %v491_v9  ;;  %v476_v14 = vld [vmem:[%s7764_s17 + $0x18] sm:$0xff]  ;;  %v477_v16 = vld [vmem:[%s7764_s17 + $0x20] sm:$0xff]  ;;  %v478_v22 = vld [vmem:[%s7764_s17 + $0x28] sm:$0xff]  ;;  %s462_s18 = scalar_lea.vmem %s9763_s10, %s9969_s14 }
  0x3a   : > { %v523_v10 = vmul.f32 %v7772_v6, %v473_v1  ;;  %v524_v12 = vmul.f32 %v7772_v6, %v474_v4  ;;  %v492_v15 = vld [vmem:[%s7759_s12 + $0x18] sm:$0xff]  ;;  %v525_v17 = vmul.f32 %v7772_v6, %v475_v8  ;;  %v526_v19 = vmul.f32 %v7772_v6, %v476_v14  ;;  %v493_v20 = vld [vmem:[%s7759_s12 + $0x20] sm:$0xff]  ;;  %v494_v23 = vld [vmem:[%s7759_s12 + $0x28] sm:$0xff] }
  0x3b   : > { %v509_v18 = vmul.f32 %v7768_v3, %v492_v15  ;;  %v527_v21 = vmul.f32 %v7772_v6, %v477_v16  ;;  %v510_v26 = vmul.f32 %v7768_v3, %v493_v20  ;;  %v511_v27 = vmul.f32 %v7768_v3, %v494_v23  ;;  %v485_v40 = vld [vmem:[%s7764_s17 + $0x60] sm:$0xff]  ;;  %v479_v43 = vld [vmem:[%s7764_s17 + $0x30] sm:$0xff]  ;;  %v502_v45 = vld [vmem:[%s7759_s12 + $0x68] sm:$0xff] }
  0x3c   : > { %v539_v24 = vadd.f32 %v523_v10, %v506_v5  ;;  %v540_v25 = vadd.f32 %v524_v12, %v507_v11  ;;  %v541_v28 = vadd.f32 %v525_v17, %v508_v13  ;;  %v528_v30 = vmul.f32 %v7772_v6, %v478_v22  ;;  %v501_v41 = vld [vmem:[%s7759_s12 + $0x60] sm:$0xff]  ;;  %v495_v44 = vld [vmem:[%s7759_s12 + $0x30] sm:$0xff]  ;;  %v480_v46 = vld [vmem:[%s7764_s17 + $0x38] sm:$0xff] }
  0x3d   : > { %v542_v29 = vadd.f32 %v526_v19, %v509_v18  ;;  %v7794_v33 = vadd.f32 %v527_v21, %v510_v26  ;;  %v496_v47 = vld [vmem:[%s7759_s12 + $0x38] sm:$0xff]  ;;  %v486_v48 = vld [vmem:[%s7764_s17 + $0x68] sm:$0xff]  ;;  %v518_v49 = vmul.f32 %v7768_v3, %v501_v41  ;;  %v535_v50 = vmul.f32 %v7772_v6, %v485_v40  ;;  %v487_v51 = vld [vmem:[%s7764_s17 + $0x70] sm:$0xff] }
  0x3e   : > { %v579_v31 = vcombine.high %v539_v24, %v539_v24  ;;  %v580_v32 = vcombine.high %v540_v25, %v540_v25  ;;  %v581_v35 = vcombine.high %v541_v28, %v541_v28  ;;  %v7803_v36 = vadd.f32 %v528_v30, %v511_v27  ;;  %v503_v52 = vld [vmem:[%s7759_s12 + $0x70] sm:$0xff]  ;;  %v504_v53 = vld [vmem:[%s7759_s12 + $0x78] sm:$0xff]  ;;  %v481_v14 = vld [vmem:[%s7764_s17 + $0x40] sm:$0xff] }
  0x3f   : > { %v582_v37 = vcombine.high %v542_v29, %v542_v29  ;;  %v583_v38 = vcombine.high %v7794_v33, %v7794_v33  ;;  %v512_v55 = vmul.f32 %v7768_v3, %v495_v44  ;;  %v529_v56 = vmul.f32 %v7772_v6, %v479_v43  ;;  %v488_v58 = vld [vmem:[%s7764_s17 + $0x78] sm:$0xff]  ;;  %v497_v15 = vld [vmem:[%s7759_s12 + $0x40] sm:$0xff]  ;;  %v482_v16 = vld [vmem:[%s7764_s17 + $0x48] sm:$0xff] }
  0x40   : > { %6407 = vmatprep.subr.msk.mxu0 %vm608_vm0, %v579_v31  ;;  %6413 = vmatprep.subr.msk.mxu1 %vm608_vm0, %v580_v32  ;;  %v584_v42 = vcombine.high %v7803_v36, %v7803_v36  ;;  %v519_v57 = vmul.f32 %v7768_v3, %v502_v45  ;;  %v513_v59 = vmul.f32 %v7768_v3, %v496_v47  ;;  %v7876_v7 = vld [vmem:[%s9761_s8 + $0x18] sm:$0xff]  ;;  %v498_v17 = vld [vmem:[%s7759_s12 + $0x48] sm:$0xff]  ;;  %v483_v26 = vld [vmem:[%s7764_s17 + $0x50] sm:$0xff]  ;;  %v2109_v44 = vlaneseq }
  0x41   : > { %6408 = vmatpush1.msk.msra.mxu0 %vm608_vm0, %v539_v24  ;;  %6414 = vmatpush1.msk.msra.mxu1 %vm608_vm0, %v540_v25  ;;  %v7857_v60 = vadd.f32 %v535_v50, %v518_v49  ;;  %v536_v61 = vmul.f32 %v7772_v6, %v486_v48  ;;  %v530_v62 = vmul.f32 %v7772_v6, %v480_v46  ;;  %v499_v27 = vld [vmem:[%s7759_s12 + $0x50] sm:$0xff]  ;;  %v465_v47 = vld [vmem:[%s8037_s29] sm:$0xff]  ;;  %v7646_v49 = vmov 0  }
  0x42   : > { %6409 = vmatmul.mubr.msk.f32.vlgmr.msra.gmra.mrb[0].mxu0 %vm595_vm1, %v7799_v34  ;;  %6415 = vmatmul.mubr.msk.f32.vlgmr.msra.gmra.mrb[0].mxu1 %vm595_vm1, %v7799_v34  ;;  %v520_v63 = vmul.f32 %v7768_v3, %v503_v52  ;;  %v537_v1 = vmul.f32 %v7772_v6, %v487_v51  ;;  %v521_v2 = vmul.f32 %v7768_v3, %v504_v53  ;;  %v2110_v46 = vshrl.u32 %v2109_v44, 7  ;;  %v3743_v48 = vld [vmem:[%s8048_s15] sm:$0xff]  ;;  %v3744_v52 = vld [vmem:[%s8048_s15 + $0x8] sm:$0xff]  ;;  %v3745_v53 = vld [vmem:[%s8048_s15 + $0x10] sm:$0xff] }
  0x43   : > { %6419 = vmatprep.subr.msk.mxu0 %vm608_vm0, %v581_v35  ;;  %743 = vmatprep.mubr.f32.mxu0 %v9766_v0  ;;  %v7868_v4 = vadd.f32 %v536_v61, %v519_v57  ;;  %v538_v5 = vmul.f32 %v7772_v6, %v488_v58  ;;  %v545_v10 = vadd.f32 %v529_v56, %v512_v55  ;;  %v3746_v57 = vld [vmem:[%s8048_s15 + $0x18] sm:$0xff] }
  0x44   : > { %6420 = vmatpush1.msk.msra.mxu0 %vm608_vm0, %v541_v28  ;;  %832 = vmatprep.mubr.f32.mxu1 %v9766_v0  ;;  %v7878_v8 = vadd.f32 %v537_v1, %v520_v63  ;;  %v546_v11 = vadd.f32 %v530_v62, %v513_v59  ;;  %v514_v18 = vmul.f32 %v7768_v3, %v497_v15  ;;  %v484_v28 = vld [vmem:[%s7764_s17 + $0x58] sm:$0xff]  ;;  %v8178_v15 = vld [vmem:[%s9760_s7 + $0x10] sm:$0xff] }
  0x45   : > { %6425 = vmatprep.subr.msk.mxu1 %vm608_vm0, %v582_v37  ;;  %6431 = vmatprep.subr.msk.mxu0 %vm608_vm0, %v583_v38  ;;  %v7880_v9 = vadd.f32 %v538_v5, %v521_v2  ;;  %v585_v12 = vcombine.high %v545_v10, %v545_v10  ;;  %v531_v19 = vmul.f32 %v7772_v6, %v481_v14  ;;  %v4792_v5 = vld [vmem:[%s459_s19 + $0x8] sm:$0xff]  ;;  %v468_v14 = vld [vmem:[%s8037_s29 + $0x18] sm:$0xff] }
  0x46   : > { %6410 = vmatmul.mubr.msk.f32.gmra.mrb[2].mxu0 %vm595_vm1, %v7818_v39  ;;  %6416 = vmatmul.mubr.msk.f32.gmra.mrb[2].mxu1 %vm595_vm1, %v7818_v39  ;;  %v586_v13 = vcombine.high %v546_v11, %v546_v11  ;;  %v515_v20 = vmul.f32 %v7768_v3, %v498_v17  ;;  %v532_v21 = vmul.f32 %v7772_v6, %v482_v16  ;;  %v8189_v17 = vld [vmem:[%s9760_s7 + $0x18] sm:$0xff] }
  0x47   : > { %6426 = vmatpush1.msk.msra.mxu1 %vm608_vm0, %v542_v29  ;;  %749 = vmatprep.mubr.f32.mxu0 %v9766_v0  ;;  %v547_v22 = vadd.f32 %v531_v19, %v514_v18  ;;  %v500_v29 = vld [vmem:[%s7759_s12 + $0x58] sm:$0xff]  ;;  %v516_v30 = vmul.f32 %v7768_v3, %v499_v27  ;;  %v533_v31 = vmul.f32 %v7772_v6, %v483_v26 }
  0x48   : > { %838 = vmatprep.mubr.f32.mxu1 %v9766_v0  ;;  %6437 = vmatprep.subr.msk.mxu1 %vm608_vm0, %v584_v42  ;;  %v548_v23 = vadd.f32 %v532_v21, %v515_v20  ;;  %v517_v32 = vmul.f32 %v7768_v3, %v500_v29  ;;  %v591_v37 = vcombine.high %v7857_v60, %v7857_v60  ;;  %v7645_v42 = vmov 1983009808  }
  0x49   : > { %v587_v24 = vcombine.high %v547_v22, %v547_v22  ;;  %v549_v35 = vadd.f32 %v533_v31, %v516_v30  ;;  %v592_v38 = vcombine.high %v7868_v4, %v7868_v4  ;;  %v593_v40 = vcombine.high %v7878_v8, %v7878_v8  ;;  %7040 = vset.pattern.permute.xlu0 %v7646_v49 }
  0x4a   : > { %6411 = vmatmul.mubr.msk.f32.gmra.mrb[4].mxu0 %vm595_vm1, %v7848_v54  ;;  %6417 = vmatmul.mubr.msk.f32.gmra.mrb[4].mxu1 %vm595_vm1, %v7848_v54  ;;  %v588_v25 = vcombine.high %v548_v23, %v548_v23  ;;  %v594_v41 = vcombine.high %v7880_v9, %v7880_v9  ;;  %v2107_v43 = vunpack.c.l.s4 %v7645_v42  ;;  %v2105_v51 = vcombine.high %v465_v47, %v465_v47 }
  0x4b   : > { %755 = vmatprep.mubr.f32.mxu0 %v9766_v0  ;;  %844 = vmatprep.mubr.f32.mxu1 %v9766_v0  ;;  %v589_v3 = vcombine.high %v549_v35, %v549_v35  ;;  %v2156_v16 = vcombine.high %v468_v14, %v468_v14 }
  0x4c   : > { %v2108_v45 = vunpack.c.0.s8 %v2107_v43  ;;  %7041 = vset.pattern.permute.xlu1 %v7646_v49  ;;  %3749 = vperm.xlu0 %7040, %v3743_v48  }
  0x4d   : > { %3759 = vperm.xlu1 %7041, %v3745_v53  }
  0x4e   : > { %6412 = vmatmul.mubr.msk.f32.gmra.mrb[6].mxu0 %vm595_vm1, %v7876_v7  ;;  %6418 = vmatmul.mubr.msk.f32.gmra.mrb[6].mxu1 %vm595_vm1, %v7876_v7  ;;  %v8060_v50 = vsub.s32 %v2108_v45, %v2110_v46 }
  0x4f   : > { %915 = vmatprep.mubr.f32.mxu0 %v9766_v0  ;;  %1004 = vmatprep.mubr.f32.mxu1 %v9766_v0 }
  0x50   : > { %v2112_v55 = vrot.slane %v465_v47, %v8060_v50  ;;  %v2119_v56 = vrot.slane %v2105_v51, %v8060_v50  ;;  %3754 = vperm.xlu0 %7040, %v3744_v52   ;;  %v2163_v18 = vrot.slane %v468_v14, %v8060_v50  ;;  %v2170_v19 = vrot.slane %v2156_v16, %v8060_v50 }
  0x51   : > { %3764 = vperm.xlu1 %7041, %v3746_v57  }
  0x52   : > { %6421 = vmatmul.mubr.msk.f32.vlgmr.msra.gmra.mrb[8].mxu0 %vm595_vm1, %v7799_v34  ;;  %6427 = vmatmul.mubr.msk.f32.vlgmr.msra.gmra.mrb[8].mxu1 %vm595_vm1, %v7799_v34  ;;  %v2120_v58 = vcombine.high %v2112_v55, %v2112_v55  ;;  %v2121_v59 = vcombine.high %v2119_v56, %v2119_v56  ;;  %v2171_v20 = vcombine.high %v2163_v18, %v2163_v18 }
  0x53   : > { %6432 = vmatpush1.msk.msra.mxu0 %vm608_vm0, %v7794_v33  ;;  %921 = vmatprep.mubr.f32.mxu0 %v9766_v0  ;;  %v534_v33 = vmul.f32 %v7772_v6, %v484_v28  ;;  %v2172_v21 = vcombine.high %v2170_v19, %v2170_v19  ;;  %v470_v28 = vld [vmem:[%s8037_s29 + $0x28] sm:$0xff] }
  0x54   : > { %1010 = vmatprep.mubr.f32.mxu1 %v9766_v0  ;;  %6438 = vmatpush1.msk.msra.mxu1 %vm608_vm0, %v7803_v36  ;;  %v2190_v29 = vcombine.high %v470_v28, %v470_v28  ;;  %v2197_v30 = vrot.slane %v470_v28, %v8060_v50 }
  0x55   : > { %6443 = vmatprep.subr.msk.mxu0 %vm608_vm0, %v585_v12  ;;  %6449 = vmatprep.subr.msk.mxu1 %vm608_vm0, %v586_v13  ;;  %v550_v36 = vadd.f32 %v534_v33, %v517_v32 }
  0x56   : > { %6422 = vmatmul.mubr.msk.f32.gmra.mrb[10].mxu0 %vm595_vm1, %v7818_v39  ;;  %6428 = vmatmul.mubr.msk.f32.gmra.mrb[10].mxu1 %vm595_vm1, %v7818_v39  ;;  %v2204_v31 = vrot.slane %v2190_v29, %v8060_v50  ;;  %v2205_v32 = vcombine.high %v2197_v30, %v2197_v30 }
  0x57   : > { %927 = vmatprep.mubr.f32.mxu0 %v9766_v0  ;;  %1016 = vmatprep.mubr.f32.mxu1 %v9766_v0  ;;  %v590_v6 = vcombine.high %v550_v36, %v550_v36 }
  0x58   : > { %4802 = vperm.xlu1 %7041, %v4792_v5   ;;  %v2206_v33 = vcombine.high %v2204_v31, %v2204_v31 }
  0x5a   : > { %6423 = vmatmul.mubr.msk.f32.gmra.mrb[12].mxu0 %vm595_vm1, %v7848_v54  ;;  %6429 = vmatmul.mubr.msk.f32.gmra.mrb[12].mxu1 %vm595_vm1, %v7848_v54 }
  0x5b   : > { %933 = vmatprep.mubr.f32.mxu0 %v9766_v0  ;;  %1022 = vmatprep.mubr.f32.mxu1 %v9766_v0 }
  0x5e   : > { %6424 = vmatmul.mubr.msk.f32.gmra.mrb[14].mxu0 %vm595_vm1, %v7876_v7  ;;  %6430 = vmatmul.mubr.msk.f32.gmra.mrb[14].mxu1 %vm595_vm1, %v7876_v7 }
  0x5f   : > { %1093 = vmatprep.mubr.f32.mxu0 %v9766_v0  ;;  %1182 = vmatprep.mubr.f32.mxu1 %v9766_v0 }
  0x62   : > { %6433 = vmatmul.mubr.msk.f32.vlgmr.msra.gmra.mrb[16].mxu0 %vm595_vm1, %v7799_v34  ;;  %6439 = vmatmul.mubr.msk.f32.vlgmr.msra.gmra.mrb[16].mxu1 %vm595_vm1, %v7799_v34 }
  0x63   : > { %6444 = vmatpush1.msk.msra.mxu0 %vm608_vm0, %v545_v10  ;;  %1099 = vmatprep.mubr.f32.mxu0 %v9766_v0 }
  0x64   : > { %1188 = vmatprep.mubr.f32.mxu1 %v9766_v0  ;;  %6450 = vmatpush1.msk.msra.mxu1 %vm608_vm0, %v546_v11  ;;  %v4794_v11 = vld [vmem:[%s459_s19 + $0x18] sm:$0xff] }
  0x65   : > { %6455 = vmatprep.subr.msk.mxu0 %vm608_vm0, %v587_v24  ;;  %6461 = vmatprep.subr.msk.mxu1 %vm608_vm0, %v588_v25 }
  0x66   : > { %6434 = vmatmul.mubr.msk.f32.gmra.mrb[18].mxu0 %vm595_vm1, %v7818_v39  ;;  %6440 = vmatmul.mubr.msk.f32.gmra.mrb[18].mxu1 %vm595_vm1, %v7818_v39 }
  0x67   : > { %1105 = vmatprep.mubr.f32.mxu0 %v9766_v0  ;;  %1194 = vmatprep.mubr.f32.mxu1 %v9766_v0 }
  0x68   : > { %4812 = vperm.xlu1 %7041, %v4794_v11  }
  0x6a   : > { %6435 = vmatmul.mubr.msk.f32.gmra.mrb[20].mxu0 %vm595_vm1, %v7848_v54  ;;  %6441 = vmatmul.mubr.msk.f32.gmra.mrb[20].mxu1 %vm595_vm1, %v7848_v54 }
  0x6b   : > { %1111 = vmatprep.mubr.f32.mxu0 %v9766_v0  ;;  %1200 = vmatprep.mubr.f32.mxu1 %v9766_v0 }
  0x6e   : > { %6436 = vmatmul.mubr.msk.f32.gmra.mrb[22].mxu0 %vm595_vm1, %v7876_v7  ;;  %6442 = vmatmul.mubr.msk.f32.gmra.mrb[22].mxu1 %vm595_vm1, %v7876_v7 }
  0x6f   : > { %1271 = vmatprep.mubr.f32.mxu0 %v9766_v0  ;;  %1360 = vmatprep.mubr.f32.mxu1 %v9766_v0 }
  0x72   : > { %6445 = vmatmul.mubr.msk.f32.vlgmr.msra.gmra.mrb[24].mxu0 %vm595_vm1, %v7799_v34  ;;  %6451 = vmatmul.mubr.msk.f32.vlgmr.msra.gmra.mrb[24].mxu1 %vm595_vm1, %v7799_v34 }
  0x73   : > { %6456 = vmatpush1.msk.msra.mxu0 %vm608_vm0, %v547_v22  ;;  %1277 = vmatprep.mubr.f32.mxu0 %v9766_v0  ;;  %v469_v22 = vld [vmem:[%s8037_s29 + $0x20] sm:$0xff] }
  0x74   : > { %1366 = vmatprep.mubr.f32.mxu1 %v9766_v0  ;;  %6462 = vmatpush1.msk.msra.mxu1 %vm608_vm0, %v548_v23  ;;  %v2173_v23 = vcombine.high %v469_v22, %v469_v22  ;;  %v2180_v24 = vrot.slane %v469_v22, %v8060_v50 }
  0x75   : > { %6467 = vmatprep.subr.msk.mxu0 %vm608_vm0, %v589_v3  ;;  %6473 = vmatprep.subr.msk.mxu1 %vm608_vm0, %v590_v6 }
  0x76   : > { %6446 = vmatmul.mubr.msk.f32.gmra.mrb[26].mxu0 %vm595_vm1, %v7818_v39  ;;  %6452 = vmatmul.mubr.msk.f32.gmra.mrb[26].mxu1 %vm595_vm1, %v7818_v39  ;;  %v2187_v25 = vrot.slane %v2173_v23, %v8060_v50  ;;  %v2188_v26 = vcombine.high %v2180_v24, %v2180_v24 }
  0x77   : > { %1283 = vmatprep.mubr.f32.mxu0 %v9766_v0  ;;  %1372 = vmatprep.mubr.f32.mxu1 %v9766_v0 }
  0x78   : > { %v2189_v27 = vcombine.high %v2187_v25, %v2187_v25 }
  0x7a   : > { %6447 = vmatmul.mubr.msk.f32.gmra.mrb[28].mxu0 %vm595_vm1, %v7848_v54  ;;  %6453 = vmatmul.mubr.msk.f32.gmra.mrb[28].mxu1 %vm595_vm1, %v7848_v54 }
  0x7b   : > { %1289 = vmatprep.mubr.f32.mxu0 %v9766_v0  ;;  %1378 = vmatprep.mubr.f32.mxu1 %v9766_v0 }
  0x7e   : > { %6448 = vmatmul.mubr.msk.f32.gmra.mrb[30].mxu0 %vm595_vm1, %v7876_v7  ;;  %6454 = vmatmul.mubr.msk.f32.gmra.mrb[30].mxu1 %vm595_vm1, %v7876_v7 }
  0x7f   : > { %1449 = vmatprep.mubr.f32.mxu0 %v9766_v0  ;;  %1538 = vmatprep.mubr.f32.mxu1 %v9766_v0 }
  0x82   : > { %6457 = vmatmul.mubr.msk.f32.vlgmr.msra.gmra.mrb[32].mxu0 %vm595_vm1, %v7799_v34  ;;  %6463 = vmatmul.mubr.msk.f32.vlgmr.msra.gmra.mrb[32].mxu1 %vm595_vm1, %v7799_v34 }
  0x83   : > { %6468 = vmatpush1.msk.msra.mxu0 %vm608_vm0, %v549_v35  ;;  %1455 = vmatprep.mubr.f32.mxu0 %v9766_v0  ;;  %v471_v35 = vld [vmem:[%s8037_s29 + $0x30] sm:$0xff] }
  0x84   : > { %1544 = vmatprep.mubr.f32.mxu1 %v9766_v0  ;;  %6474 = vmatpush1.msk.msra.mxu1 %vm608_vm0, %v550_v36  ;;  %v2207_v36 = vcombine.high %v471_v35, %v471_v35  ;;  %v2214_v3 = vrot.slane %v471_v35, %v8060_v50 }
  0x85   : > { %6479 = vmatprep.subr.msk.mxu0 %vm608_vm0, %v591_v37  ;;  %6485 = vmatprep.subr.msk.mxu1 %vm608_vm0, %v592_v38 }
  0x86   : > { %6458 = vmatmul.mubr.msk.f32.gmra.mrb[34].mxu0 %vm595_vm1, %v7818_v39  ;;  %6464 = vmatmul.mubr.msk.f32.gmra.mrb[34].mxu1 %vm595_vm1, %v7818_v39  ;;  %v2221_v6 = vrot.slane %v2207_v36, %v8060_v50  ;;  %v2222_v37 = vcombine.high %v2214_v3, %v2214_v3 }
  0x87   : > { %1461 = vmatprep.mubr.f32.mxu0 %v9766_v0  ;;  %1550 = vmatprep.mubr.f32.mxu1 %v9766_v0 }
  0x88   : > { %v2223_v38 = vcombine.high %v2221_v6, %v2221_v6 }
  0x8a   : > { %6459 = vmatmul.mubr.msk.f32.gmra.mrb[36].mxu0 %vm595_vm1, %v7848_v54  ;;  %6465 = vmatmul.mubr.msk.f32.gmra.mrb[36].mxu1 %vm595_vm1, %v7848_v54 }
  0x8b   : > { %1467 = vmatprep.mubr.f32.mxu0 %v9766_v0  ;;  %1556 = vmatprep.mubr.f32.mxu1 %v9766_v0 }
  0x8e   : > { %6460 = vmatmul.mubr.msk.f32.gmra.mrb[38].mxu0 %vm595_vm1, %v7876_v7  ;;  %6466 = vmatmul.mubr.msk.f32.gmra.mrb[38].mxu1 %vm595_vm1, %v7876_v7 }
  0x8f   : > { %1627 = vmatprep.mubr.f32.mxu0 %v9766_v0  ;;  %1716 = vmatprep.mubr.f32.mxu1 %v9766_v0 }
  0x92   : > { %6469 = vmatmul.mubr.msk.f32.vlgmr.msra.gmra.mrb[40].mxu0 %vm595_vm1, %v7799_v34  ;;  %6475 = vmatmul.mubr.msk.f32.vlgmr.msra.gmra.mrb[40].mxu1 %vm595_vm1, %v7799_v34 }
  0x93   : > { %6480 = vmatpush1.msk.msra.mxu0 %vm608_vm0, %v7857_v60  ;;  %1633 = vmatprep.mubr.f32.mxu0 %v9766_v0  ;;  %v466_v60 = vld [vmem:[%s8037_s29 + $0x8] sm:$0xff] }
  0x94   : > { %1722 = vmatprep.mubr.f32.mxu1 %v9766_v0  ;;  %6486 = vmatpush1.msk.msra.mxu1 %vm608_vm0, %v7868_v4  ;;  %v2122_v61 = vcombine.high %v466_v60, %v466_v60  ;;  %v2129_v62 = vrot.slane %v466_v60, %v8060_v50  ;;  %v4791_v4 = vld [vmem:[%s459_s19] sm:$0xff] }
  0x95   : > { %6491 = vmatprep.subr.msk.mxu0 %vm608_vm0, %v593_v40  ;;  %6497 = vmatprep.subr.msk.mxu1 %vm608_vm0, %v594_v41  ;;  %v472_v40 = vld [vmem:[%s8037_s29 + $0x38] sm:$0xff] }
  0x96   : > { %6470 = vmatmul.mubr.msk.f32.gmra.mrb[42].mxu0 %vm595_vm1, %v7818_v39  ;;  %6476 = vmatmul.mubr.msk.f32.gmra.mrb[42].mxu1 %vm595_vm1, %v7818_v39  ;;  %v2136_v63 = vrot.slane %v2122_v61, %v8060_v50  ;;  %v2137_v1 = vcombine.high %v2129_v62, %v2129_v62  ;;  %v2224_v41 = vcombine.high %v472_v40, %v472_v40 }
  0x97   : > { %1639 = vmatprep.mubr.f32.mxu0 %v9766_v0  ;;  %1728 = vmatprep.mubr.f32.mxu1 %v9766_v0  ;;  %v2231_v42 = vrot.slane %v472_v40, %v8060_v50 }
  0x98   : > { %v2138_v2 = vcombine.high %v2136_v63, %v2136_v63  ;;  %4797 = vperm.xlu0 %7040, %v4791_v4   ;;  %v2238_v43 = vrot.slane %v2224_v41, %v8060_v50 }
  0x99   : > { %v2239_v44 = vcombine.high %v2231_v42, %v2231_v42 }
  0x9a   : > { %6471 = vmatmul.mubr.msk.f32.gmra.mrb[44].mxu0 %vm595_vm1, %v7848_v54  ;;  %6477 = vmatmul.mubr.msk.f32.gmra.mrb[44].mxu1 %vm595_vm1, %v7848_v54  ;;  %v2240_v45 = vcombine.high %v2238_v43, %v2238_v43 }
  0x9b   : > { %1645 = vmatprep.mubr.f32.mxu0 %v9766_v0  ;;  %1734 = vmatprep.mubr.f32.mxu1 %v9766_v0 }
  0x9e   : > { %6472 = vmatmul.mubr.msk.f32.gmra.mrb[46].mxu0 %vm595_vm1, %v7876_v7  ;;  %6478 = vmatmul.mubr.msk.f32.gmra.mrb[46].mxu1 %vm595_vm1, %v7876_v7 }
  0x9f   : > { %1805 = vmatprep.mubr.f32.mxu0 %v9766_v0  ;;  %1894 = vmatprep.mubr.f32.mxu1 %v9766_v0 }
  0xa2   : > { %6481 = vmatmul.mubr.msk.f32.vlgmr.msra.gmra.mrb[48].mxu0 %vm595_vm1, %v7799_v34  ;;  %6487 = vmatmul.mubr.msk.f32.vlgmr.msra.gmra.mrb[48].mxu1 %vm595_vm1, %v7799_v34 }
  0xa3   : > { %6492 = vmatpush1.msk.msra.mxu0 %vm608_vm0, %v7878_v8  ;;  %1811 = vmatprep.mubr.f32.mxu0 %v9766_v0 }
  0xa4   : > { %1900 = vmatprep.mubr.f32.mxu1 %v9766_v0  ;;  %6498 = vmatpush1.msk.msra.mxu1 %vm608_vm0, %v7880_v9  ;;  %v4793_v9 = vld [vmem:[%s459_s19 + $0x10] sm:$0xff] }
  0xa5   : > { %6503 = vmatprep.subr.msk.mxu0 %vm2254_vm2, %v2120_v58  ;;  %6509 = vmatprep.subr.msk.mxu1 %vm2254_vm2, %v2121_v59 }
  0xa6   : > { %6482 = vmatmul.mubr.msk.f32.gmra.mrb[50].mxu0 %vm595_vm1, %v7818_v39  ;;  %6488 = vmatmul.mubr.msk.f32.gmra.mrb[50].mxu1 %vm595_vm1, %v7818_v39 }
  0xa7   : > { %1817 = vmatprep.mubr.f32.mxu0 %v9766_v0  ;;  %1906 = vmatprep.mubr.f32.mxu1 %v9766_v0 }
  0xa8   : > { %4807 = vperm.xlu0 %7040, %v4793_v9  }
  0xaa   : > { %6483 = vmatmul.mubr.msk.f32.gmra.mrb[52].mxu0 %vm595_vm1, %v7848_v54  ;;  %6489 = vmatmul.mubr.msk.f32.gmra.mrb[52].mxu1 %vm595_vm1, %v7848_v54 }
  0xab   : > { %1823 = vmatprep.mubr.f32.mxu0 %v9766_v0  ;;  %1912 = vmatprep.mubr.f32.mxu1 %v9766_v0 }
  0xae   : > { %6484 = vmatmul.mubr.msk.f32.gmra.mrb[54].mxu0 %vm595_vm1, %v7876_v7  ;;  %6490 = vmatmul.mubr.msk.f32.gmra.mrb[54].mxu1 %vm595_vm1, %v7876_v7 }
  0xaf   : > { %1983 = vmatprep.mubr.f32.mxu0 %v9766_v0  ;;  %2072 = vmatprep.mubr.f32.mxu1 %v9766_v0 }
  0xb2   : > { %6493 = vmatmul.mubr.msk.f32.vlgmr.msra.gmra.mrb[56].mxu0 %vm595_vm1, %v7799_v34  ;;  %6499 = vmatmul.mubr.msk.f32.vlgmr.msra.gmra.mrb[56].mxu1 %vm595_vm1, %v7799_v34  ;;  %v467_v34 = vld [vmem:[%s8037_s29 + $0x10] sm:$0xff] }
  0xb3   : > { %6504 = vmatpush1.msk.msra.mxu0 %vm2254_vm2, %v2112_v55  ;;  %1989 = vmatprep.mubr.f32.mxu0 %v9766_v0  ;;  %v2139_v8 = vcombine.high %v467_v34, %v467_v34 }
  0xb4   : > { %2078 = vmatprep.mubr.f32.mxu1 %v9766_v0  ;;  %6510 = vmatpush1.msk.msra.mxu1 %vm2254_vm2, %v2119_v56 }
  0xb5   : > { %6515 = vmatprep.subr.msk.mxu0 %vm2254_vm2, %v2137_v1  ;;  %6521 = vmatprep.subr.msk.mxu1 %vm2254_vm2, %v2138_v2  ;;  %v2153_v10 = vrot.slane %v2139_v8, %v8060_v50 }
  0xb6   : > { %6494 = vmatmul.mubr.msk.f32.gmra.mrb[58].mxu0 %vm595_vm1, %v7818_v39  ;;  %6500 = vmatmul.mubr.msk.f32.gmra.mrb[58].mxu1 %vm595_vm1, %v7818_v39  ;;  %v2146_v39 = vrot.slane %v467_v34, %v8060_v50 }
  0xb7   : > { %1995 = vmatprep.mubr.f32.mxu0 %v9766_v0  ;;  %2084 = vmatprep.mubr.f32.mxu1 %v9766_v0  ;;  %v2155_v13 = vcombine.high %v2153_v10, %v2153_v10 }
  0xb8   : > { %v2154_v12 = vcombine.high %v2146_v39, %v2146_v39 }
  0xba   : > { %6495 = vmatmul.mubr.msk.f32.gmra.mrb[60].mxu0 %vm595_vm1, %v7848_v54  ;;  %6501 = vmatmul.mubr.msk.f32.gmra.mrb[60].mxu1 %vm595_vm1, %v7848_v54  ;;  %v8151_v54 = vld [vmem:[%s9760_s7] sm:$0xff] }
  0xbb   : > { %2001 = vmatprep.mubr.f32.mxu0 %v9766_v0  ;;  %2090 = vmatprep.mubr.f32.mxu1 %v9766_v0 }
  0xbe   : > { %6496 = vmatmul.mubr.msk.f32.gmra.mrb[62].mxu0 %vm595_vm1, %v7876_v7  ;;  %6502 = vmatmul.mubr.msk.f32.gmra.mrb[62].mxu1 %vm595_vm1, %v7876_v7  ;;  %v8162_v7 = vld [vmem:[%s9760_s7 + $0x8] sm:$0xff] }
  0xbf   : > { %2383 = vmatprep.mubr.f32.mxu0 %v9766_v0  ;;  %2472 = vmatprep.mubr.f32.mxu1 %v9766_v0 }
  0xc2   : > { %6505 = vmatmul.mubr.msk.f32.vlgmr.msra.gmra.mrb[0].mxu0 %vm2241_vm3, %v8151_v54  ;;  %6511 = vmatmul.mubr.msk.f32.vlgmr.msra.gmra.mrb[0].mxu1 %vm2241_vm3, %v8151_v54 }
  0xc3   : > { %6516 = vmatpush1.msk.msra.mxu0 %vm2254_vm2, %v2129_v62  ;;  %2389 = vmatprep.mubr.f32.mxu0 %v9766_v0 }
  0xc4   : > { %2478 = vmatprep.mubr.f32.mxu1 %v9766_v0  ;;  %6522 = vmatpush1.msk.msra.mxu1 %vm2254_vm2, %v2136_v63 }
  0xc5   : > { %6527 = vmatprep.subr.msk.mxu0 %vm2254_vm2, %v2154_v12  ;;  %6533 = vmatprep.subr.msk.mxu1 %vm2254_vm2, %v2155_v13 }
  0xc6   : > { %6506 = vmatmul.mubr.msk.f32.gmra.mrb[2].mxu0 %vm2241_vm3, %v8162_v7  ;;  %6512 = vmatmul.mubr.msk.f32.gmra.mrb[2].mxu1 %vm2241_vm3, %v8162_v7 }
  0xc7   : > { %2395 = vmatprep.mubr.f32.mxu0 %v9766_v0  ;;  %2484 = vmatprep.mubr.f32.mxu1 %v9766_v0 }
  0xca   : > { %6507 = vmatmul.mubr.msk.f32.gmra.mrb[4].mxu0 %vm2241_vm3, %v8178_v15  ;;  %6513 = vmatmul.mubr.msk.f32.gmra.mrb[4].mxu1 %vm2241_vm3, %v8178_v15 }
  0xcb   : > { %2401 = vmatprep.mubr.f32.mxu0 %v9766_v0  ;;  %2490 = vmatprep.mubr.f32.mxu1 %v9766_v0  ;;  %v8401_v46 = vpop.permute.xlu0 %3749 }
  0xcc   : > { %v8419_v59 = vpop.permute.xlu1 %3759 }
  0xce   : > { %6508 = vmatmul.mubr.msk.f32.gmra.mrb[6].mxu0 %vm2241_vm3, %v8189_v17  ;;  %6514 = vmatmul.mubr.msk.f32.gmra.mrb[6].mxu1 %vm2241_vm3, %v8189_v17 }
  0xcf   : > { %2561 = vmatprep.mubr.f32.mxu0 %v9766_v0  ;;  %2650 = vmatprep.mubr.f32.mxu1 %v9766_v0  ;;  %v8415_v56 = vpop.permute.xlu0 %3754 }
  0xd2   : > { %6517 = vmatmul.mubr.msk.f32.vlgmr.msra.gmra.mrb[8].mxu0 %vm2241_vm3, %v8151_v54  ;;  %6523 = vmatmul.mubr.msk.f32.vlgmr.msra.gmra.mrb[8].mxu1 %vm2241_vm3, %v8151_v54 }
  0xd3   : > { %6528 = vmatpush1.msk.msra.mxu0 %vm2254_vm2, %v2146_v39  ;;  %2567 = vmatprep.mubr.f32.mxu0 %v9766_v0 }
  0xd4   : > { %2656 = vmatprep.mubr.f32.mxu1 %v9766_v0  ;;  %6534 = vmatpush1.msk.msra.mxu1 %vm2254_vm2, %v2153_v10 }
  0xd5   : > { %6539 = vmatprep.subr.msk.mxu0 %vm2254_vm2, %v2171_v20  ;;  %6545 = vmatprep.subr.msk.mxu1 %vm2254_vm2, %v2172_v21 }
  0xd6   : > { %6518 = vmatmul.mubr.msk.f32.gmra.mrb[10].mxu0 %vm2241_vm3, %v8162_v7  ;;  %6524 = vmatmul.mubr.msk.f32.gmra.mrb[10].mxu1 %vm2241_vm3, %v8162_v7 }
  0xd7   : > { %2573 = vmatprep.mubr.f32.mxu0 %v9766_v0  ;;  %2662 = vmatprep.mubr.f32.mxu1 %v9766_v0 }
  0xda   : > { %6519 = vmatmul.mubr.msk.f32.gmra.mrb[12].mxu0 %vm2241_vm3, %v8178_v15  ;;  %6525 = vmatmul.mubr.msk.f32.gmra.mrb[12].mxu1 %vm2241_vm3, %v8178_v15 }
  0xdb   : > { %2579 = vmatprep.mubr.f32.mxu0 %v9766_v0  ;;  %2668 = vmatprep.mubr.f32.mxu1 %v9766_v0 }
  0xde   : > { %6520 = vmatmul.mubr.msk.f32.gmra.mrb[14].mxu0 %vm2241_vm3, %v8189_v17  ;;  %6526 = vmatmul.mubr.msk.f32.gmra.mrb[14].mxu1 %vm2241_vm3, %v8189_v17 }
  0xdf   : > { %2739 = vmatprep.mubr.f32.mxu0 %v9766_v0  ;;  %2828 = vmatprep.mubr.f32.mxu1 %v9766_v0 }
  0xe2   : > { %6529 = vmatmul.mubr.msk.f32.vlgmr.msra.gmra.mrb[16].mxu0 %vm2241_vm3, %v8151_v54  ;;  %6535 = vmatmul.mubr.msk.f32.vlgmr.msra.gmra.mrb[16].mxu1 %vm2241_vm3, %v8151_v54 }
  0xe3   : > { %6540 = vmatpush1.msk.msra.mxu0 %vm2254_vm2, %v2163_v18  ;;  %2745 = vmatprep.mubr.f32.mxu0 %v9766_v0  ;;  %v8451_v18 = vpop.permute.xlu1 %3764 }
  0xe4   : > { %2834 = vmatprep.mubr.f32.mxu1 %v9766_v0  ;;  %6546 = vmatpush1.msk.msra.mxu1 %vm2254_vm2, %v2170_v19 }
  0xe5   : > { %6551 = vmatprep.subr.msk.mxu0 %vm2254_vm2, %v2188_v26  ;;  %6557 = vmatprep.subr.msk.mxu1 %vm2254_vm2, %v2189_v27 }
  0xe6   : > { %6530 = vmatmul.mubr.msk.f32.gmra.mrb[18].mxu0 %vm2241_vm3, %v8162_v7  ;;  %6536 = vmatmul.mubr.msk.f32.gmra.mrb[18].mxu1 %vm2241_vm3, %v8162_v7 }
  0xe7   : > { %2751 = vmatprep.mubr.f32.mxu0 %v9766_v0  ;;  %2840 = vmatprep.mubr.f32.mxu1 %v9766_v0 }
  0xea   : > { %6531 = vmatmul.mubr.msk.f32.gmra.mrb[20].mxu0 %vm2241_vm3, %v8178_v15  ;;  %6537 = vmatmul.mubr.msk.f32.gmra.mrb[20].mxu1 %vm2241_vm3, %v8178_v15 }
  0xeb   : > { %2757 = vmatprep.mubr.f32.mxu0 %v9766_v0  ;;  %2846 = vmatprep.mubr.f32.mxu1 %v9766_v0 }
  0xee   : > { %6532 = vmatmul.mubr.msk.f32.gmra.mrb[22].mxu0 %vm2241_vm3, %v8189_v17  ;;  %6538 = vmatmul.mubr.msk.f32.gmra.mrb[22].mxu1 %vm2241_vm3, %v8189_v17 }
  0xef   : > { %2917 = vmatprep.mubr.f32.mxu0 %v9766_v0  ;;  %3006 = vmatprep.mubr.f32.mxu1 %v9766_v0 }
  0xf2   : > { %6541 = vmatmul.mubr.msk.f32.vlgmr.msra.gmra.mrb[24].mxu0 %vm2241_vm3, %v8151_v54  ;;  %6547 = vmatmul.mubr.msk.f32.vlgmr.msra.gmra.mrb[24].mxu1 %vm2241_vm3, %v8151_v54 }
  0xf3   : > { %6552 = vmatpush1.msk.msra.mxu0 %vm2254_vm2, %v2180_v24  ;;  %2923 = vmatprep.mubr.f32.mxu0 %v9766_v0 }
  0xf4   : > { %3012 = vmatprep.mubr.f32.mxu1 %v9766_v0  ;;  %6558 = vmatpush1.msk.msra.mxu1 %vm2254_vm2, %v2187_v25 }
  0xf5   : > { %6563 = vmatprep.subr.msk.mxu0 %vm2254_vm2, %v2205_v32  ;;  %6569 = vmatprep.subr.msk.mxu1 %vm2254_vm2, %v2206_v33 }
  0xf6   : > { %6542 = vmatmul.mubr.msk.f32.gmra.mrb[26].mxu0 %vm2241_vm3, %v8162_v7  ;;  %6548 = vmatmul.mubr.msk.f32.gmra.mrb[26].mxu1 %vm2241_vm3, %v8162_v7 }
  0xf7   : > { %2929 = vmatprep.mubr.f32.mxu0 %v9766_v0  ;;  %3018 = vmatprep.mubr.f32.mxu1 %v9766_v0 }
  0xfa   : > { %6543 = vmatmul.mubr.msk.f32.gmra.mrb[28].mxu0 %vm2241_vm3, %v8178_v15  ;;  %6549 = vmatmul.mubr.msk.f32.gmra.mrb[28].mxu1 %vm2241_vm3, %v8178_v15 }
  0xfb   : > { %2935 = vmatprep.mubr.f32.mxu0 %v9766_v0  ;;  %3024 = vmatprep.mubr.f32.mxu1 %v9766_v0 }
  0xfe   : > { %6544 = vmatmul.mubr.msk.f32.gmra.mrb[30].mxu0 %vm2241_vm3, %v8189_v17  ;;  %6550 = vmatmul.mubr.msk.f32.gmra.mrb[30].mxu1 %vm2241_vm3, %v8189_v17 }
  0xff   : > { %3095 = vmatprep.mubr.f32.mxu0 %v9766_v0  ;;  %3184 = vmatprep.mubr.f32.mxu1 %v9766_v0 }
 0x102   : > { %6553 = vmatmul.mubr.msk.f32.vlgmr.msra.gmra.mrb[32].mxu0 %vm2241_vm3, %v8151_v54  ;;  %6559 = vmatmul.mubr.msk.f32.vlgmr.msra.gmra.mrb[32].mxu1 %vm2241_vm3, %v8151_v54 }
 0x103   : > { %6564 = vmatpush1.msk.msra.mxu0 %vm2254_vm2, %v2197_v30  ;;  %3101 = vmatprep.mubr.f32.mxu0 %v9766_v0 }
 0x104   : > { %3190 = vmatprep.mubr.f32.mxu1 %v9766_v0  ;;  %6570 = vmatpush1.msk.msra.mxu1 %vm2254_vm2, %v2204_v31 }
 0x105   : > { %6575 = vmatprep.subr.msk.mxu0 %vm2254_vm2, %v2222_v37  ;;  %6581 = vmatprep.subr.msk.mxu1 %vm2254_vm2, %v2223_v38 }
 0x106   : > { %6554 = vmatmul.mubr.msk.f32.gmra.mrb[34].mxu0 %vm2241_vm3, %v8162_v7  ;;  %6560 = vmatmul.mubr.msk.f32.gmra.mrb[34].mxu1 %vm2241_vm3, %v8162_v7 }
 0x107   : > { %3107 = vmatprep.mubr.f32.mxu0 %v9766_v0  ;;  %3196 = vmatprep.mubr.f32.mxu1 %v9766_v0 }
 0x10a   : > { %6555 = vmatmul.mubr.msk.f32.gmra.mrb[36].mxu0 %vm2241_vm3, %v8178_v15  ;;  %6561 = vmatmul.mubr.msk.f32.gmra.mrb[36].mxu1 %vm2241_vm3, %v8178_v15 }
 0x10b   : > { %3113 = vmatprep.mubr.f32.mxu0 %v9766_v0  ;;  %3202 = vmatprep.mubr.f32.mxu1 %v9766_v0 }
 0x10e   : > { %6556 = vmatmul.mubr.msk.f32.gmra.mrb[38].mxu0 %vm2241_vm3, %v8189_v17  ;;  %6562 = vmatmul.mubr.msk.f32.gmra.mrb[38].mxu1 %vm2241_vm3, %v8189_v17 }
 0x10f   : > { %3273 = vmatprep.mubr.f32.mxu0 %v9766_v0  ;;  %3362 = vmatprep.mubr.f32.mxu1 %v9766_v0 }
 0x112   : > { %6565 = vmatmul.mubr.msk.f32.vlgmr.msra.gmra.mrb[40].mxu0 %vm2241_vm3, %v8151_v54  ;;  %6571 = vmatmul.mubr.msk.f32.vlgmr.msra.gmra.mrb[40].mxu1 %vm2241_vm3, %v8151_v54 }
 0x113   : > { %6576 = vmatpush1.msk.msra.mxu0 %vm2254_vm2, %v2214_v3  ;;  %3279 = vmatprep.mubr.f32.mxu0 %v9766_v0 }
 0x114   : > { %3368 = vmatprep.mubr.f32.mxu1 %v9766_v0  ;;  %6582 = vmatpush1.msk.msra.mxu1 %vm2254_vm2, %v2221_v6 }
 0x115   : > { %6587 = vmatprep.subr.msk.mxu0 %vm2254_vm2, %v2239_v44  ;;  %6593 = vmatprep.subr.msk.mxu1 %vm2254_vm2, %v2240_v45 }
 0x116   : > { %6566 = vmatmul.mubr.msk.f32.gmra.mrb[42].mxu0 %vm2241_vm3, %v8162_v7  ;;  %6572 = vmatmul.mubr.msk.f32.gmra.mrb[42].mxu1 %vm2241_vm3, %v8162_v7 }
 0x117   : > { %3285 = vmatprep.mubr.f32.mxu0 %v9766_v0  ;;  %3374 = vmatprep.mubr.f32.mxu1 %v9766_v0 }
 0x11a   : > { %6567 = vmatmul.mubr.msk.f32.gmra.mrb[44].mxu0 %vm2241_vm3, %v8178_v15  ;;  %6573 = vmatmul.mubr.msk.f32.gmra.mrb[44].mxu1 %vm2241_vm3, %v8178_v15 }
 0x11b   : > { %3291 = vmatprep.mubr.f32.mxu0 %v9766_v0  ;;  %3380 = vmatprep.mubr.f32.mxu1 %v9766_v0 }
 0x11e   : > { %6568 = vmatmul.mubr.msk.f32.gmra.mrb[46].mxu0 %vm2241_vm3, %v8189_v17  ;;  %6574 = vmatmul.mubr.msk.f32.gmra.mrb[46].mxu1 %vm2241_vm3, %v8189_v17 }
 0x11f   : > { %3451 = vmatprep.mubr.f32.mxu0 %v9766_v0  ;;  %3540 = vmatprep.mubr.f32.mxu1 %v9766_v0 }
 0x122   : > { %6577 = vmatmul.mubr.msk.f32.vlgmr.msra.gmra.mrb[48].mxu0 %vm2241_vm3, %v8151_v54  ;;  %6583 = vmatmul.mubr.msk.f32.vlgmr.msra.gmra.mrb[48].mxu1 %vm2241_vm3, %v8151_v54 }
 0x123   : > { %6588 = vmatpush1.msk.msra.mxu0 %vm2254_vm2, %v2231_v42  ;;  %3457 = vmatprep.mubr.f32.mxu0 %v9766_v0 }
 0x124   : > { %3546 = vmatprep.mubr.f32.mxu1 %v9766_v0  ;;  %6594 = vmatpush1.msk.msra.mxu1 %vm2254_vm2, %v2238_v43 }
 0x126   : > { %6578 = vmatmul.mubr.msk.f32.gmra.mrb[50].mxu0 %vm2241_vm3, %v8162_v7  ;;  %6584 = vmatmul.mubr.msk.f32.gmra.mrb[50].mxu1 %vm2241_vm3, %v8162_v7 }
 0x127   : > { %3463 = vmatprep.mubr.f32.mxu0 %v9766_v0  ;;  %3552 = vmatprep.mubr.f32.mxu1 %v9766_v0 }
 0x12a   : > { %6579 = vmatmul.mubr.msk.f32.gmra.mrb[52].mxu0 %vm2241_vm3, %v8178_v15  ;;  %6585 = vmatmul.mubr.msk.f32.gmra.mrb[52].mxu1 %vm2241_vm3, %v8178_v15 }
 0x12b   : > { %3469 = vmatprep.mubr.f32.mxu0 %v9766_v0  ;;  %3558 = vmatprep.mubr.f32.mxu1 %v9766_v0 }
 0x12e   : > { %6580 = vmatmul.mubr.msk.f32.gmra.mrb[54].mxu0 %vm2241_vm3, %v8189_v17  ;;  %6586 = vmatmul.mubr.msk.f32.gmra.mrb[54].mxu1 %vm2241_vm3, %v8189_v17 }
 0x12f   : > { %3629 = vmatprep.mubr.f32.mxu0 %v9766_v0  ;;  %3718 = vmatprep.mubr.f32.mxu1 %v9766_v0 }
 0x132   : > { %6589 = vmatmul.mubr.msk.f32.vlgmr.msra.gmra.mrb[56].mxu0 %vm2241_vm3, %v8151_v54  ;;  %6595 = vmatmul.mubr.msk.f32.vlgmr.msra.gmra.mrb[56].mxu1 %vm2241_vm3, %v8151_v54 }
 0x133   : > { %3635 = vmatprep.mubr.f32.mxu0 %v9766_v0  ;;  %3724 = vmatprep.mubr.f32.mxu1 %v9766_v0 }
 0x136   : > { %6590 = vmatmul.mubr.msk.f32.gmra.mrb[58].mxu0 %vm2241_vm3, %v8162_v7  ;;  %6596 = vmatmul.mubr.msk.f32.gmra.mrb[58].mxu1 %vm2241_vm3, %v8162_v7 }
 0x137   : > { %3641 = vmatprep.mubr.f32.mxu0 %v9766_v0  ;;  %3730 = vmatprep.mubr.f32.mxu1 %v9766_v0 }
 0x13a   : > { %6591 = vmatmul.mubr.msk.f32.gmra.mrb[60].mxu0 %vm2241_vm3, %v8178_v15  ;;  %6597 = vmatmul.mubr.msk.f32.gmra.mrb[60].mxu1 %vm2241_vm3, %v8178_v15 }
 0x13b   : > { %3647 = vmatprep.mubr.f32.mxu0 %v9766_v0  ;;  %3736 = vmatprep.mubr.f32.mxu1 %v9766_v0 }
 0x13e   : > { %6592 = vmatmul.mubr.msk.f32.gmra.mrb[62].mxu0 %vm2241_vm3, %v8189_v17  ;;  %6598 = vmatmul.mubr.msk.f32.gmra.mrb[62].mxu1 %vm2241_vm3, %v8189_v17 }
 0x13f   : > { %5012 = vmatprep.mubr.f32.mxu0 %v9766_v0  ;;  %5083 = vmatprep.mubr.f32.mxu1 %v9766_v0 }
 0x195   : > { %v2385_v47 = vpop.f32.mrb[0].mxu0  ;;  %v2474_v48 = vpop.f32.mrb[0].mxu1 }
 0x196   : > { %v8404_v49 = vadd.f32 %v8401_v46, %v2385_v47  ;;  %v8407_v50 = vadd.f32 %v8401_v46, %v2474_v48  ;;  %v2387_v51 = vpop.f32.mrb[1].mxu0  ;;  %v2476_v52 = vpop.f32.mrb[1].mxu1 }
 0x197   : > { %v8410_v53 = vadd.f32 %v8401_v46, %v2387_v51  ;;  %v8413_v55 = vadd.f32 %v8401_v46, %v2476_v52 }
 0x198   : > { %v6599_v57 = vmul.f32 -1.442695, %v8404_v49  ;;  %v6601_v58 = vmul.f32 -1.442695, %v8407_v50 }
 0x199   : > { %v6600_v60 = vmul.f32 -1.442695, %v8410_v53  ;;  %v6602_v61 = vmul.f32 -1.442695, %v8413_v55  ;;  %v2391_v62 = vpop.f32.mrb[2].mxu0  ;;  %v2480_v63 = vpop.f32.mrb[2].mxu1 }
 0x19a   : > { %7066 = vpow2.f32 %v6599_v57  ;;  %v8424_v1 = vadd.f32 %v8415_v56, %v2391_v62  ;;  %v8427_v2 = vadd.f32 %v8415_v56, %v2480_v63  ;;  %v2393_v4 = vpop.f32.mrb[3].mxu0  ;;  %v2482_v34 = vpop.f32.mrb[3].mxu1 }
 0x19b   : > { %7068 = vpow2.f32 %v6601_v58  ;;  %v8430_v5 = vadd.f32 %v8415_v56, %v2393_v4  ;;  %v8433_v8 = vadd.f32 %v8415_v56, %v2482_v34 }
 0x19c   : > { %7070 = vpow2.f32 %v6600_v60  ;;  %v6631_v9 = vmul.f32 -1.442695, %v8424_v1  ;;  %v6633_v39 = vmul.f32 -1.442695, %v8427_v2 }
 0x19d   : > { %7072 = vpow2.f32 %v6602_v61  ;;  %v6632_v10 = vmul.f32 -1.442695, %v8430_v5  ;;  %v6634_v11 = vmul.f32 -1.442695, %v8433_v8  ;;  %v2397_v54 = vpop.f32.mrb[4].mxu0  ;;  %v2486_v12 = vpop.f32.mrb[4].mxu1 }
 0x19e   : > { %7074 = vpow2.f32 %v6631_v9  ;;  %v8440_v13 = vadd.f32 %v8419_v59, %v2397_v54  ;;  %v8443_v7 = vadd.f32 %v8419_v59, %v2486_v12  ;;  %v2399_v14 = vpop.f32.mrb[5].mxu0  ;;  %v2488_v15 = vpop.f32.mrb[5].mxu1 }
 0x19f   : > { %7076 = vpow2.f32 %v6633_v39  ;;  %v8446_v16 = vadd.f32 %v8419_v59, %v2399_v14  ;;  %v8449_v17 = vadd.f32 %v8419_v59, %v2488_v15 }
 0x1a0   : > { %7078 = vpow2.f32 %v6632_v10  ;;  %v6663_v19 = vmul.f32 -1.442695, %v8440_v13  ;;  %v6665_v20 = vmul.f32 -1.442695, %v8443_v7 }
 0x1a1   : > { %7080 = vpow2.f32 %v6634_v11  ;;  %v6664_v21 = vmul.f32 -1.442695, %v8446_v16  ;;  %v6666_v22 = vmul.f32 -1.442695, %v8449_v17  ;;  %v2403_v23 = vpop.f32.mrb[6].mxu0  ;;  %v2492_v24 = vpop.f32.mrb[6].mxu1 }
 0x1a2   : > { %7082 = vpow2.f32 %v6663_v19  ;;  %v8458_v25 = vadd.f32 %v8451_v18, %v2403_v23  ;;  %v2405_v26 = vpop.f32.mrb[7].mxu0  ;;  %v2494_v27 = vpop.f32.mrb[7].mxu1  ;;  %v8462_v62 = vadd.f32 %v8451_v18, %v2492_v24 }
 0x1a3   : > { %7084 = vpow2.f32 %v6665_v20  ;;  %v8465_v34 = vadd.f32 %v8451_v18, %v2405_v26  ;;  %v8468_v11 = vadd.f32 %v8451_v18, %v2494_v27 }
 0x1a4   : > { %v7067_v28 = vpop.eup %7066  ;;  %7086 = vpow2.f32 %v6664_v21  ;;  %v6695_v29 = vmul.f32 -1.442695, %v8458_v25  ;;  %v6697_v23 = vmul.f32 -1.442695, %v8462_v62 }
 0x1a5   : > { %v7069_v30 = vpop.eup %7068  ;;  %v4279_v31 = vadd.f32 1.0, %v7067_v28  ;;  %7088 = vpow2.f32 %v6666_v22  ;;  %v2563_v32 = vpop.f32.mrb[8].mxu0  ;;  %v6696_v28 = vmul.f32 -1.442695, %v8465_v34 }
 0x1a6   : > { %v7071_v33 = vpop.eup %7070  ;;  %v4281_v35 = vadd.f32 1.0, %v7069_v30  ;;  %7090 = vpow2.f32 %v6695_v29  ;;  %v2652_v36 = vpop.f32.mrb[8].mxu1  ;;  %v8471_v19 = vadd.f32 %v8401_v46, %v2563_v32  ;;  %v6698_v32 = vmul.f32 -1.442695, %v8468_v11 }
 0x1a7   : > { %v2565_v3 = vpop.f32.mrb[9].mxu0  ;;  %v7073_v6 = vpop.eup %7072  ;;  %7092 = vrcp.f32 %v4279_v31  ;;  %v4280_v37 = vadd.f32 1.0, %v7071_v33  ;;  %v8475_v24 = vadd.f32 %v8401_v46, %v2652_v36 }
 0x1a8   : > { %v2654_v38 = vpop.f32.mrb[9].mxu1  ;;  %v7075_v40 = vpop.eup %7074  ;;  %7094 = vrcp.f32 %v4281_v35  ;;  %v4282_v41 = vadd.f32 1.0, %v7073_v6  ;;  %9793 = vst [vmem:[#allocation8_spill] sm:$0xff] %v8471_v19  ;;  %v8481_v29 = vadd.f32 %v8401_v46, %v2565_v3 }
 0x1a9   : > { %v7077_v42 = vpop.eup %7076  ;;  %7096 = vrcp.f32 %v4280_v37  ;;  %v4311_v43 = vadd.f32 1.0, %v7075_v40  ;;  %v2569_v44 = vpop.f32.mrb[10].mxu0  ;;  %9794 = vst [vmem:[#allocation9_spill] sm:$0xff] %v8475_v24  ;;  %v8489_v33 = vadd.f32 %v8401_v46, %v2654_v38  ;;  %v6603_v37 = vmul.f32 -1.442695, %v8471_v19 }
 0x1aa   : > { %v7079_v45 = vpop.eup %7078  ;;  %7098 = vrcp.f32 %v4282_v41  ;;  %v4313_v47 = vadd.f32 1.0, %v7077_v42  ;;  %v2658_v48 = vpop.f32.mrb[10].mxu1  ;;  %v8497_v3 = vadd.f32 %v8415_v56, %v2569_v44  ;;  %v6605_v42 = vmul.f32 -1.442695, %v8475_v24 }
 0x1ab   : > { %v2571_v51 = vpop.f32.mrb[11].mxu0  ;;  %v7081_v52 = vpop.eup %7080  ;;  %7100 = vrcp.f32 %v4311_v43  ;;  %v4312_v57 = vadd.f32 1.0, %v7079_v45  ;;  %9795 = vst [vmem:[#allocation10_spill] sm:$0xff] %v8489_v33  ;;  %v8503_v38 = vadd.f32 %v8415_v56, %v2658_v48  ;;  %v6604_v45 = vmul.f32 -1.442695, %v8481_v29 }
 0x1ac   : > { %v2660_v58 = vpop.f32.mrb[11].mxu1  ;;  %v7083_v60 = vpop.eup %7082  ;;  %7102 = vrcp.f32 %v4313_v47  ;;  %v4314_v61 = vadd.f32 1.0, %v7081_v52  ;;  %9796 = vst [vmem:[#allocation11_spill] sm:$0xff] %v8497_v3  ;;  %v8509_v47 = vadd.f32 %v8415_v56, %v2571_v51  ;;  %v6635_v51 = vmul.f32 -1.442695, %v8497_v3 }
 0x1ad   : > { %v7085_v63 = vpop.eup %7084  ;;  %7104 = vrcp.f32 %v4312_v57  ;;  %v4343_v4 = vadd.f32 1.0, %v7083_v60  ;;  %v2575_v9 = vpop.f32.mrb[12].mxu0  ;;  %9797 = vst [vmem:[#allocation12_spill] sm:$0xff] %v8503_v38  ;;  %v6606_v60 = vmul.f32 -1.442695, %v8489_v33  ;;  %v8519_v48 = vadd.f32 %v8415_v56, %v2660_v58 }
 0x1ae   : > { %v7087_v39 = vpop.eup %7086  ;;  %7106 = vrcp.f32 %v4314_v61  ;;  %v4345_v10 = vadd.f32 1.0, %v7085_v63  ;;  %v2664_v54 = vpop.f32.mrb[12].mxu1 }
 0x1af   : > { %v2577_v12 = vpop.f32.mrb[13].mxu0  ;;  %v7089_v14 = vpop.eup %7088  ;;  %7108 = vrcp.f32 %v4343_v4  ;;  %v4344_v15 = vadd.f32 1.0, %v7087_v39  ;;  %9798 = vst [vmem:[#allocation13_spill] sm:$0xff] %v8519_v48  ;;  %v8527_v39 = vadd.f32 %v8419_v59, %v2575_v9 }
 0x1b0   : > { %v2666_v20 = vpop.f32.mrb[13].mxu1  ;;  %v7091_v21 = vpop.eup %7090  ;;  %7110 = vrcp.f32 %v4345_v10  ;;  %v4346_v22 = vadd.f32 1.0, %v7089_v14  ;;  %v8530_v10 = vadd.f32 %v8419_v59, %v2664_v54  ;;  %v8534_v58 = vadd.f32 %v8419_v59, %v2577_v12 }
 0x1b1   : > { %v8477_v26 = vpop.eup %7092  ;;  %7112 = vrcp.f32 %v4344_v15  ;;  %v4375_v27 = vadd.f32 1.0, %v7091_v21  ;;  %v8483_v30 = vpop.f32.mrb[14].mxu0  ;;  %9799 = vst [vmem:[#allocation14_spill] sm:$0xff] %v8527_v39  ;;  %v6637_v15 = vmul.f32 -1.442695, %v8503_v38 }
 0x1b2   : > { %v8485_v31 = vpop.eup %7094  ;;  %7114 = vrcp.f32 %v4346_v22  ;;  %v8491_v35 = vpop.f32.mrb[14].mxu1  ;;  %9800 = vst [vmem:[#allocation15_spill] sm:$0xff] %v8530_v10  ;;  %9801 = vst [vmem:[#allocation16_spill] sm:$0xff] %v8534_v58  ;;  %v6636_v22 = vmul.f32 -1.442695, %v8509_v47 }
 0x1b3   : > { %v8493_v36 = vpop.f32.mrb[15].mxu0  ;;  %v7097_v6 = vpop.eup %7096  ;;  %7116 = vrcp.f32 %v4375_v27 }
 0x1b4   : > { %v8499_v40 = vpop.f32.mrb[15].mxu1  ;;  %v7099_v41 = vpop.eup %7098  ;;  %7118 = vpow2.f32 %v6697_v23  ;;  %v8540_v23 = vadd.f32 %v8419_v59, %v2666_v20  ;;  %v6669_v20 = vmul.f32 -1.442695, %v8530_v10  ;;  %v4664_v0 = vmul.f32 %v7097_v6, %v8410_v53 }
 0x1b5   : > { %v8505_v43 = vpop.eup %7100  ;;  %7120 = vpow2.f32 %v6696_v28  ;;  %v8511_v52 = vpop.f32.mrb[16].mxu0  ;;  %v6638_v28 = vmul.f32 -1.442695, %v8519_v48  ;;  %v4666_v10 = vmul.f32 %v7099_v41, %v8413_v55 }
 0x1b6   : > { %v8513_v44 = vpop.f32.mrb[16].mxu1  ;;  %v8515_v57 = vpop.eup %7102  ;;  %7122 = vpow2.f32 %v6698_v32  ;;  %9802 = vst [vmem:[#allocation17_spill] sm:$0xff] %v8540_v23  ;;  %v8574_v53 = vmul.f32 -1.442695, %v8540_v23  ;;  %v8593_v23 = vadd.f32 %v8451_v18, %v8491_v35 }
 0x1b7   : > { %v8521_v61 = vpop.f32.mrb[17].mxu0  ;;  %v8523_v63 = vpop.f32.mrb[17].mxu1  ;;  %7124 = vpow2.f32 %v6603_v37 }
 0x1b8   : > { %v7105_v4 = vpop.eup %7104  ;;  %7126 = vpow2.f32 %v6605_v42  ;;  %v6667_v42 = vmul.f32 -1.442695, %v8527_v39  ;;  %v8564_v3 = vpop.permute.xlu0 %4797  ;;  %9805 = vst [vmem:[#allocation20_spill] sm:$0xff] %v8593_v23 }
 0x1b9   : > { %v7107_v14 = vpop.eup %7106  ;;  %7128 = vpow2.f32 %v6604_v45  ;;  %v8542_v9 = vpop.f32.mrb[18].mxu0  ;;  %v4696_v38 = vmul.f32 %v7105_v4, %v8430_v5  ;;  %v4818_v35 = vadd.f32 %v8564_v3, %v4666_v10 }
 0x1ba   : > { %v8536_v21 = vpop.eup %7108  ;;  %v8544_v27 = vpop.f32.mrb[18].mxu1  ;;  %7130 = vpow2.f32 %v6606_v60  ;;  %v8562_v60 = vmul.f32 -1.442695, %v8534_v58  ;;  %v4698_v39 = vmul.f32 %v7107_v14, %v8433_v8 }
 0x1bb   : > { %v8546_v54 = vpop.eup %7110  ;;  %v8549_v32 = vpop.f32.mrb[19].mxu0  ;;  %7132 = vpow2.f32 %v6635_v51  ;;  %v4663_v51 = vmul.f32 %v8477_v26, %v8404_v49  ;;  %v8585_v49 = vadd.f32 %v8451_v18, %v8483_v30  ;;  %v4816_v30 = vadd.f32 %v8564_v3, %v4664_v0 }
 0x1bc   : > { %v8551_v12 = vpop.f32.mrb[19].mxu1  ;;  %v8553_v37 = vpop.eup %7112  ;;  %7134 = vpow2.f32 %v6637_v15  ;;  %v4665_v15 = vmul.f32 %v8485_v31, %v8407_v50  ;;  %v8597_v50 = vadd.f32 %v8451_v18, %v8493_v36 }
 0x1bd   : > { %v8557_v45 = vpop.eup %7114  ;;  %v8566_v24 = vpop.permute.xlu1 %4802  ;;  %7136 = vpow2.f32 %v6636_v22  ;;  %9803 = vst [vmem:[#allocation18_spill] sm:$0xff] %v8585_v49  ;;  %v8616_v10 = vmul.f32 -1.442695, %v8585_v49 }
 0x1be   : > { %v8568_v19 = vpop.eup %7116  ;;  %v8576_v5 = vpop.f32.mrb[20].mxu0  ;;  %7138 = vpow2.f32 %v6638_v28  ;;  %v4848_v14 = vadd.f32 %v8566_v24, %v4696_v38  ;;  %v4850_v0 = vadd.f32 %v8566_v24, %v4698_v39 }
 0x1bf   : > { %v8578_v6 = vpop.f32.mrb[20].mxu1  ;;  %v7119_v4 = vpop.eup %7118  ;;  %7140 = vpow2.f32 %v6667_v42 }
 0x1c0   : > { %v8587_v55 = vpop.f32.mrb[21].mxu0  ;;  %v8589_v26 = vpop.f32.mrb[21].mxu1  ;;  %v4377_v22 = vadd.f32 1.0, %v7119_v4  ;;  %7142 = vpow2.f32 %v6669_v20  ;;  %v4695_v4 = vmul.f32 %v8505_v43, %v8424_v1  ;;  %v6750_v20 = vpack.c.bf16 %v4848_v14, %v4816_v30 }
 0x1c1   : > { %9804 = vst [vmem:[#allocation19_spill] sm:$0xff] %v8589_v26  ;;  %v7121_v41 = vpop.eup %7120  ;;  %v8604_v58 = vpop.f32.mrb[22].mxu0  ;;  %v4697_v1 = vmul.f32 %v8515_v57, %v8427_v2  ;;  %v6758_v39 = vpack.c.bf16 %v4850_v0, %v4818_v35  ;;  %v8627_v2 = vadd.f32 %v8401_v46, %v8511_v52  ;;  %v4817_v52 = vadd.f32 %v8564_v3, %v4665_v15 }
 0x1c2   : > { %v7123_v8 = vpop.eup %7122  ;;  %v4376_v31 = vadd.f32 1.0, %v7121_v41  ;;  %7144 = vrcp.f32 %v4377_v22  ;;  %v8606_v26 = vpop.f32.mrb[22].mxu1  ;;  %6751 = vmatprep.subr.bf16.mxu0 %v6750_v20  ;;  %v4847_v35 = vadd.f32 %v8566_v24, %v4695_v4 }
 0x1c3   : > { %v7125_v28 = vpop.eup %7124  ;;  %v4378_v42 = vadd.f32 1.0, %v7123_v8  ;;  %v8609_v48 = vpop.f32.mrb[23].mxu0  ;;  %6759 = vmatprep.subr.bf16.mxu1 %v6758_v39 }
 0x1c4   : > { %v7127_v36 = vpop.eup %7126  ;;  %7146 = vrcp.f32 %v4376_v31  ;;  %v4283_v41 = vadd.f32 1.0, %v7125_v28  ;;  %v8611_v38 = vpop.f32.mrb[23].mxu1  ;;  %v8620_v31 = vadd.f32 %v8451_v18, %v8499_v40  ;;  %v8623_v28 = vmul.f32 -1.442695, %v8593_v23 }
 0x1c5   : > { %v7129_v33 = vpop.eup %7128  ;;  %7148 = vrcp.f32 %v4378_v42  ;;  %v4285_v43 = vadd.f32 1.0, %v7127_v36  ;;  %v8629_v57 = vpop.f32.mrb[24].mxu0  ;;  %v4815_v40 = vadd.f32 %v8564_v3, %v4663_v51  ;;  %v8643_v51 = vadd.f32 %v8401_v46, %v8513_v44 }
 0x1c6   : > { %v7131_v22 = vpop.eup %7130  ;;  %7150 = vrcp.f32 %v4283_v41  ;;  %v4284_v8 = vadd.f32 1.0, %v7129_v33  ;;  %v8633_v36 = vpop.f32.mrb[24].mxu1 }
 0x1c7   : > { %v7133_v30 = vpop.eup %7132  ;;  %7152 = vrcp.f32 %v4285_v43  ;;  %v4286_v14 = vadd.f32 1.0, %v7131_v22  ;;  %v8635_v41 = vpop.f32.mrb[25].mxu0  ;;  %v4849_v43 = vadd.f32 %v8566_v24, %v4697_v1  ;;  %v6752_v4 = vpack.c.bf16 %v4847_v35, %v4815_v40 }
 0x1c8   : > { %v7135_v42 = vpop.eup %7134  ;;  %7154 = vrcp.f32 %v4284_v8  ;;  %v4315_v33 = vadd.f32 1.0, %v7133_v30  ;;  %v8639_v22 = vpop.f32.mrb[25].mxu1 }
 0x1c9   : > { %v7137_v20 = vpop.eup %7136  ;;  %7156 = vrcp.f32 %v4286_v14  ;;  %v4317_v0 = vadd.f32 1.0, %v7135_v42  ;;  %v8647_v14 = vadd.f32 %v8401_v46, %v8521_v61  ;;  %v6760_v15 = vpack.c.bf16 %v4849_v43, %v4817_v52  ;;  %v8649_v42 = vpop.f32.mrb[26].mxu0  ;;  %6753 = vmatpush1.bf16.msra.mxu0 %v6752_v4 }
 0x1ca   : > { %v7139_v8 = vpop.eup %7138  ;;  %7158 = vrcp.f32 %v4315_v33  ;;  %v4316_v39 = vadd.f32 1.0, %v7137_v20  ;;  %v8651_v1 = vpop.f32.mrb[26].mxu1  ;;  %v6700_v20 = vmul.f32 -1.442695, %v8597_v50  ;;  %v4728_v61 = vmul.f32 %v8553_v37, %v8446_v16 }
 0x1cb   : > { %v7141_v30 = vpop.eup %7140  ;;  %7160 = vrcp.f32 %v4317_v0  ;;  %v4318_v23 = vadd.f32 1.0, %v7139_v8  ;;  %v8654_v44 = vpop.f32.mrb[27].mxu0  ;;  %v6702_v52 = vmul.f32 -1.442695, %v8620_v31  ;;  %6761 = vmatpush1.bf16.msra.mxu1 %v6760_v15  ;;  %v4730_v8 = vmul.f32 %v8557_v45, %v8449_v17 }
 0x1cc   : > { %v7143_v49 = vpop.eup %7142  ;;  %7162 = vrcp.f32 %v4316_v39  ;;  %v4347_v33 = vadd.f32 1.0, %v7141_v30  ;;  %v8656_v40 = vpop.f32.mrb[27].mxu1  ;;  %v6607_v39 = vmul.f32 -1.442695, %v8627_v2  ;;  %v8666_v4 = vadd.f32 %v8401_v46, %v8523_v63 }
 0x1cd   : > { %9806 = vst [vmem:[#allocation21_spill] sm:$0xff] %v8656_v40  ;;  %v7145_v35 = vpop.eup %7144  ;;  %7164 = vrcp.f32 %v4318_v23  ;;  %v4349_v0 = vadd.f32 1.0, %v7143_v49  ;;  %v8668_v30 = vpop.permute.xlu0 %4807  ;;  %v6609_v37 = vmul.f32 -1.442695, %v8643_v51  ;;  %v6608_v49 = vmul.f32 -1.442695, %v8647_v14 }
 0x1ce   : > { %v7147_v43 = vpop.eup %7146  ;;  %7166 = vrcp.f32 %v4347_v33  ;;  %v8670_v40 = vpop.permute.xlu1 %4812  ;;  %v4727_v63 = vmul.f32 %v8536_v21, %v8440_v13  ;;  %v4880_v13 = vadd.f32 %v8668_v30, %v4728_v61 }
 0x1cf   : > { %v7149_v16 = vpop.eup %7148  ;;  %v4760_v23 = vmul.f32 %v7147_v43, %v8465_v34  ;;  %7168 = vrcp.f32 %v4349_v0  ;;  %v8675_v17 = vpop.f32.mrb[28].mxu0  ;;  %v8687_v34 = vadd.f32 %v8415_v56, %v8542_v9  ;;  %v4759_v9 = vmul.f32 %v8568_v19, %v8458_v25 }
 0x1d0   : > { %9807 = vst [vmem:[#allocation22_spill] sm:$0xff] %v8675_v17  ;;  %v8677_v45 = vpop.f32.mrb[28].mxu1  ;;  %v8679_v15 = vpop.eup %7150  ;;  %v4762_v33 = vmul.f32 %v7149_v16, %v8468_v11  ;;  %7170 = vpow2.f32 %v8562_v60  ;;  %v4882_v60 = vadd.f32 %v8668_v30, %v4730_v8  ;;  %v6610_v19 = vmul.f32 -1.442695, %v8666_v4 }
 0x1d1   : > { %9808 = vst [vmem:[#allocation23_spill] sm:$0xff] %v8677_v45  ;;  %v8689_v0 = vpop.f32.mrb[29].mxu0  ;;  %v8691_v43 = vpop.f32.mrb[29].mxu1  ;;  %v4729_v45 = vmul.f32 %v8546_v54, %v8443_v7  ;;  %7172 = vpow2.f32 %v8574_v53  ;;  %v4912_v11 = vadd.f32 %v8670_v40, %v4760_v23  ;;  %v8709_v7 = vadd.f32 %v8415_v56, %v8544_v27 }
 0x1d2   : > { %9809 = vst [vmem:[#allocation24_spill] sm:$0xff] %v8689_v0  ;;  %9810 = vst [vmem:[#allocation25_spill] sm:$0xff] %v8691_v43  ;;  %v8693_v17 = vpop.eup %7152  ;;  %7174 = vpow2.f32 %v8616_v10  ;;  %v4914_v16 = vadd.f32 %v8670_v40, %v4762_v33  ;;  %v4761_v0 = vmul.f32 %v7145_v35, %v8462_v62  ;;  %v8711_v53 = vpop.f32.mrb[30].mxu0  ;;  %v8720_v10 = vadd.f32 %v8415_v56, %v8549_v32 }
 0x1d3   : > { %v7155_v21 = vpop.eup %7154  ;;  %7176 = vpow2.f32 %v8623_v28  ;;  %v6754_v54 = vpack.c.bf16 %v4912_v11, %v4880_v13  ;;  %v8713_v61 = vpop.f32.mrb[30].mxu1  ;;  %v6639_v8 = vmul.f32 -1.442695, %v8687_v34  ;;  %v8731_v23 = vadd.f32 %v8415_v56, %v8551_v12 }
 0x1d4   : > { %v7157_v43 = vpop.eup %7156  ;;  %9811 = vst [vmem:[#allocation26_spill] sm:$0xff] %v8713_v61  ;;  %7178 = vpow2.f32 %v6700_v20  ;;  %v6762_v62 = vpack.c.bf16 %v4914_v16, %v4882_v60  ;;  %v8722_v28 = vpop.f32.mrb[31].mxu0  ;;  %v8735_v20 = vadd.f32 %v8419_v59, %v8576_v5  ;;  %v8739_v33 = vadd.f32 %v8419_v59, %v8578_v6 }
 0x1d5   : > { %v8715_v25 = vpop.eup %7158  ;;  %9812 = vst [vmem:[#allocation27_spill] sm:$0xff] %v8722_v28  ;;  %v8724_v35 = vpop.f32.mrb[31].mxu1  ;;  %7180 = vpow2.f32 %v6702_v52  ;;  %9814 = vst [vmem:[#allocation29_spill] sm:$0xff] %v8731_v23  ;;  %6755 = vmatprep.subr.bf16.mxu0 %v6754_v54  ;;  %v4879_v52 = vadd.f32 %v8668_v30, %v4727_v63  ;;  %v4911_v13 = vadd.f32 %v8670_v40, %v4759_v9  ;;  %v6641_v12 = vmul.f32 -1.442695, %v8709_v7 }
 0x1d6   : > { %9813 = vst [vmem:[#allocation28_spill] sm:$0xff] %v8724_v35  ;;  %v8726_v27 = vpop.eup %7160  ;;  %9815 = vst [vmem:[#allocation30_spill] sm:$0xff] %v8735_v20  ;;  %7182 = vpow2.f32 %v6607_v39  ;;  %6763 = vmatprep.subr.bf16.mxu1 %v6762_v62  ;;  %v4881_v60 = vadd.f32 %v8668_v30, %v4729_v45  ;;  %v4913_v5 = vadd.f32 %v8670_v40, %v4761_v0  ;;  %v8746_v16 = vpop.f32.mrb[32].mxu0  ;;  %v6640_v6 = vmul.f32 -1.442695, %v8720_v10 }
 0x1d7   : > { %v7163_v32 = vpop.eup %7162  ;;  %9816 = vst [vmem:[#allocation31_spill] sm:$0xff] %v8739_v33  ;;  %7184 = vpow2.f32 %v6609_v37  ;;  %9817 = vst [vmem:[#allocation32_spill] sm:$0xff] %v8746_v16  ;;  %v8748_v39 = vpop.f32.mrb[32].mxu1  ;;  %v6756_v63 = vpack.c.bf16 %v4911_v13, %v4879_v52  ;;  %v8760_v45 = vmul.f32 -1.442695, %v8731_v23  ;;  %v8770_v52 = vadd.f32 %v8419_v59, %v8587_v55 }
 0x1d8   : > { %v7165_v11 = vpop.eup %7164  ;;  %9818 = vst [vmem:[#allocation33_spill] sm:$0xff] %v8748_v39  ;;  %7186 = vpow2.f32 %v6608_v49  ;;  %v8753_v62 = vpop.f32.mrb[33].mxu0  ;;  %v6764_v0 = vpack.c.bf16 %v4913_v5, %v4881_v60  ;;  %v8763_v39 = vmul.f32 -1.442695, %v8735_v20  ;;  %v8766_v49 = vmul.f32 -1.442695, %v8739_v33 }
 0x1d9   : > { %v8750_v54 = vpop.eup %7166  ;;  %9819 = vst [vmem:[#allocation34_spill] sm:$0xff] %v8753_v62  ;;  %v8755_v9 = vpop.f32.mrb[33].mxu1  ;;  %7188 = vpow2.f32 %v6610_v19  ;;  %6757 = vmatpush1.bf16.msra.mxu0 %v6756_v63  ;;  %v8775_v19 = vld [vmem:[%s9762_s9] sm:$0xf]  ;;  %v4668_v60 = vmul.f32 %v7155_v21, %v8481_v29  ;;  %v9821_v33 = vld [vmem:[#allocation10_spill] sm:$0xff]  ;;  %v9822_v20 = vld [vmem:[#allocation13_spill] sm:$0xff] }
 0x1da   : > { %9820 = vst [vmem:[#allocation35_spill] sm:$0xff] %v8755_v9  ;;  %v8757_v37 = vpop.eup %7168  ;;  %7190 = vpow2.f32 %v6639_v8  ;;  %v4700_v8 = vmul.f32 %v7163_v32, %v8509_v47  ;;  %6765 = vmatpush1.bf16.msra.mxu1 %v6764_v0  ;;  %v8779_v9 = vpop.f32.mrb[34].mxu0  ;;  %v4670_v63 = vmul.f32 %v7157_v43, %v9821_v33  ;;  %v4702_v35 = vmul.f32 %v7165_v11, %v9822_v20  ;;  %v9825_v47 = vld [vmem:[#allocation8_spill] sm:$0xff]  ;;  %v9827_v20 = vld [vmem:[#allocation9_spill] sm:$0xff]  ;;  %v9828_v11 = vld [vmem:[#allocation11_spill] sm:$0xff] }
 0x1db   : > { %v7171_v16 = vpop.eup %7170  ;;  %7192 = vpow2.f32 %v6641_v12  ;;  %v8781_v62 = vpop.f32.mrb[34].mxu1  ;;  %v4667_v21 = vmul.f32 %v8679_v15, %v9825_v47  ;;  %v9826_v12 = vld [vmem:[#allocation19_spill] sm:$0xff]  ;;  %v4669_v33 = vmul.f32 %v8693_v17, %v9827_v20  ;;  %v9829_v15 = vmov 0.0  }
 0x1dc   : > { %v7173_v13 = vpop.eup %7172  ;;  %v4348_v5 = vadd.f32 1.0, %v7171_v16  ;;  %7194 = vpow2.f32 %v6640_v6  ;;  %v8785_v23 = vpop.f32.mrb[35].mxu0  ;;  %v8793_v16 = vadd.f32 %v8419_v59, %v9826_v12  ;;  %6727 = vmatmul.mubr.msk.f32.vlgmr.msra.gmra.mrb[64].mxu0 %vm4944_vm4, %v8775_v19  ;;  %v4699_v6 = vmul.f32 %v8715_v25, %v9828_v11 }
 0x1dd   : > { %v7175_v55 = vpop.eup %7174  ;;  %v4350_v28 = vadd.f32 1.0, %v7173_v13  ;;  %9823 = vst [vmem:[#allocation10_spill] sm:$0xff] %v8785_v23  ;;  %v8787_v61 = vpop.f32.mrb[35].mxu1  ;;  %6728 = vmatmul.mubr.msk.f32.vlgmr.msra.gmra.mrb[64].mxu1 %vm4944_vm4, %v8775_v19  ;;  %5154 = vmatprep.mubr.f32.mxu0 %v9829_v15  ;;  %v4852_v47 = vadd.f32 %v8566_v24, %v4700_v8  ;;  %v4854_v20 = vadd.f32 %v8566_v24, %v4702_v35 }
 0x1de   : > { %9824 = vst [vmem:[#allocation13_spill] sm:$0xff] %v8787_v61  ;;  %v7177_v29 = vpop.eup %7176  ;;  %7196 = vrcp.f32 %v4348_v5  ;;  %v4379_v32 = vadd.f32 1.0, %v7175_v55  ;;  %v4820_v55 = vadd.f32 %v8564_v3, %v4668_v60  ;;  %v8806_v12 = vpop.f32.mrb[36].mxu0  ;;  %5225 = vmatprep.mubr.f32.mxu1 %v9829_v15 }
 0x1df   : > { %v7179_v43 = vpop.eup %7178  ;;  %7198 = vrcp.f32 %v4350_v28  ;;  %v4381_v0 = vadd.f32 1.0, %v7177_v29  ;;  %9830 = vst [vmem:[#allocation8_spill] sm:$0xff] %v8806_v12  ;;  %v8808_v17 = vpop.f32.mrb[36].mxu1  ;;  %v4822_v29 = vadd.f32 %v8564_v3, %v4670_v63 }
 0x1e0   : > { %v7181_v13 = vpop.eup %7180  ;;  %7200 = vrcp.f32 %v4379_v32  ;;  %v4380_v5 = vadd.f32 1.0, %v7179_v43  ;;  %9831 = vst [vmem:[#allocation19_spill] sm:$0xff] %v8808_v17  ;;  %v8813_v11 = vpop.f32.mrb[37].mxu0  ;;  %v9833_v43 = vld [vmem:[#allocation12_spill] sm:$0xff]  ;;  %v6766_v17 = vpack.c.bf16 %v4852_v47, %v4820_v55 }
 0x1e1   : > { %v7183_v25 = vpop.eup %7182  ;;  %7202 = vrcp.f32 %v4381_v0  ;;  %v4382_v28 = vadd.f32 1.0, %v7181_v13  ;;  %v8815_v32 = vpop.f32.mrb[37].mxu1  ;;  %v4701_v8 = vmul.f32 %v8726_v27, %v9833_v43  ;;  %v8820_v0 = vmul.f32 -1.442695, %v8770_v52 }
 0x1e2   : > { %9832 = vst [vmem:[#allocation9_spill] sm:$0xff] %v8815_v32  ;;  %v7185_v60 = vpop.eup %7184  ;;  %7204 = vrcp.f32 %v4380_v5  ;;  %v4287_v12 = vadd.f32 1.0, %v7183_v25  ;;  %v6774_v63 = vpack.c.bf16 %v4854_v20, %v4822_v29  ;;  %v8824_v32 = vadd.f32 %v8451_v18, %v8604_v58  ;;  %6767 = vmatprep.subr.bf16.mxu0 %v6766_v17  ;;  %v8830_v5 = vpop.f32.mrb[38].mxu0 }
 0x1e3   : > { %v7187_v61 = vpop.eup %7186  ;;  %7206 = vrcp.f32 %v4382_v28  ;;  %v4289_v23 = vadd.f32 1.0, %v7185_v60  ;;  %v8828_v27 = vadd.f32 %v8451_v18, %v8606_v26  ;;  %9834 = vst [vmem:[#allocation11_spill] sm:$0xff] %v8830_v5  ;;  %v8832_v55 = vpop.f32.mrb[38].mxu1  ;;  %v4821_v17 = vadd.f32 %v8564_v3, %v4669_v33 }
 0x1e4   : > { %v7189_v13 = vpop.eup %7188  ;;  %7208 = vrcp.f32 %v4287_v12  ;;  %v4288_v35 = vadd.f32 1.0, %v7187_v61  ;;  %9835 = vst [vmem:[#allocation12_spill] sm:$0xff] %v8832_v55  ;;  %6775 = vmatprep.subr.bf16.mxu1 %v6774_v63  ;;  %v4819_v12 = vadd.f32 %v8564_v3, %v4667_v21  ;;  %v4851_v61 = vadd.f32 %v8566_v24, %v4699_v6  ;;  %v8836_v28 = vpop.f32.mrb[39].mxu0 }
 0x1e5   : > { %v7191_v47 = vpop.eup %7190  ;;  %7210 = vrcp.f32 %v4289_v23  ;;  %v4290_v25 = vadd.f32 1.0, %v7189_v13  ;;  %9836 = vst [vmem:[#allocation36_spill] sm:$0xff] %v8836_v28  ;;  %v8838_v58 = vpop.f32.mrb[39].mxu1  ;;  %v4853_v20 = vadd.f32 %v8566_v24, %v4701_v8  ;;  %v8844_v43 = vadd.f32 %v8451_v18, %v8609_v48 }
 0x1e6   : > { %9837 = vst [vmem:[#allocation37_spill] sm:$0xff] %v8838_v58  ;;  %v7193_v29 = vpop.eup %7192  ;;  %7212 = vrcp.f32 %v4288_v35  ;;  %v4319_v26 = vadd.f32 1.0, %v7191_v47  ;;  %v6768_v21 = vpack.c.bf16 %v4851_v61, %v4819_v12  ;;  %v8848_v13 = vadd.f32 %v8451_v18, %v8611_v38  ;;  %v8850_v47 = vpop.f32.mrb[40].mxu0 }
 0x1e7   : > { %v7195_v60 = vpop.eup %7194  ;;  %7214 = vrcp.f32 %v4290_v25  ;;  %v4321_v23 = vadd.f32 1.0, %v7193_v29  ;;  %v6776_v35 = vpack.c.bf16 %v4853_v20, %v4821_v17  ;;  %9838 = vst [vmem:[#allocation38_spill] sm:$0xff] %v8850_v47  ;;  %v8852_v33 = vpop.f32.mrb[40].mxu1  ;;  %v6674_v25 = vmul.f32 -1.442695, %v8793_v16  ;;  %v9843_v20 = vld [vmem:[#allocation16_spill] sm:$0xff] }
 0x1e8   : > { %v7197_v6 = vpop.eup %7196  ;;  %7216 = vrcp.f32 %v4319_v26  ;;  %v4320_v63 = vadd.f32 1.0, %v7195_v60  ;;  %9839 = vst [vmem:[#allocation39_spill] sm:$0xff] %v8852_v33  ;;  %v8857_v48 = vadd.f32 %v8401_v46, %v8629_v57  ;;  %v8861_v12 = vadd.f32 %v8401_v46, %v8633_v36  ;;  %6769 = vmatpush1.bf16.msra.mxu0 %v6768_v21  ;;  %v8863_v38 = vpop.f32.mrb[41].mxu0 }
 0x1e9   : > { %v7199_v8 = vpop.eup %7198  ;;  %7218 = vrcp.f32 %v4321_v23  ;;  %9840 = vst [vmem:[#allocation40_spill] sm:$0xff] %v8863_v38  ;;  %v8865_v61 = vpop.f32.mrb[41].mxu1  ;;  %v6703_v26 = vmul.f32 -1.442695, %v8824_v32  ;;  %v8870_v17 = vadd.f32 %v8401_v46, %v8635_v41  ;;  %v8874_v57 = vadd.f32 %v8401_v46, %v8639_v22  ;;  %6777 = vmatpush1.bf16.msra.mxu1 %v6776_v35  ;;  %v9844_v23 = vld [vmem:[#allocation17_spill] sm:$0xff] }
 0x1ea   : > { %9841 = vst [vmem:[#allocation41_spill] sm:$0xff] %v8865_v61  ;;  %v7201_v29 = vpop.eup %7200  ;;  %7220 = vrcp.f32 %v4320_v63  ;;  %v4732_v60 = vmul.f32 %v7197_v6, %v9843_v20  ;;  %v4734_v21 = vmul.f32 %v7199_v8, %v9844_v23  ;;  %v6705_v63 = vmul.f32 -1.442695, %v8828_v27  ;;  %v8883_v33 = vpop.f32.mrb[42].mxu0 }
 0x1eb   : > { %9842 = vst [vmem:[#allocation42_spill] sm:$0xff] %v8874_v57  ;;  %v7203_v36 = vpop.eup %7202  ;;  %7222 = vpow2.f32 %v8760_v45  ;;  %v6704_v41 = vmul.f32 -1.442695, %v8844_v43  ;;  %v6706_v38 = vmul.f32 -1.442695, %v8848_v13  ;;  %9845 = vst [vmem:[#allocation16_spill] sm:$0xff] %v8883_v33 }
 0x1ec   : > { %v7205_v61 = vpop.eup %7204  ;;  %7224 = vpow2.f32 %v8763_v39  ;;  %v8885_v22 = vpop.f32.mrb[42].mxu1  ;;  %v6611_v45 = vmul.f32 -1.442695, %v8857_v48  ;;  %v6613_v8 = vmul.f32 -1.442695, %v8861_v12  ;;  %v4886_v58 = vadd.f32 %v8668_v30, %v4734_v21 }
 0x1ed   : > { %9846 = vst [vmem:[#allocation17_spill] sm:$0xff] %v8885_v22  ;;  %v7207_v35 = vpop.eup %7206  ;;  %v4764_v6 = vmul.f32 %v7205_v61, %v8597_v50  ;;  %7226 = vpow2.f32 %v8766_v49  ;;  %v8891_v20 = vpop.f32.mrb[43].mxu0  ;;  %v6612_v22 = vmul.f32 -1.442695, %v8870_v17  ;;  %v6614_v33 = vmul.f32 -1.442695, %v8874_v57 }
 0x1ee   : > { %9847 = vst [vmem:[#allocation43_spill] sm:$0xff] %v8891_v20  ;;  %v8893_v39 = vpop.f32.mrb[43].mxu1  ;;  %v7209_v23 = vpop.eup %7208  ;;  %v4766_v47 = vmul.f32 %v7207_v35, %v8620_v31  ;;  %7228 = vpow2.f32 %v8820_v0  ;;  %v4884_v49 = vadd.f32 %v8668_v30, %v4732_v60 }
 0x1ef   : > { %9848 = vst [vmem:[#allocation44_spill] sm:$0xff] %v8893_v39  ;;  %v7211_v50 = vpop.eup %7210  ;;  %7230 = vpow2.f32 %v6674_v25  ;;  %v4916_v61 = vadd.f32 %v8670_v40, %v4764_v6  ;;  %v4671_v39 = vmul.f32 %v7209_v23, %v8627_v2  ;;  %v8905_v0 = vpop.f32.mrb[44].mxu0  ;;  %v9850_v25 = vld [vmem:[#allocation14_spill] sm:$0xff] }
 0x1f0   : > { %v7213_v20 = vpop.eup %7212  ;;  %v4673_v28 = vmul.f32 %v7211_v50, %v8643_v51  ;;  %7232 = vpow2.f32 %v6703_v26  ;;  %v4918_v31 = vadd.f32 %v8670_v40, %v4766_v47  ;;  %v8907_v35 = vpop.f32.mrb[44].mxu1  ;;  %v4731_v60 = vmul.f32 %v8750_v54, %v9850_v25  ;;  %v9851_v6 = vld [vmem:[#allocation18_spill] sm:$0xff]  ;;  %v9854_v50 = vld [vmem:[#allocation15_spill] sm:$0xff] }
 0x1f1   : > { %9849 = vst [vmem:[#allocation45_spill] sm:$0xff] %v8907_v35  ;;  %v8909_v55 = vpop.eup %7214  ;;  %v4763_v5 = vmul.f32 %v7201_v29, %v9851_v6  ;;  %7234 = vpow2.f32 %v6705_v63  ;;  %v6770_v21 = vpack.c.bf16 %v4916_v61, %v4884_v49  ;;  %v8914_v57 = vpop.f32.mrb[45].mxu0  ;;  %v8920_v47 = vadd.f32 %v8415_v56, %v8649_v42  ;;  %v9855_v63 = vld [vmem:[#allocation20_spill] sm:$0xff] }
 0x1f2   : > { %9852 = vst [vmem:[#allocation14_spill] sm:$0xff] %v8914_v57  ;;  %v8916_v2 = vpop.f32.mrb[45].mxu1  ;;  %v7217_v51 = vpop.eup %7216  ;;  %7236 = vpow2.f32 %v6704_v41  ;;  %v8924_v26 = vadd.f32 %v8415_v56, %v8651_v1  ;;  %v6778_v23 = vpack.c.bf16 %v4918_v31, %v4886_v58  ;;  %v4733_v29 = vmul.f32 %v8757_v37, %v9854_v50 }
 0x1f3   : > { %9853 = vst [vmem:[#allocation18_spill] sm:$0xff] %v8916_v2  ;;  %v7219_v54 = vpop.eup %7218  ;;  %v4765_v49 = vmul.f32 %v7203_v36, %v9855_v63  ;;  %v4703_v61 = vmul.f32 %v7217_v51, %v8687_v34  ;;  %7238 = vpow2.f32 %v6706_v38  ;;  %6771 = vmatprep.subr.bf16.mxu0 %v6770_v21  ;;  %v8931_v25 = vadd.f32 %v8564_v3, %v4671_v39  ;;  %v8937_v58 = vpop.f32.mrb[46].mxu0 }
 0x1f4   : > { %v7221_v41 = vpop.eup %7220  ;;  %v8934_v42 = vadd.f32 %v8564_v3, %v4673_v28  ;;  %v4705_v1 = vmul.f32 %v7219_v54, %v8709_v7  ;;  %7240 = vpow2.f32 %v6611_v45  ;;  %6779 = vmatprep.subr.bf16.mxu1 %v6778_v23  ;;  %9856 = vst [vmem:[#allocation15_spill] sm:$0xff] %v8937_v58  ;;  %v8939_v37 = vpop.f32.mrb[46].mxu1  ;;  %v4883_v38 = vadd.f32 %v8668_v30, %v4731_v60 }
 0x1f5   : > { %9857 = vst [vmem:[#allocation20_spill] sm:$0xff] %v8939_v37  ;;  %v7223_v36 = vpop.eup %7222  ;;  %v8942_v34 = vadd.f32 %v8566_v24, %v4703_v61  ;;  %7242 = vpow2.f32 %v6613_v8  ;;  %v4915_v39 = vadd.f32 %v8670_v40, %v4763_v5  ;;  %v8946_v31 = vpop.f32.mrb[47].mxu0  ;;  %v4704_v6 = vmul.f32 %v7221_v41, %v8720_v10 }
 0x1f6   : > { %9858 = vst [vmem:[#allocation46_spill] sm:$0xff] %v8946_v31  ;;  %v8948_v28 = vpop.f32.mrb[47].mxu1  ;;  %v7225_v7 = vpop.eup %7224  ;;  %v8951_v45 = vadd.f32 %v8566_v24, %v4705_v1  ;;  %v4322_v21 = vadd.f32 1.0, %v7223_v36  ;;  %7244 = vpow2.f32 %v6612_v22  ;;  %v4672_v23 = vmul.f32 %v7213_v20, %v8647_v14 }
 0x1f7   : > { %9859 = vst [vmem:[#allocation47_spill] sm:$0xff] %v8948_v28  ;;  %v7227_v51 = vpop.eup %7226  ;;  %v4351_v60 = vadd.f32 1.0, %v7225_v7  ;;  %7246 = vpow2.f32 %v6614_v33  ;;  %v6772_v63 = vpack.c.bf16 %v4915_v39, %v4883_v38  ;;  %v8959_v61 = vpop.f32.mrb[48].mxu0  ;;  %v4885_v14 = vadd.f32 %v8668_v30, %v4733_v29 }
 0x1f8   : > { %v7229_v5 = vpop.eup %7228  ;;  %7248 = vrcp.f32 %v4322_v21  ;;  %v4353_v50 = vadd.f32 1.0, %v7227_v51  ;;  %9860 = vst [vmem:[#allocation48_spill] sm:$0xff] %v8959_v61  ;;  %v8961_v10 = vpop.f32.mrb[48].mxu1  ;;  %v4917_v20 = vadd.f32 %v8670_v40, %v4765_v49  ;;  %v4856_v7 = vadd.f32 %v8566_v24, %v4704_v6  ;;  %v9864_v6 = vld [vmem:[#allocation21_spill] sm:$0xff] }
 0x1f9   : > { %9861 = vst [vmem:[#allocation49_spill] sm:$0xff] %v8961_v10  ;;  %v7231_v22 = vpop.eup %7230  ;;  %7250 = vrcp.f32 %v4351_v60  ;;  %v4352_v41 = vadd.f32 1.0, %v7229_v5  ;;  %v8965_v1 = vpop.f32.mrb[49].mxu0  ;;  %v8971_v39 = vmul.f32 -1.442695, %v8920_v47  ;;  %6773 = vmatpush1.bf16.msra.mxu0 %v6772_v63  ;;  %v8975_v29 = vadd.f32 %v8415_v56, %v8654_v44 }
 0x1fa   : > { %9862 = vst [vmem:[#allocation50_spill] sm:$0xff] %v8965_v1  ;;  %v8967_v33 = vpop.f32.mrb[49].mxu1  ;;  %v7233_v36 = vpop.eup %7232  ;;  %7252 = vrcp.f32 %v4353_v50  ;;  %v4354_v38 = vadd.f32 1.0, %v7231_v22  ;;  %v6780_v49 = vpack.c.bf16 %v4917_v20, %v4885_v14  ;;  %v4824_v5 = vadd.f32 %v8564_v3, %v4672_v23 }
 0x1fb   : > { %9863 = vst [vmem:[#allocation51_spill] sm:$0xff] %v8967_v33  ;;  %v7235_v21 = vpop.eup %7234  ;;  %7254 = vrcp.f32 %v4352_v41  ;;  %v4383_v51 = vadd.f32 1.0, %v7233_v36  ;;  %v8980_v50 = vadd.f32 %v8415_v56, %v9864_v6  ;;  %v8982_v22 = vpop.f32.mrb[50].mxu0  ;;  %v6645_v36 = vmul.f32 -1.442695, %v8924_v26 }
 0x1fc   : > { %v7237_v60 = vpop.eup %7236  ;;  %7256 = vrcp.f32 %v4354_v38  ;;  %v4385_v54 = vadd.f32 1.0, %v7235_v21  ;;  %9865 = vst [vmem:[#allocation21_spill] sm:$0xff] %v8982_v22  ;;  %6781 = vmatpush1.bf16.msra.mxu1 %v6780_v49  ;;  %6729 = vmatmul.mubr.msk.f32.vlgmr.msra.gmra.mrb[66].mxu0 %vm4944_vm4, %v8775_v19  ;;  %v8987_v44 = vpop.f32.mrb[50].mxu1  ;;  %v9868_v38 = vld [vmem:[#allocation22_spill] sm:$0xff]  ;;  %v6782_v6 = vpack.c.bf16 %v4856_v7, %v4824_v5  ;;  %v6644_v8 = vmul.f32 -1.442695, %v8975_v29 }
 0x1fd   : > { %v7239_v63 = vpop.eup %7238  ;;  %7258 = vrcp.f32 %v4383_v51  ;;  %v4384_v41 = vadd.f32 1.0, %v7237_v60  ;;  %9866 = vst [vmem:[#allocation52_spill] sm:$0xff] %v8987_v44  ;;  %v8989_v23 = vpop.f32.mrb[51].mxu0  ;;  %v8993_v21 = vadd.f32 %v8419_v59, %v9868_v38  ;;  %5296 = vmatprep.mubr.f32.mxu0 %v9829_v15  ;;  %v9870_v44 = vld [vmem:[#allocation23_spill] sm:$0xff]  ;;  %v6646_v38 = vmul.f32 -1.442695, %v8980_v50 }
 0x1fe   : > { %9867 = vst [vmem:[#allocation53_spill] sm:$0xff] %v8989_v23  ;;  %v7241_v14 = vpop.eup %7240  ;;  %7260 = vrcp.f32 %v4385_v54  ;;  %v4386_v20 = vadd.f32 1.0, %v7239_v63  ;;  %v8996_v51 = vpop.f32.mrb[51].mxu1  ;;  %v9001_v23 = vadd.f32 %v8419_v59, %v9870_v44  ;;  %v9871_v22 = vld [vmem:[#allocation24_spill] sm:$0xff]  ;;  %6783 = vmatprep.subr.bf16.mxu0 %v6782_v6  ;;  %v4674_v44 = vmul.f32 %v8909_v55, %v8666_v4  ;;  %v9878_v55 = vld [vmem:[#allocation26_spill] sm:$0xff] }
 0x1ff   : > { %9869 = vst [vmem:[#allocation22_spill] sm:$0xff] %v8996_v51  ;;  %v7243_v49 = vpop.eup %7242  ;;  %7262 = vrcp.f32 %v4384_v41  ;;  %v4291_v60 = vadd.f32 1.0, %v7241_v14  ;;  %v9006_v7 = vadd.f32 %v8419_v59, %v9871_v22  ;;  %6730 = vmatmul.mubr.msk.f32.vlgmr.msra.gmra.mrb[66].mxu1 %vm4944_vm4, %v8775_v19  ;;  %v9010_v5 = vpop.f32.mrb[52].mxu0  ;;  %v9875_v22 = vpack.c.bf16 %v8942_v34, %v8931_v25  ;;  %v9879_v25 = vld [vmem:[#allocation29_spill] sm:$0xff] }
 0x200   : > { %v7245_v54 = vpop.eup %7244  ;;  %7264 = vrcp.f32 %v4386_v20  ;;  %v4293_v63 = vadd.f32 1.0, %v7243_v49  ;;  %9872 = vst [vmem:[#allocation23_spill] sm:$0xff] %v9010_v5  ;;  %v9012_v41 = vpop.f32.mrb[52].mxu1  ;;  %v9874_v49 = vld [vmem:[#allocation25_spill] sm:$0xff]  ;;  %5367 = vmatprep.mubr.f32.mxu1 %v9829_v15  ;;  %v9030_v4 = vadd.f32 %v8451_v18, %v8711_v53 }
 0x201   : > { %9873 = vst [vmem:[#allocation24_spill] sm:$0xff] %v9012_v41  ;;  %v7247_v14 = vpop.eup %7246  ;;  %7266 = vrcp.f32 %v4291_v60  ;;  %v4292_v20 = vadd.f32 1.0, %v7245_v54  ;;  %v9018_v51 = vadd.f32 %v8419_v59, %v9874_v49  ;;  %6785 = vmatpush1.bf16.msra.mxu0 %v9875_v22  ;;  %v9024_v6 = vpop.f32.mrb[53].mxu0  ;;  %v9034_v60 = vadd.f32 %v8451_v18, %v9878_v55 }
 0x202   : > { %9876 = vst [vmem:[#allocation25_spill] sm:$0xff] %v9024_v6  ;;  %v9026_v5 = vpop.f32.mrb[53].mxu1  ;;  %v7249_v41 = vpop.eup %7248  ;;  %7268 = vrcp.f32 %v4293_v63  ;;  %v4294_v33 = vadd.f32 1.0, %v7247_v14  ;;  %v6675_v49 = vmul.f32 -1.442695, %v8993_v21  ;;  %v9880_v14 = vld [vmem:[#allocation27_spill] sm:$0xff] }
 0x203   : > { %9877 = vst [vmem:[#allocation54_spill] sm:$0xff] %v9026_v5  ;;  %v7251_v54 = vpop.eup %7250  ;;  %v4706_v34 = vmul.f32 %v7249_v41, %v9879_v25  ;;  %7270 = vrcp.f32 %v4292_v20  ;;  %v6677_v22 = vmul.f32 -1.442695, %v9001_v23  ;;  %v6676_v63 = vmul.f32 -1.442695, %v9006_v7  ;;  %v9881_v6 = vld [vmem:[#allocation28_spill] sm:$0xff] }
 0x204   : > { %v7253_v5 = vpop.eup %7252  ;;  %7272 = vrcp.f32 %v4294_v33  ;;  %v9042_v53 = vadd.f32 %v8451_v18, %v9880_v14  ;;  %v9046_v55 = vadd.f32 %v8451_v18, %v9881_v6  ;;  %v9048_v1 = vpop.f32.mrb[54].mxu0  ;;  %v4826_v25 = vadd.f32 %v8564_v3, %v4674_v44  ;;  %v9884_v33 = vld [vmem:[#allocation30_spill] sm:$0xff]  ;;  %v9887_v44 = vld [vmem:[#allocation31_spill] sm:$0xff] }
 0x205   : > { %9882 = vst [vmem:[#allocation26_spill] sm:$0xff] %v9048_v1  ;;  %v9050_v41 = vpop.f32.mrb[54].mxu1  ;;  %v7255_v20 = vpop.eup %7254  ;;  %v4858_v10 = vadd.f32 %v8566_v24, %v4706_v34  ;;  %v4735_v61 = vmul.f32 %v7251_v54, %v9884_v33  ;;  %7274 = vpow2.f32 %v8971_v39  ;;  %v6678_v6 = vmul.f32 -1.442695, %v9018_v51  ;;  %v9888_v34 = vld [vmem:[#allocation32_spill] sm:$0xff] }
 0x206   : > { %9883 = vst [vmem:[#allocation29_spill] sm:$0xff] %v9050_v41  ;;  %v9056_v28 = vpop.f32.mrb[55].mxu0  ;;  %v9058_v14 = vpop.f32.mrb[55].mxu1  ;;  %7276 = vpow2.f32 %v6645_v36  ;;  %v6707_v1 = vmul.f32 -1.442695, %v9030_v4  ;;  %v4737_v58 = vmul.f32 %v7253_v5, %v9887_v44  ;;  %v9066_v54 = vadd.f32 %v8401_v46, %v9888_v34 }
 0x207   : > { %9885 = vst [vmem:[#allocation27_spill] sm:$0xff] %v9056_v28  ;;  %9886 = vst [vmem:[#allocation28_spill] sm:$0xff] %v9058_v14  ;;  %v7257_v31 = vpop.eup %7256  ;;  %v6709_v41 = vmul.f32 -1.442695, %v9034_v60  ;;  %7278 = vpow2.f32 %v6644_v8  ;;  %v6790_v39 = vpack.c.bf16 %v4858_v10, %v4826_v25  ;;  %v6708_v36 = vmul.f32 -1.442695, %v9042_v53 }
 0x208   : > { %v7259_v37 = vpop.eup %7258  ;;  %7280 = vpow2.f32 %v6646_v38  ;;  %v6710_v28 = vmul.f32 -1.442695, %v9046_v55  ;;  %v9071_v2 = vpop.f32.mrb[56].mxu0  ;;  %v4887_v8 = vadd.f32 %v8668_v30, %v4735_v61  ;;  %v4736_v5 = vmul.f32 %v7255_v20, %v8770_v52 }
 0x209   : > { %v7261_v33 = vpop.eup %7260  ;;  %v4767_v14 = vmul.f32 %v7259_v37, %v8824_v32  ;;  %v9073_v57 = vpop.f32.mrb[56].mxu1  ;;  %7282 = vpow2.f32 %v6675_v49  ;;  %6791 = vmatprep.subr.bf16.mxu1 %v6790_v39  ;;  %v4738_v38 = vmul.f32 %v7257_v31, %v8793_v16  ;;  %v9891_v61 = vpack.c.bf16 %v8951_v45, %v8934_v42 }
 0x20a   : > { %v7263_v35 = vpop.eup %7262  ;;  %v4769_v44 = vmul.f32 %v7261_v33, %v8828_v27  ;;  %v9078_v10 = vpop.f32.mrb[57].mxu0  ;;  %7284 = vpow2.f32 %v6677_v22  ;;  %v4889_v27 = vadd.f32 %v8668_v30, %v4737_v58  ;;  %v4888_v58 = vadd.f32 %v8668_v30, %v4736_v5 }
 0x20b   : > { %9889 = vst [vmem:[#allocation30_spill] sm:$0xff] %v9078_v10  ;;  %v9080_v32 = vpop.f32.mrb[57].mxu1  ;;  %v7265_v37 = vpop.eup %7264  ;;  %v4919_v25 = vadd.f32 %v8670_v40, %v4767_v14  ;;  %v4768_v34 = vmul.f32 %v7263_v35, %v8844_v43  ;;  %6793 = vmatpush1.bf16.msra.mxu1 %v9891_v61  ;;  %7286 = vpow2.f32 %v6676_v63  ;;  %v6615_v43 = vmul.f32 -1.442695, %v9066_v54  ;;  %v9912_v10 = vld [vmem:[#allocation42_spill] sm:$0xff] }
 0x20c   : > { %9890 = vst [vmem:[#allocation31_spill] sm:$0xff] %v9080_v32  ;;  %v9088_v52 = vpop.eup %7266  ;;  %v4921_v49 = vadd.f32 %v8670_v40, %v4769_v44  ;;  %v4770_v20 = vmul.f32 %v7265_v37, %v8848_v13  ;;  %7288 = vpow2.f32 %v6678_v6  ;;  %v9097_v35 = vpop.f32.mrb[58].mxu0  ;;  %v4890_v6 = vadd.f32 %v8668_v30, %v4738_v38 }
 0x20d   : > { %v9093_v39 = vpop.eup %7268  ;;  %v6788_v16 = vpack.c.bf16 %v4919_v25, %v4887_v8  ;;  %v4920_v31 = vadd.f32 %v8670_v40, %v4768_v34  ;;  %9892 = vst [vmem:[#allocation32_spill] sm:$0xff] %v9097_v35  ;;  %v9099_v42 = vpop.f32.mrb[58].mxu1  ;;  %7290 = vpow2.f32 %v6707_v1  ;;  %v9896_v8 = vld [vmem:[#allocation33_spill] sm:$0xff] }
 0x20e   : > { %9893 = vst [vmem:[#allocation55_spill] sm:$0xff] %v9099_v42  ;;  %v9101_v45 = vpop.eup %7270  ;;  %v6796_v22 = vpack.c.bf16 %v4921_v49, %v4889_v27  ;;  %v4922_v13 = vadd.f32 %v8670_v40, %v4770_v20  ;;  %v9105_v63 = vpop.f32.mrb[59].mxu0  ;;  %7292 = vpow2.f32 %v6709_v41  ;;  %v9114_v44 = vadd.f32 %v8401_v46, %v9896_v8 }
 0x20f   : > { %9894 = vst [vmem:[#allocation56_spill] sm:$0xff] %v9105_v63  ;;  %v9107_v14 = vpop.f32.mrb[59].mxu1  ;;  %v9109_v33 = vpop.eup %7272  ;;  %7294 = vpow2.f32 %v6708_v36  ;;  %v6786_v5 = vpack.c.bf16 %v4920_v31, %v4888_v58  ;;  %v4677_v42 = vmul.f32 %v9093_v39, %v8861_v12  ;;  %v4676_v32 = vmul.f32 %v9101_v45, %v8870_v17 }
 0x210   : > { %9895 = vst [vmem:[#allocation57_spill] sm:$0xff] %v9107_v14  ;;  %v7275_v37 = vpop.eup %7274  ;;  %7296 = vpow2.f32 %v6710_v28  ;;  %v6794_v1 = vpack.c.bf16 %v4922_v13, %v4890_v6  ;;  %v9116_v61 = vpop.f32.mrb[60].mxu0  ;;  %v9125_v31 = vmul.f32 -1.442695, %v9114_v44  ;;  %v9901_v28 = vld [vmem:[#allocation34_spill] sm:$0xff]  ;;  %v9902_v6 = vld [vmem:[#allocation35_spill] sm:$0xff]  ;;  %v4675_v14 = vmul.f32 %v9088_v52, %v8857_v48 }
 0x211   : > { %v7277_v25 = vpop.eup %7276  ;;  %v4323_v34 = vadd.f32 1.0, %v7275_v37  ;;  %9897 = vst [vmem:[#allocation33_spill] sm:$0xff] %v9116_v61  ;;  %v9118_v27 = vpop.f32.mrb[60].mxu1  ;;  %7298 = vpow2.f32 %v6615_v43  ;;  %6787 = vmatprep.subr.bf16.mxu0 %v6786_v5  ;;  %v9129_v58 = vadd.f32 %v8401_v46, %v9901_v28  ;;  %v9133_v37 = vadd.f32 %v8401_v46, %v9902_v6  ;;  %v9905_v6 = vld [vmem:[#allocation13_spill] sm:$0xff] }
 0x212   : > { %9898 = vst [vmem:[#allocation58_spill] sm:$0xff] %v9118_v27  ;;  %v7279_v49 = vpop.eup %7278  ;;  %v4325_v20 = vadd.f32 1.0, %v7277_v25  ;;  %v9120_v41 = vpop.f32.mrb[61].mxu0  ;;  %6795 = vmatprep.subr.bf16.mxu1 %v6794_v1  ;;  %6789 = vmatpush1.bf16.msra.mxu0 %v6788_v16  ;;  %v9137_v5 = vadd.f32 %v8415_v56, %v8779_v9  ;;  %v9903_v16 = vld [vmem:[#allocation10_spill] sm:$0xff]  ;;  %v9151_v9 = vadd.f32 %v8415_v56, %v9905_v6  ;;  %v9911_v52 = vld [vmem:[#allocation9_spill] sm:$0xff] }
 0x213   : > { %9899 = vst [vmem:[#allocation59_spill] sm:$0xff] %v9120_v41  ;;  %v9122_v38 = vpop.f32.mrb[61].mxu1  ;;  %v7281_v8 = vpop.eup %7280  ;;  %7300 = vrcp.f32 %v4323_v34  ;;  %v4324_v36 = vadd.f32 1.0, %v7279_v49  ;;  %6797 = vmatpush1.bf16.msra.mxu1 %v6796_v22  ;;  %v9141_v49 = vadd.f32 %v8415_v56, %v8781_v62  ;;  %v9145_v1 = vadd.f32 %v8415_v56, %v9903_v16  ;;  %v9906_v22 = vld [vmem:[#allocation8_spill] sm:$0xff] }
 0x214   : > { %9900 = vst [vmem:[#allocation60_spill] sm:$0xff] %v9122_v38  ;;  %v7283_v13 = vpop.eup %7282  ;;  %7302 = vrcp.f32 %v4325_v20  ;;  %v4326_v43 = vadd.f32 1.0, %v7281_v8  ;;  %v9147_v20 = vpop.f32.mrb[62].mxu0  ;;  %v4678_v12 = vmul.f32 %v9109_v33, %v9912_v10  ;;  %v4827_v17 = vadd.f32 %v8564_v3, %v4675_v14 }
 0x215   : > { %v7285_v25 = vpop.eup %7284  ;;  %7304 = vrcp.f32 %v4324_v36  ;;  %v4355_v34 = vadd.f32 1.0, %v7283_v13  ;;  %9904 = vst [vmem:[#allocation34_spill] sm:$0xff] %v9147_v20  ;;  %v9155_v36 = vadd.f32 %v8419_v59, %v9906_v22  ;;  %6731 = vmatmul.mubr.msk.f32.vlgmr.msra.gmra.mrb[68].mxu0 %vm4944_vm4, %v8775_v19  ;;  %v9159_v62 = vpop.f32.mrb[62].mxu1  ;;  %v6649_v41 = vmul.f32 -1.442695, %v9141_v49 }
 0x216   : > { %v7287_v8 = vpop.eup %7286  ;;  %7306 = vrcp.f32 %v4326_v43  ;;  %v4357_v28 = vadd.f32 1.0, %v7285_v25  ;;  %9907 = vst [vmem:[#allocation35_spill] sm:$0xff] %v9159_v62  ;;  %v9161_v13 = vpop.f32.mrb[63].mxu0  ;;  %v6616_v43 = vmul.f32 -1.442695, %v9129_v58  ;;  %v9909_v25 = vld [vmem:[#allocation19_spill] sm:$0xff]  ;;  %6732 = vmatmul.mubr.msk.f32.vlgmr.msra.gmra.mrb[68].mxu1 %vm4944_vm4, %v8775_v19  ;;  %5438 = vmatprep.mubr.f32.mxu0 %v9829_v15  ;;  %v4829_v10 = vadd.f32 %v8564_v3, %v4677_v42 }
 0x217   : > { %9908 = vst [vmem:[#allocation10_spill] sm:$0xff] %v9161_v13  ;;  %v7289_v16 = vpop.eup %7288  ;;  %7308 = vrcp.f32 %v4355_v34  ;;  %v4356_v20 = vadd.f32 1.0, %v7287_v8  ;;  %v9166_v6 = vadd.f32 %v8419_v59, %v9909_v25  ;;  %v9171_v22 = vpop.f32.mrb[63].mxu1  ;;  %v6618_v13 = vmul.f32 -1.442695, %v9133_v37  ;;  %5509 = vmatprep.mubr.f32.mxu1 %v9829_v15 }
 0x218   : > { %9910 = vst [vmem:[#allocation13_spill] sm:$0xff] %v9171_v22  ;;  %v7291_v38 = vpop.eup %7290  ;;  %7310 = vrcp.f32 %v4357_v28  ;;  %v4358_v62 = vadd.f32 1.0, %v7289_v16  ;;  %v6647_v34 = vmul.f32 -1.442695, %v9137_v5  ;;  %v6648_v19 = vmul.f32 -1.442695, %v9145_v1 }
 0x219   : > { %v7293_v8 = vpop.eup %7292  ;;  %7312 = vrcp.f32 %v4356_v20  ;;  %v4387_v25 = vadd.f32 1.0, %v7291_v38  ;;  %v6650_v22 = vmul.f32 -1.442695, %v9151_v9  ;;  %v9180_v28 = vmul.f32 -1.442695, %v9155_v36 }
 0x21a   : > { %v7295_v27 = vpop.eup %7294  ;;  %7314 = vrcp.f32 %v4358_v62  ;;  %v4389_v61 = vadd.f32 1.0, %v7293_v8  ;;  %v9185_v38 = vmul.f32 -1.442695, %v9166_v6  ;;  %v9191_v8 = vadd.f32 %v8419_v59, %v8813_v11 }
 0x21b   : > { %v7297_v16 = vpop.eup %7296  ;;  %7316 = vrcp.f32 %v4387_v25  ;;  %v4388_v63 = vadd.f32 1.0, %v7295_v27  ;;  %v9197_v27 = vadd.f32 %v8419_v59, %v9911_v52 }
 0x21c   : > { %v7299_v20 = vpop.eup %7298  ;;  %7318 = vrcp.f32 %v4389_v61  ;;  %v4390_v62 = vadd.f32 1.0, %v7297_v16  ;;  %v9913_v61 = vld [vmem:[#allocation11_spill] sm:$0xff] }
 0x21d   : > { %v7301_v35 = vpop.eup %7300  ;;  %7320 = vrcp.f32 %v4388_v63  ;;  %v4295_v48 = vadd.f32 1.0, %v7299_v20  ;;  %v9204_v11 = vadd.f32 %v8451_v18, %v9913_v61  ;;  %v9914_v63 = vld [vmem:[#allocation12_spill] sm:$0xff] }
 0x21e   : > { %v7303_v25 = vpop.eup %7302  ;;  %v4707_v39 = vmul.f32 %v7301_v35, %v8920_v47  ;;  %7322 = vrcp.f32 %v4390_v62  ;;  %v9210_v20 = vadd.f32 %v8451_v18, %v9914_v63  ;;  %v4828_v62 = vadd.f32 %v8564_v3, %v4676_v32 }
 0x21f   : > { %v7305_v16 = vpop.eup %7304  ;;  %v4709_v45 = vmul.f32 %v7303_v25, %v8924_v26  ;;  %7324 = vrcp.f32 %v4295_v48  ;;  %v4830_v25 = vadd.f32 %v8564_v3, %v4678_v12 }
 0x220   : > { %v7307_v52 = vpop.eup %7306  ;;  %v4859_v47 = vadd.f32 %v8566_v24, %v4707_v39  ;;  %v4708_v35 = vmul.f32 %v7305_v16, %v8975_v29  ;;  %7326 = vpow2.f32 %v9125_v31 }
 0x221   : > { %v7309_v33 = vpop.eup %7308  ;;  %v4861_v14 = vadd.f32 %v8566_v24, %v4709_v45  ;;  %v4710_v26 = vmul.f32 %v7307_v52, %v8980_v50  ;;  %7328 = vpow2.f32 %v6616_v43  ;;  %v6680_v50 = vmul.f32 -1.442695, %v9191_v8 }
 0x222   : > { %v7311_v48 = vpop.eup %7310  ;;  %v6800_v61 = vpack.c.bf16 %v4859_v47, %v4827_v17  ;;  %v4860_v42 = vadd.f32 %v8566_v24, %v4708_v35  ;;  %7330 = vpow2.f32 %v6618_v13  ;;  %v4739_v31 = vmul.f32 %v7309_v33, %v8993_v21 }
 0x223   : > { %v7313_v39 = vpop.eup %7312  ;;  %v6808_v63 = vpack.c.bf16 %v4861_v14, %v4829_v10  ;;  %v4862_v29 = vadd.f32 %v8566_v24, %v4710_v26  ;;  %7332 = vpow2.f32 %v6647_v34  ;;  %v4741_v16 = vmul.f32 %v7311_v48, %v9001_v23 }
 0x224   : > { %v7315_v32 = vpop.eup %7314  ;;  %7334 = vpow2.f32 %v6649_v41  ;;  %v6798_v43 = vpack.c.bf16 %v4860_v42, %v4828_v62  ;;  %v4740_v12 = vmul.f32 %v7313_v39, %v9006_v7  ;;  %v6682_v13 = vmul.f32 -1.442695, %v9197_v27 }
 0x225   : > { %v7317_v45 = vpop.eup %7316  ;;  %7336 = vpow2.f32 %v6648_v19  ;;  %v6806_v17 = vpack.c.bf16 %v4862_v29, %v4830_v25  ;;  %v4742_v10 = vmul.f32 %v7315_v32, %v9018_v51  ;;  %v6711_v34 = vmul.f32 -1.442695, %v9204_v11 }
 0x226   : > { %v7319_v52 = vpop.eup %7318  ;;  %v4771_v21 = vmul.f32 %v7317_v45, %v9030_v4  ;;  %7338 = vpow2.f32 %v6650_v22  ;;  %6799 = vmatprep.subr.bf16.mxu0 %v6798_v43  ;;  %v4891_v41 = vadd.f32 %v8668_v30, %v4739_v31  ;;  %v6713_v7 = vmul.f32 -1.442695, %v9210_v20  ;;  %v9915_v31 = vld [vmem:[#allocation36_spill] sm:$0xff]  ;;  %v9916_v45 = vld [vmem:[#allocation37_spill] sm:$0xff] }
 0x227   : > { %v7321_v23 = vpop.eup %7320  ;;  %v4773_v47 = vmul.f32 %v7319_v52, %v9034_v60  ;;  %7340 = vpow2.f32 %v9180_v28  ;;  %6807 = vmatprep.subr.bf16.mxu1 %v6806_v17  ;;  %6801 = vmatpush1.bf16.msra.mxu0 %v6800_v61  ;;  %v4893_v51 = vadd.f32 %v8668_v30, %v4741_v16  ;;  %v4892_v60 = vadd.f32 %v8668_v30, %v4740_v12 }
 0x228   : > { %v7323_v19 = vpop.eup %7322  ;;  %v4923_v4 = vadd.f32 %v8670_v40, %v4771_v21  ;;  %v4772_v22 = vmul.f32 %v7321_v23, %v9042_v53  ;;  %7342 = vpow2.f32 %v9185_v38  ;;  %6809 = vmatpush1.bf16.msra.mxu1 %v6808_v63  ;;  %v4894_v14 = vadd.f32 %v8668_v30, %v4742_v10 }
 0x229   : > { %v9238_v35 = vpop.eup %7324  ;;  %v4925_v28 = vadd.f32 %v8670_v40, %v4773_v47  ;;  %v4774_v33 = vmul.f32 %v7323_v19, %v9046_v55  ;;  %7344 = vpow2.f32 %v6680_v50  ;;  %v9248_v32 = vadd.f32 %v8451_v18, %v9915_v31  ;;  %v9917_v19 = vld [vmem:[#allocation38_spill] sm:$0xff] }
 0x22a   : > { %v7327_v62 = vpop.eup %7326  ;;  %v6804_v26 = vpack.c.bf16 %v4923_v4, %v4891_v41  ;;  %v4924_v48 = vadd.f32 %v8670_v40, %v4772_v22  ;;  %7346 = vpow2.f32 %v6682_v13  ;;  %v9252_v12 = vadd.f32 %v8451_v18, %v9916_v45  ;;  %v9263_v4 = vld [vmem:[%s9762_s9] sm:$0xf] }
 0x22b   : > { %v7329_v53 = vpop.eup %7328  ;;  %v6812_v25 = vpack.c.bf16 %v4925_v28, %v4893_v51  ;;  %v4926_v38 = vadd.f32 %v8670_v40, %v4774_v33  ;;  %v4297_v61 = vadd.f32 1.0, %v7327_v62  ;;  %7348 = vpow2.f32 %v6711_v34  ;;  %v9918_v28 = vld [vmem:[#allocation39_spill] sm:$0xff]  ;;  %v9919_v62 = vld [vmem:[#allocation40_spill] sm:$0xff] }
 0x22c   : > { %v7331_v42 = vpop.eup %7330  ;;  %v4296_v39 = vadd.f32 1.0, %v7329_v53  ;;  %7350 = vpow2.f32 %v6713_v7  ;;  %v6802_v63 = vpack.c.bf16 %v4924_v48, %v4892_v60  ;;  %v6712_v23 = vmul.f32 -1.442695, %v9248_v32  ;;  %v9920_v53 = vld [vmem:[#allocation41_spill] sm:$0xff]  ;;  %v9924_v45 = vld [vmem:[#allocation44_spill] sm:$0xff] }
 0x22d   : > { %v7333_v29 = vpop.eup %7332  ;;  %7352 = vrcp.f32 %v4297_v61  ;;  %v4298_v55 = vadd.f32 1.0, %v7331_v42  ;;  %v6810_v16 = vpack.c.bf16 %v4926_v38, %v4894_v14  ;;  %v6714_v7 = vmul.f32 -1.442695, %v9252_v12  ;;  %v9921_v38 = vld [vmem:[#allocation16_spill] sm:$0xff] }
 0x22e   : > { %v7335_v50 = vpop.eup %7334  ;;  %7354 = vrcp.f32 %v4296_v39  ;;  %v4327_v43 = vadd.f32 1.0, %v7333_v29  ;;  %6803 = vmatprep.subr.bf16.mxu0 %v6802_v63  ;;  %v9258_v51 = vadd.f32 %v8401_v46, %v9917_v19  ;;  %v9269_v33 = vadd.f32 %v8401_v46, %v9918_v28  ;;  %v9922_v63 = vld [vmem:[#allocation17_spill] sm:$0xff] }
 0x22f   : > { %v7337_v13 = vpop.eup %7336  ;;  %7356 = vrcp.f32 %v4298_v55  ;;  %v4329_v17 = vadd.f32 1.0, %v7335_v50  ;;  %6811 = vmatprep.subr.bf16.mxu1 %v6810_v16  ;;  %6805 = vmatpush1.bf16.msra.mxu0 %v6804_v26  ;;  %v9273_v14 = vadd.f32 %v8401_v46, %v9919_v62  ;;  %v9284_v61 = vadd.f32 %v8415_v56, %v9921_v38  ;;  %v9923_v55 = vld [vmem:[#allocation43_spill] sm:$0xff] }
 0x230   : > { %v7339_v52 = vpop.eup %7338  ;;  %7358 = vrcp.f32 %v4327_v43  ;;  %v4328_v10 = vadd.f32 1.0, %v7337_v13  ;;  %6813 = vmatpush1.bf16.msra.mxu1 %v6812_v25  ;;  %v9280_v25 = vadd.f32 %v8401_v46, %v9920_v53  ;;  %v9289_v29 = vadd.f32 %v8415_v56, %v9922_v63  ;;  %v9925_v53 = vld [vmem:[#allocation45_spill] sm:$0xff] }
 0x231   : > { %v7341_v21 = vpop.eup %7340  ;;  %7360 = vrcp.f32 %v4329_v17  ;;  %v4330_v34 = vadd.f32 1.0, %v7339_v52  ;;  %v9293_v31 = vadd.f32 %v8415_v56, %v9923_v55  ;;  %v6619_v43 = vmul.f32 -1.442695, %v9258_v51 }
 0x232   : > { %v7343_v41 = vpop.eup %7342  ;;  %7362 = vrcp.f32 %v4328_v10  ;;  %v4359_v47 = vadd.f32 1.0, %v7341_v21  ;;  %6733 = vmatmul.mubr.msk.f32.vlgmr.msra.gmra.mrb[70].mxu0 %vm4944_vm4, %v9263_v4  ;;  %v9298_v13 = vadd.f32 %v8415_v56, %v9924_v45  ;;  %v6621_v10 = vmul.f32 -1.442695, %v9269_v33 }
 0x233   : > { %v7345_v22 = vpop.eup %7344  ;;  %7364 = vrcp.f32 %v4330_v34  ;;  %v4361_v60 = vadd.f32 1.0, %v7343_v41  ;;  %6734 = vmatmul.mubr.msk.f32.vlgmr.msra.gmra.mrb[70].mxu1 %vm4944_vm4, %v9263_v4  ;;  %5580 = vmatprep.mubr.f32.mxu0 %v9829_v15  ;;  %v9303_v21 = vadd.f32 %v8419_v59, %v8905_v0  ;;  %v6620_v41 = vmul.f32 -1.442695, %v9273_v14 }
 0x234   : > { %v7347_v26 = vpop.eup %7346  ;;  %7366 = vrcp.f32 %v4359_v47  ;;  %v4360_v48 = vadd.f32 1.0, %v7345_v22  ;;  %5651 = vmatprep.mubr.f32.mxu1 %v9829_v15  ;;  %v6622_v47 = vmul.f32 -1.442695, %v9280_v25  ;;  %v6651_v19 = vmul.f32 -1.442695, %v9284_v61 }
 0x235   : > { %v7349_v42 = vpop.eup %7348  ;;  %7368 = vrcp.f32 %v4361_v60  ;;  %v4362_v39 = vadd.f32 1.0, %v7347_v26  ;;  %v4679_v60 = vmul.f32 %v9238_v35, %v9066_v54  ;;  %v6653_v28 = vmul.f32 -1.442695, %v9289_v29 }
 0x236   : > { %v7351_v16 = vpop.eup %7350  ;;  %7370 = vrcp.f32 %v4360_v48  ;;  %v4391_v50 = vadd.f32 1.0, %v7349_v42  ;;  %v6652_v62 = vmul.f32 -1.442695, %v9293_v31  ;;  %v6654_v48 = vmul.f32 -1.442695, %v9298_v13 }
 0x237   : > { %v7353_v17 = vpop.eup %7352  ;;  %7372 = vrcp.f32 %v4362_v39  ;;  %v4393_v52 = vadd.f32 1.0, %v7351_v16  ;;  %v9316_v38 = vadd.f32 %v8419_v59, %v9925_v53  ;;  %v6683_v35 = vmul.f32 -1.442695, %v9303_v21 }
 0x238   : > { %v7355_v34 = vpop.eup %7354  ;;  %7374 = vrcp.f32 %v4391_v50  ;;  %v4681_v0 = vmul.f32 %v7353_v17, %v9114_v44  ;;  %v4831_v45 = vadd.f32 %v8564_v3, %v4679_v60 }
 0x239   : > { %v7357_v22 = vpop.eup %7356  ;;  %7376 = vrcp.f32 %v4393_v52  ;;  %v4680_v39 = vmul.f32 %v7355_v34, %v9129_v58 }
 0x23a   : > { %v7359_v26 = vpop.eup %7358  ;;  %7378 = vpow2.f32 %v6712_v23  ;;  %v4682_v55 = vmul.f32 %v7357_v22, %v9133_v37  ;;  %v9926_v23 = vld [vmem:[#allocation14_spill] sm:$0xff]  ;;  %v4833_v17 = vadd.f32 %v8564_v3, %v4681_v0 }
 0x23b   : > { %v7361_v42 = vpop.eup %7360  ;;  %v4711_v54 = vmul.f32 %v7359_v26, %v9137_v5  ;;  %7380 = vpow2.f32 %v6714_v7  ;;  %v9325_v16 = vadd.f32 %v8419_v59, %v9926_v23  ;;  %v4832_v52 = vadd.f32 %v8564_v3, %v4680_v39 }
 0x23c   : > { %v7363_v63 = vpop.eup %7362  ;;  %v4713_v44 = vmul.f32 %v7361_v42, %v9141_v49  ;;  %7382 = vpow2.f32 %v6619_v43 }
 0x23d   : > { %v7365_v50 = vpop.eup %7364  ;;  %v4863_v58 = vadd.f32 %v8566_v24, %v4711_v54  ;;  %v4712_v5 = vmul.f32 %v7363_v63, %v9145_v1  ;;  %7384 = vpow2.f32 %v6621_v10  ;;  %v4834_v1 = vadd.f32 %v8564_v3, %v4682_v55 }
 0x23e   : > { %v7367_v7 = vpop.eup %7366  ;;  %v4865_v37 = vadd.f32 %v8566_v24, %v4713_v44  ;;  %v4714_v49 = vmul.f32 %v7365_v50, %v9151_v9  ;;  %7386 = vpow2.f32 %v6620_v41  ;;  %v6685_v41 = vmul.f32 -1.442695, %v9316_v38 }
 0x23f   : > { %v7369_v43 = vpop.eup %7368  ;;  %v6816_v34 = vpack.c.bf16 %v4863_v58, %v4831_v45  ;;  %v4864_v22 = vadd.f32 %v8566_v24, %v4712_v5  ;;  %7388 = vpow2.f32 %v6622_v47  ;;  %v4743_v9 = vmul.f32 %v7367_v7, %v9155_v36  ;;  %v9927_v58 = vld [vmem:[#allocation18_spill] sm:$0xff] }
 0x240   : > { %v9335_v60 = vpop.eup %7370  ;;  %v6824_v10 = vpack.c.bf16 %v4865_v37, %v4833_v17  ;;  %v4866_v26 = vadd.f32 %v8566_v24, %v4714_v49  ;;  %7390 = vpow2.f32 %v6651_v19  ;;  %v4745_v39 = vmul.f32 %v7369_v43, %v9166_v6  ;;  %v9928_v49 = vld [vmem:[#allocation15_spill] sm:$0xff] }
 0x241   : > { %v9339_v0 = vpop.eup %7372  ;;  %7392 = vpow2.f32 %v6653_v28  ;;  %v6814_v53 = vpack.c.bf16 %v4864_v22, %v4832_v52  ;;  %v6684_v47 = vmul.f32 -1.442695, %v9325_v16  ;;  %v9348_v28 = vadd.f32 %v8668_v30, %v4743_v9  ;;  %v9929_v22 = vld [vmem:[#allocation20_spill] sm:$0xff]  ;;  %v9930_v9 = vld [vmem:[#allocation46_spill] sm:$0xff] }
 0x242   : > { %v7375_v42 = vpop.eup %7374  ;;  %7394 = vpow2.f32 %v6652_v62  ;;  %v6822_v54 = vpack.c.bf16 %v4866_v26, %v4834_v1  ;;  %v9363_v5 = vadd.f32 %v8419_v59, %v9927_v58  ;;  %v9369_v43 = vadd.f32 %v8451_v18, %v9928_v49  ;;  %v9934_v49 = vld [vmem:[#allocation50_spill] sm:$0xff] }
 0x243   : > { %v7377_v63 = vpop.eup %7376  ;;  %v4775_v55 = vmul.f32 %v7375_v42, %v9204_v11  ;;  %7396 = vpow2.f32 %v6654_v48  ;;  %6815 = vmatprep.subr.bf16.mxu0 %v6814_v53  ;;  %v9354_v11 = vadd.f32 %v8668_v30, %v4745_v39  ;;  %v9373_v1 = vadd.f32 %v8451_v18, %v9929_v22  ;;  %v9931_v39 = vld [vmem:[#allocation47_spill] sm:$0xff] }
 0x244   : > { %v7379_v19 = vpop.eup %7378  ;;  %v4777_v44 = vmul.f32 %v7377_v63, %v9210_v20  ;;  %7398 = vpow2.f32 %v6683_v35  ;;  %6823 = vmatprep.subr.bf16.mxu1 %v6822_v54  ;;  %6817 = vmatpush1.bf16.msra.mxu0 %v6816_v34  ;;  %v9932_v54 = vld [vmem:[#allocation48_spill] sm:$0xff] }
 0x245   : > { %v7381_v36 = vpop.eup %7380  ;;  %v9351_v6 = vadd.f32 %v8670_v40, %v4775_v55  ;;  %v4392_v62 = vadd.f32 1.0, %v7379_v19  ;;  %7400 = vpow2.f32 %v6685_v41  ;;  %6825 = vmatpush1.bf16.msra.mxu1 %v6824_v10  ;;  %v9377_v41 = vadd.f32 %v8451_v18, %v9930_v9 }
 0x246   : > { %v7383_v23 = vpop.eup %7382  ;;  %v9357_v48 = vadd.f32 %v8670_v40, %v4777_v44  ;;  %v4394_v20 = vadd.f32 1.0, %v7381_v36  ;;  %7402 = vpow2.f32 %v6684_v47  ;;  %v9381_v47 = vadd.f32 %v8451_v18, %v9931_v39  ;;  %v9936_v39 = vld [vmem:[#allocation51_spill] sm:$0xff] }
 0x247   : > { %v7385_v35 = vpop.eup %7384  ;;  %7404 = vrcp.f32 %v4392_v62  ;;  %v4299_v45 = vadd.f32 1.0, %v7383_v23  ;;  %v9385_v63 = vadd.f32 %v8401_v46, %v9932_v54  ;;  %v6686_v44 = vmul.f32 -1.442695, %v9363_v5 }
 0x248   : > { %v7387_v7 = vpop.eup %7386  ;;  %7406 = vrcp.f32 %v4394_v20  ;;  %v4301_v37 = vadd.f32 1.0, %v7385_v35  ;;  %v6715_v36 = vmul.f32 -1.442695, %v9369_v43  ;;  %v6717_v20 = vmul.f32 -1.442695, %v9373_v1  ;;  %v9933_v35 = vld [vmem:[#allocation49_spill] sm:$0xff] }
 0x249   : > { %v7389_v52 = vpop.eup %7388  ;;  %7408 = vrcp.f32 %v4299_v45  ;;  %v4300_v34 = vadd.f32 1.0, %v7387_v7  ;;  %v9392_v45 = vadd.f32 %v8401_v46, %v9933_v35  ;;  %v9405_v54 = vadd.f32 %v8401_v46, %v9936_v39  ;;  %v9939_v39 = vld [vmem:[#allocation52_spill] sm:$0xff] }
 0x24a   : > { %v7391_v10 = vpop.eup %7390  ;;  %7410 = vrcp.f32 %v4301_v37  ;;  %v4302_v26 = vadd.f32 1.0, %v7389_v52  ;;  %v6716_v37 = vmul.f32 -1.442695, %v9377_v41  ;;  %v9397_v52 = vadd.f32 %v8401_v46, %v9934_v49 }
 0x24b   : > { %v7393_v53 = vpop.eup %7392  ;;  %7412 = vrcp.f32 %v4300_v34  ;;  %v4331_v42 = vadd.f32 1.0, %v7391_v10  ;;  %v6718_v10 = vmul.f32 -1.442695, %v9381_v47  ;;  %9937 = vst [vmem:[#allocation19_spill] sm:$0xff] %v9405_v54 }
 0x24c   : > { %v7395_v55 = vpop.eup %7394  ;;  %7414 = vrcp.f32 %v4302_v26  ;;  %v4333_v19 = vadd.f32 1.0, %v7393_v53  ;;  %9935 = vst [vmem:[#allocation8_spill] sm:$0xff] %v9397_v52  ;;  %v6623_v26 = vmul.f32 -1.442695, %v9385_v63  ;;  %v4744_v53 = vmul.f32 %v9335_v60, %v9191_v8  ;;  %v9938_v60 = vld [vmem:[#allocation21_spill] sm:$0xff] }
 0x24d   : > { %v7397_v62 = vpop.eup %7396  ;;  %7416 = vrcp.f32 %v4331_v42  ;;  %v4332_v23 = vadd.f32 1.0, %v7395_v55  ;;  %v6624_v8 = vmul.f32 -1.442695, %v9397_v52 }
 0x24e   : > { %v7399_v58 = vpop.eup %7398  ;;  %7418 = vrcp.f32 %v4333_v19  ;;  %v4334_v7 = vadd.f32 1.0, %v7397_v62  ;;  %v4746_v19 = vmul.f32 %v9339_v0, %v9197_v27  ;;  %v9419_v27 = vadd.f32 %v8415_v56, %v9939_v39  ;;  %v9940_v0 = vld [vmem:[#allocation53_spill] sm:$0xff] }
 0x24f   : > { %v7401_v34 = vpop.eup %7400  ;;  %7420 = vrcp.f32 %v4332_v23  ;;  %v4363_v22 = vadd.f32 1.0, %v7399_v58  ;;  %v6625_v23 = vmul.f32 -1.442695, %v9392_v45 }
 0x250   : > { %v7403_v9 = vpop.eup %7402  ;;  %7422 = vrcp.f32 %v4334_v7  ;;  %v4365_v42 = vadd.f32 1.0, %v7401_v34  ;;  %v9414_v7 = vadd.f32 %v8415_v56, %v9938_v60 }
 0x251   : > { %v7405_v55 = vpop.eup %7404  ;;  %7424 = vrcp.f32 %v4363_v22  ;;  %v4364_v62 = vadd.f32 1.0, %v7403_v9  ;;  %v9423_v22 = vadd.f32 %v8415_v56, %v9940_v0  ;;  %v4896_v9 = vadd.f32 %v8668_v30, %v4744_v53 }
 0x252   : > { %v7407_v35 = vpop.eup %7406  ;;  %v4776_v58 = vmul.f32 %v7405_v55, %v9248_v32  ;;  %7426 = vrcp.f32 %v4365_v42  ;;  %v6626_v55 = vmul.f32 -1.442695, %v9405_v54  ;;  %v6655_v53 = vmul.f32 -1.442695, %v9414_v7 }
 0x253   : > { %v7409_v49 = vpop.eup %7408  ;;  %v4778_v34 = vmul.f32 %v7407_v35, %v9252_v12  ;;  %7428 = vrcp.f32 %v4364_v62  ;;  %v4898_v12 = vadd.f32 %v8668_v30, %v4746_v19  ;;  %v9941_v35 = vld [vmem:[#allocation22_spill] sm:$0xff]  ;;  %v6657_v19 = vmul.f32 -1.442695, %v9419_v27 }
 0x254   : > { %v7411_v32 = vpop.eup %7410  ;;  %v4928_v42 = vadd.f32 %v8670_v40, %v4776_v58  ;;  %7430 = vpow2.f32 %v6686_v44  ;;  %v9432_v39 = vadd.f32 %v8415_v56, %v9941_v35  ;;  %v4683_v17 = vmul.f32 %v7409_v49, %v9258_v51 }
 0x255   : > { %v7413_v60 = vpop.eup %7412  ;;  %v4930_v62 = vadd.f32 %v8670_v40, %v4778_v34  ;;  %7432 = vpow2.f32 %v6715_v36  ;;  %v4685_v50 = vmul.f32 %v7411_v32, %v9269_v33  ;;  %v6656_v52 = vmul.f32 -1.442695, %v9423_v22 }
 0x256   : > { %v7415_v0 = vpop.eup %7414  ;;  %7434 = vpow2.f32 %v6717_v20  ;;  %v6818_v58 = vpack.c.bf16 %v4928_v42, %v4896_v9  ;;  %v4684_v36 = vmul.f32 %v7413_v60, %v9273_v14  ;;  %v6658_v33 = vmul.f32 -1.442695, %v9432_v39  ;;  %v9944_v60 = vld [vmem:[#allocation23_spill] sm:$0xff] }
 0x257   : > { %v7417_v44 = vpop.eup %7416  ;;  %7436 = vpow2.f32 %v6716_v37  ;;  %v6826_v54 = vpack.c.bf16 %v4930_v62, %v4898_v12  ;;  %v4686_v20 = vmul.f32 %v7415_v0, %v9280_v25  ;;  %v9942_v37 = vpack.c.bf16 %v9351_v6, %v9348_v28 }
 0x258   : > { %v7419_v34 = vpop.eup %7418  ;;  %v4715_v35 = vmul.f32 %v7417_v44, %v9284_v61  ;;  %7438 = vpow2.f32 %v6718_v10  ;;  %6819 = vmatprep.subr.bf16.mxu0 %v6818_v58  ;;  %v4835_v61 = vadd.f32 %v8564_v3, %v4683_v17  ;;  %v9943_v25 = vpack.c.bf16 %v9357_v48, %v9354_v11 }
 0x259   : > { %v7421_v51 = vpop.eup %7420  ;;  %v4717_v49 = vmul.f32 %v7419_v34, %v9289_v29  ;;  %7440 = vpow2.f32 %v6623_v26  ;;  %6827 = vmatprep.subr.bf16.mxu1 %v6826_v54  ;;  %6821 = vmatpush1.bf16.msra.mxu0 %v9942_v37  ;;  %v4837_v26 = vadd.f32 %v8564_v3, %v4685_v50  ;;  %v4836_v17 = vadd.f32 %v8564_v3, %v4684_v36  ;;  %v9945_v36 = vld [vmem:[#allocation24_spill] sm:$0xff]  ;;  %v9947_v37 = vld [vmem:[#allocation54_spill] sm:$0xff] }
 0x25a   : > { %v7423_v14 = vpop.eup %7422  ;;  %v4867_v10 = vadd.f32 %v8566_v24, %v4715_v35  ;;  %v4716_v32 = vmul.f32 %v7421_v51, %v9293_v31  ;;  %7442 = vpow2.f32 %v6625_v23  ;;  %6829 = vmatpush1.bf16.msra.mxu1 %v9943_v25  ;;  %v4838_v48 = vadd.f32 %v8564_v3, %v4686_v20  ;;  %v9946_v35 = vld [vmem:[#allocation25_spill] sm:$0xff] }
 0x25b   : > { %v9453_v29 = vpop.eup %7424  ;;  %v4869_v54 = vadd.f32 %v8566_v24, %v4717_v49  ;;  %v4718_v28 = vmul.f32 %v7423_v14, %v9298_v13  ;;  %7444 = vpow2.f32 %v6624_v8  ;;  %v9474_v12 = vadd.f32 %v8419_v59, %v9944_v60 }
 0x25c   : > { %v9458_v6 = vpop.eup %7426  ;;  %v6832_v9 = vpack.c.bf16 %v4867_v10, %v4835_v61  ;;  %v4868_v31 = vadd.f32 %v8566_v24, %v4716_v32  ;;  %7446 = vpow2.f32 %v6626_v55  ;;  %6735 = vmatmul.mubr.msk.f32.vlgmr.msra.gmra.mrb[72].mxu0 %vm4944_vm4, %v9263_v4  ;;  %v9482_v51 = vadd.f32 %v8419_v59, %v9946_v35  ;;  %v9948_v32 = vld [vmem:[#allocation26_spill] sm:$0xff] }
 0x25d   : > { %v9464_v11 = vpop.eup %7428  ;;  %v6840_v50 = vpack.c.bf16 %v4869_v54, %v4837_v26  ;;  %v4870_v23 = vadd.f32 %v8566_v24, %v4718_v28  ;;  %7448 = vpow2.f32 %v6655_v53  ;;  %6736 = vmatmul.mubr.msk.f32.vlgmr.msra.gmra.mrb[72].mxu1 %vm4944_vm4, %v9263_v4  ;;  %5722 = vmatprep.mubr.f32.mxu0 %v9829_v15  ;;  %v9487_v14 = vadd.f32 %v8419_v59, %v9947_v37  ;;  %v9949_v26 = vld [vmem:[#allocation29_spill] sm:$0xff] }
 0x25e   : > { %v7431_v13 = vpop.eup %7430  ;;  %7450 = vpow2.f32 %v6657_v19  ;;  %v6830_v8 = vpack.c.bf16 %v4868_v31, %v4836_v17  ;;  %5793 = vmatprep.mubr.f32.mxu1 %v9829_v15  ;;  %v9491_v25 = vadd.f32 %v8451_v18, %v9948_v32  ;;  %v9495_v54 = vadd.f32 %v8451_v18, %v9949_v26 }
 0x25f   : > { %v7433_v42 = vpop.eup %7432  ;;  %v4366_v55 = vadd.f32 1.0, %v7431_v13  ;;  %7452 = vpow2.f32 %v6656_v52  ;;  %v6838_v62 = vpack.c.bf16 %v4870_v23, %v4838_v48  ;;  %v9478_v52 = vadd.f32 %v8419_v59, %v9945_v36  ;;  %v9951_v48 = vld [vmem:[#allocation28_spill] sm:$0xff] }
 0x260   : > { %v7435_v0 = vpop.eup %7434  ;;  %v4395_v53 = vadd.f32 1.0, %v7433_v42  ;;  %7454 = vpow2.f32 %v6658_v33  ;;  %6831 = vmatprep.subr.bf16.mxu0 %v6830_v8  ;;  %v6687_v33 = vmul.f32 -1.442695, %v9474_v12  ;;  %v6688_v42 = vmul.f32 -1.442695, %v9482_v51 }
 0x261   : > { %v7437_v58 = vpop.eup %7436  ;;  %7456 = vrcp.f32 %v4366_v55  ;;  %v4397_v44 = vadd.f32 1.0, %v7435_v0  ;;  %6839 = vmatprep.subr.bf16.mxu1 %v6838_v62  ;;  %6833 = vmatpush1.bf16.msra.mxu0 %v6832_v9  ;;  %v9950_v9 = vld [vmem:[#allocation27_spill] sm:$0xff]  ;;  %v6689_v8 = vmul.f32 -1.442695, %v9478_v52  ;;  %v6690_v62 = vmul.f32 -1.442695, %v9487_v14 }
 0x262   : > { %v7439_v19 = vpop.eup %7438  ;;  %7458 = vrcp.f32 %v4395_v53  ;;  %v4396_v34 = vadd.f32 1.0, %v7437_v58  ;;  %6841 = vmatpush1.bf16.msra.mxu1 %v6840_v50  ;;  %v9499_v31 = vadd.f32 %v8451_v18, %v9950_v9  ;;  %v9503_v50 = vadd.f32 %v8451_v18, %v9951_v48 }
 0x263   : > { %v7441_v20 = vpop.eup %7440  ;;  %7460 = vrcp.f32 %v4397_v44  ;;  %v4398_v49 = vadd.f32 1.0, %v7439_v19  ;;  %v9510_v0 = vadd.f32 %v8401_v46, %v9071_v2  ;;  %v6719_v44 = vmul.f32 -1.442695, %v9491_v25 }
 0x264   : > { %v7443_v61 = vpop.eup %7442  ;;  %7462 = vrcp.f32 %v4396_v34  ;;  %v4303_v10 = vadd.f32 1.0, %v7441_v20  ;;  %v6721_v19 = vmul.f32 -1.442695, %v9495_v54  ;;  %v6720_v35 = vmul.f32 -1.442695, %v9499_v31 }
 0x265   : > { %v7445_v28 = vpop.eup %7444  ;;  %7464 = vrcp.f32 %v4398_v49  ;;  %v4305_v17 = vadd.f32 1.0, %v7443_v61  ;;  %v6722_v20 = vmul.f32 -1.442695, %v9503_v50  ;;  %v4747_v37 = vmul.f32 %v9453_v29, %v9303_v21  ;;  %v9952_v29 = vld [vmem:[#allocation30_spill] sm:$0xff] }
 0x266   : > { %v7447_v23 = vpop.eup %7446  ;;  %7466 = vrcp.f32 %v4303_v10  ;;  %v4304_v13 = vadd.f32 1.0, %v7445_v28  ;;  %v4749_v2 = vmul.f32 %v9458_v6, %v9316_v38  ;;  %v4748_v32 = vmul.f32 %v9464_v11, %v9325_v16  ;;  %v9953_v16 = vld [vmem:[#allocation31_spill] sm:$0xff] }
 0x267   : > { %v7449_v55 = vpop.eup %7448  ;;  %7468 = vrcp.f32 %v4305_v17  ;;  %v4306_v60 = vadd.f32 1.0, %v7447_v23  ;;  %v6627_v28 = vmul.f32 -1.442695, %v9510_v0  ;;  %v9526_v21 = vadd.f32 %v8401_v46, %v9073_v57  ;;  %v9954_v23 = vld [vmem:[#allocation32_spill] sm:$0xff] }
 0x268   : > { %v7451_v53 = vpop.eup %7450  ;;  %7470 = vrcp.f32 %v4304_v13  ;;  %v4335_v58 = vadd.f32 1.0, %v7449_v55  ;;  %v9530_v38 = vadd.f32 %v8401_v46, %v9952_v29  ;;  %v9535_v11 = vadd.f32 %v8401_v46, %v9953_v16 }
 0x269   : > { %v7453_v34 = vpop.eup %7452  ;;  %7472 = vrcp.f32 %v4306_v60  ;;  %v4337_v36 = vadd.f32 1.0, %v7451_v53  ;;  %v4899_v57 = vadd.f32 %v8668_v30, %v4747_v37  ;;  %v4901_v55 = vadd.f32 %v8668_v30, %v4749_v2 }
 0x26a   : > { %v7455_v49 = vpop.eup %7454  ;;  %7474 = vrcp.f32 %v4335_v58  ;;  %v4336_v61 = vadd.f32 1.0, %v7453_v34 }
 0x26b   : > { %v7457_v10 = vpop.eup %7456  ;;  %7476 = vrcp.f32 %v4337_v36  ;;  %v4338_v26 = vadd.f32 1.0, %v7455_v49 }
 0x26c   : > { %v7459_v17 = vpop.eup %7458  ;;  %v4750_v9 = vmul.f32 %v7457_v10, %v9363_v5  ;;  %7478 = vrcp.f32 %v4336_v61  ;;  %v9539_v5 = vadd.f32 %v8415_v56, %v9954_v23 }
 0x26d   : > { %v7461_v6 = vpop.eup %7460  ;;  %v4779_v48 = vmul.f32 %v7459_v17, %v9369_v43  ;;  %7480 = vrcp.f32 %v4338_v26  ;;  %v4900_v43 = vadd.f32 %v8668_v30, %v4748_v32  ;;  %v9955_v17 = vld [vmem:[#allocation8_spill] sm:$0xff] }
 0x26e   : > { %v7463_v13 = vpop.eup %7462  ;;  %v4781_v60 = vmul.f32 %v7461_v6, %v9373_v1  ;;  %7482 = vpow2.f32 %v6687_v33  ;;  %v4902_v36 = vadd.f32 %v8668_v30, %v4750_v9  ;;  %v9956_v6 = vld [vmem:[#allocation19_spill] sm:$0xff] }
 0x26f   : > { %v7465_v53 = vpop.eup %7464  ;;  %v4931_v58 = vadd.f32 %v8670_v40, %v4779_v48  ;;  %v4780_v46 = vmul.f32 %v7463_v13, %v9377_v41  ;;  %7484 = vpow2.f32 %v6689_v8 }
 0x270   : > { %v7467_v34 = vpop.eup %7466  ;;  %v4933_v49 = vadd.f32 %v8670_v40, %v4781_v60  ;;  %v4782_v37 = vmul.f32 %v7465_v53, %v9381_v47  ;;  %7486 = vpow2.f32 %v6688_v42  ;;  %v6629_v47 = vmul.f32 -1.442695, %v9526_v21 }
 0x271   : > { %v7469_v2 = vpop.eup %7468  ;;  %v6836_v61 = vpack.c.bf16 %v4931_v58, %v4899_v57  ;;  %v4932_v1 = vadd.f32 %v8670_v40, %v4780_v46  ;;  %v4687_v33 = vmul.f32 %v7467_v34, %v9385_v63  ;;  %7488 = vpow2.f32 %v6690_v62 }
 0x272   : > { %v7471_v10 = vpop.eup %7470  ;;  %v6844_v32 = vpack.c.bf16 %v4933_v49, %v4901_v55  ;;  %v4934_v41 = vadd.f32 %v8670_v40, %v4782_v37  ;;  %v4689_v8 = vmul.f32 %v7469_v2, %v9392_v45  ;;  %7490 = vpow2.f32 %v6719_v44 }
 0x273   : > { %v7473_v26 = vpop.eup %7472  ;;  %v4688_v9 = vmul.f32 %v7471_v10, %v9955_v17  ;;  %7492 = vpow2.f32 %v6721_v19  ;;  %v6834_v42 = vpack.c.bf16 %v4932_v1, %v4900_v43  ;;  %v6628_v63 = vmul.f32 -1.442695, %v9530_v38 }
 0x274   : > { %v7475_v29 = vpop.eup %7474  ;;  %v4690_v48 = vmul.f32 %v7473_v26, %v9956_v6  ;;  %7494 = vpow2.f32 %v6720_v35  ;;  %v6842_v62 = vpack.c.bf16 %v4934_v41, %v4902_v36  ;;  %v6630_v45 = vmul.f32 -1.442695, %v9535_v11  ;;  %v9957_v6 = vld [vmem:[#allocation55_spill] sm:$0xff] }
 0x275   : > { %v7477_v16 = vpop.eup %7476  ;;  %v4719_v23 = vmul.f32 %v7475_v29, %v9414_v7  ;;  %7496 = vpow2.f32 %v6722_v20  ;;  %v6659_v44 = vmul.f32 -1.442695, %v9539_v5  ;;  %6835 = vmatprep.subr.bf16.mxu0 %v6834_v42  ;;  %v4839_v13 = vadd.f32 %v8564_v3, %v4687_v33 }
 0x276   : > { %v7479_v19 = vpop.eup %7478  ;;  %v4841_v57 = vadd.f32 %v8564_v3, %v4689_v8  ;;  %v4721_v55 = vmul.f32 %v7477_v16, %v9419_v27  ;;  %7498 = vpow2.f32 %v6627_v28  ;;  %6843 = vmatprep.subr.bf16.mxu1 %v6842_v62  ;;  %6837 = vmatpush1.bf16.msra.mxu0 %v6836_v61  ;;  %v4840_v60 = vadd.f32 %v8564_v3, %v4688_v9 }
 0x277   : > { %v7481_v35 = vpop.eup %7480  ;;  %v4871_v7 = vadd.f32 %v8566_v24, %v4719_v23  ;;  %v4720_v20 = vmul.f32 %v7479_v19, %v9423_v22  ;;  %7500 = vpow2.f32 %v6629_v47  ;;  %6845 = vmatpush1.bf16.msra.mxu1 %v6844_v32  ;;  %v4842_v43 = vadd.f32 %v8564_v3, %v4690_v48  ;;  %v9959_v19 = vld [vmem:[#allocation57_spill] sm:$0xff] }
 0x278   : > { %v7483_v53 = vpop.eup %7482  ;;  %v4873_v58 = vadd.f32 %v8566_v24, %v4721_v55  ;;  %v4722_v46 = vmul.f32 %v7481_v35, %v9432_v39  ;;  %7502 = vpow2.f32 %v6628_v63  ;;  %v9580_v48 = vadd.f32 %v8415_v56, %v9957_v6  ;;  %v9958_v63 = vld [vmem:[#allocation56_spill] sm:$0xff] }
 0x279   : > { %v7485_v27 = vpop.eup %7484  ;;  %v6848_v28 = vpack.c.bf16 %v4871_v7, %v4839_v13  ;;  %v4872_v34 = vadd.f32 %v8566_v24, %v4720_v20  ;;  %v4367_v36 = vadd.f32 1.0, %v7483_v53  ;;  %7504 = vpow2.f32 %v6630_v45  ;;  %6737 = vmatmul.mubr.msk.f32.vlgmr.msra.gmra.mrb[74].mxu0 %vm4944_vm4, %v9263_v4  ;;  %v9961_v7 = vld [vmem:[#allocation58_spill] sm:$0xff]  ;;  %v9962_v53 = vld [vmem:[#allocation59_spill] sm:$0xff] }
 0x27a   : > { %v7487_v22 = vpop.eup %7486  ;;  %v6856_v49 = vpack.c.bf16 %v4873_v58, %v4841_v57  ;;  %v4874_v37 = vadd.f32 %v8566_v24, %v4722_v46  ;;  %v4369_v2 = vadd.f32 1.0, %v7485_v27  ;;  %7506 = vpow2.f32 %v6659_v44  ;;  %6738 = vmatmul.mubr.msk.f32.vlgmr.msra.gmra.mrb[74].mxu1 %vm4944_vm4, %v9263_v4  ;;  %5864 = vmatprep.mubr.f32.mxu0 %v9829_v15  ;;  %v9960_v57 = vld [vmem:[#allocation33_spill] sm:$0xff]  ;;  %v9963_v27 = vld [vmem:[#allocation60_spill] sm:$0xff] }
 0x27b   : > { %v7489_v39 = vpop.eup %7488  ;;  %7508 = vrcp.f32 %v4367_v36  ;;  %v4368_v61 = vadd.f32 1.0, %v7487_v22  ;;  %v6846_v1 = vpack.c.bf16 %v4872_v34, %v4840_v60  ;;  %5935 = vmatprep.mubr.f32.mxu1 %v9829_v15  ;;  %v9584_v62 = vadd.f32 %v8415_v56, %v9958_v63  ;;  %v9964_v34 = vld [vmem:[#allocation34_spill] sm:$0xff] }
 0x27c   : > { %v7491_v33 = vpop.eup %7490  ;;  %7510 = vrcp.f32 %v4369_v2  ;;  %v4370_v10 = vadd.f32 1.0, %v7489_v39  ;;  %v6854_v32 = vpack.c.bf16 %v4874_v37, %v4842_v43  ;;  %v9588_v13 = vadd.f32 %v8415_v56, %v9959_v19  ;;  %v9965_v37 = vld [vmem:[#allocation35_spill] sm:$0xff]  ;;  %v9966_v39 = vld [vmem:[#allocation10_spill] sm:$0xff] }
 0x27d   : > { %v7493_v41 = vpop.eup %7492  ;;  %7512 = vrcp.f32 %v4368_v61  ;;  %v4399_v8 = vadd.f32 1.0, %v7491_v33  ;;  %6847 = vmatprep.subr.bf16.mxu0 %v6846_v1  ;;  %v9592_v55 = vadd.f32 %v8419_v59, %v9960_v57  ;;  %v9596_v20 = vadd.f32 %v8419_v59, %v9961_v7  ;;  %v9967_v33 = vld [vmem:[#allocation13_spill] sm:$0xff] }
 0x27e   : > { %v7495_v26 = vpop.eup %7494  ;;  %7514 = vrcp.f32 %v4370_v10  ;;  %v4401_v17 = vadd.f32 1.0, %v7493_v41  ;;  %6855 = vmatprep.subr.bf16.mxu1 %v6854_v32  ;;  %6849 = vmatpush1.bf16.msra.mxu0 %v6848_v28  ;;  %v9600_v43 = vadd.f32 %v8419_v59, %v9962_v53  ;;  %v6661_v46 = vmul.f32 -1.442695, %v9580_v48 }
 0x27f   : > { %v7497_v9 = vpop.eup %7496  ;;  %7516 = vrcp.f32 %v4399_v8  ;;  %v4400_v47 = vadd.f32 1.0, %v7495_v26  ;;  %6857 = vmatpush1.bf16.msra.mxu1 %v6856_v49  ;;  %v6660_v56 = vmul.f32 -1.442695, %v9584_v62  ;;  %v9606_v28 = vadd.f32 %v8419_v59, %v9963_v27 }
 0x280   : > { %v7499_v42 = vpop.eup %7498  ;;  %7518 = vrcp.f32 %v4401_v17  ;;  %v4402_v29 = vadd.f32 1.0, %v7497_v9  ;;  %v9610_v36 = vadd.f32 %v8451_v18, %v9964_v34  ;;  %v9614_v2 = vadd.f32 %v8451_v18, %v9965_v37 }
 0x281   : > { %v7501_v16 = vpop.eup %7500  ;;  %7520 = vrcp.f32 %v4400_v47  ;;  %v4307_v23 = vadd.f32 1.0, %v7499_v42  ;;  %v9618_v61 = vadd.f32 %v8451_v18, %v9966_v39  ;;  %v6662_v59 = vmul.f32 -1.442695, %v9588_v13 }
 0x282   : > { %v7503_v45 = vpop.eup %7502  ;;  %7522 = vrcp.f32 %v4402_v29  ;;  %v4309_v44 = vadd.f32 1.0, %v7501_v16  ;;  %v9623_v10 = vadd.f32 %v8451_v18, %v9967_v33  ;;  %v6691_v41 = vmul.f32 -1.442695, %v9592_v55 }
 0x283   : > { %v7505_v35 = vpop.eup %7504  ;;  %7524 = vrcp.f32 %v4307_v23  ;;  %v4308_v60 = vadd.f32 1.0, %v7503_v45  ;;  %v6693_v8 = vmul.f32 -1.442695, %v9596_v20  ;;  %v6692_v26 = vmul.f32 -1.442695, %v9600_v43 }
 0x284   : > { %v7507_v58 = vpop.eup %7506  ;;  %7526 = vrcp.f32 %v4309_v44  ;;  %v6694_v47 = vmul.f32 -1.442695, %v9606_v28  ;;  %v6723_v42 = vmul.f32 -1.442695, %v9610_v36  ;;  %v6725_v6 = vmul.f32 -1.442695, %v9614_v2 }
 0x285   : > { %v7509_v22 = vpop.eup %7508  ;;  %v4339_v49 = vadd.f32 1.0, %v7507_v58  ;;  %7528 = vrcp.f32 %v4308_v60  ;;  %v6724_v63 = vmul.f32 -1.442695, %v9618_v61  ;;  %v4310_v60 = vadd.f32 1.0, %v7505_v35 }
 0x286   : > { %v7511_v1 = vpop.eup %7510  ;;  %v4751_v9 = vmul.f32 %v7509_v22, %v9474_v12  ;;  %v6726_v12 = vmul.f32 -1.442695, %v9623_v10 }
 0x287   : > { %v7513_v32 = vpop.eup %7512  ;;  %7530 = vrcp.f32 %v4339_v49  ;;  %v4753_v18 = vmul.f32 %v7511_v1, %v9478_v52 }
 0x288   : > { %v7515_v17 = vpop.eup %7514  ;;  %7532 = vpow2.f32 %v6661_v46  ;;  %v4752_v23 = vmul.f32 %v7513_v32, %v9482_v51  ;;  %v4903_v7 = vadd.f32 %v8668_v30, %v4751_v9 }
 0x289   : > { %v7517_v29 = vpop.eup %7516  ;;  %7534 = vpow2.f32 %v6660_v56  ;;  %v4754_v19 = vmul.f32 %v7515_v17, %v9487_v14 }
 0x28a   : > { %v7519_v16 = vpop.eup %7518  ;;  %v4783_v45 = vmul.f32 %v7517_v29, %v9491_v25  ;;  %7536 = vpow2.f32 %v6662_v59  ;;  %v4905_v25 = vadd.f32 %v8668_v30, %v4753_v18  ;;  %v4904_v14 = vadd.f32 %v8668_v30, %v4752_v23 }
 0x28b   : > { %v7521_v44 = vpop.eup %7520  ;;  %v4785_v57 = vmul.f32 %v7519_v16, %v9495_v54  ;;  %7538 = vpow2.f32 %v6691_v41  ;;  %v4906_v34 = vadd.f32 %v8668_v30, %v4754_v19 }
 0x28c   : > { %v7523_v52 = vpop.eup %7522  ;;  %v4935_v53 = vadd.f32 %v8670_v40, %v4783_v45  ;;  %v4784_v58 = vmul.f32 %v7521_v44, %v9499_v31  ;;  %7540 = vpow2.f32 %v6693_v8 }
 0x28d   : > { %v7525_v51 = vpop.eup %7524  ;;  %v4937_v46 = vadd.f32 %v8670_v40, %v4785_v57  ;;  %v4786_v56 = vmul.f32 %v7523_v52, %v9503_v50  ;;  %7542 = vpow2.f32 %v6692_v26 }
 0x28e   : > { %v6852_v54 = vpack.c.bf16 %v4935_v53, %v4903_v7  ;;  %v4936_v35 = vadd.f32 %v8670_v40, %v4784_v58  ;;  %7544 = vpow2.f32 %v6694_v47  ;;  %v7527_v27 = vpop.eup %7526  ;;  %v4691_v37 = vmul.f32 %v7525_v51, %v9510_v0 }
 0x28f   : > { %v6860_v22 = vpack.c.bf16 %v4937_v46, %v4905_v25  ;;  %v4938_v31 = vadd.f32 %v8670_v40, %v4786_v56  ;;  %7546 = vpow2.f32 %v6723_v42  ;;  %v7529_v49 = vpop.eup %7528  ;;  %v4693_v53 = vmul.f32 %v7527_v27, %v9526_v21 }
 0x290   : > { %7548 = vpow2.f32 %v6725_v6  ;;  %v6850_v39 = vpack.c.bf16 %v4936_v35, %v4904_v14  ;;  %v9652_v26 = vadd.f32 %v8564_v3, %v4691_v37 }
 0x291   : > { %v7531_v50 = vpop.eup %7530  ;;  %7550 = vpow2.f32 %v6724_v63  ;;  %v6858_v1 = vpack.c.bf16 %v4938_v31, %v4906_v34  ;;  %v4845_v35 = vadd.f32 %v8564_v3, %v4693_v53 }
 0x292   : > { %v7533_v59 = vpop.eup %7532  ;;  %v4723_v33 = vmul.f32 %v7531_v50, %v9539_v5  ;;  %7552 = vpow2.f32 %v6726_v12  ;;  %6851 = vmatprep.subr.bf16.mxu0 %v6850_v39 }
 0x293   : > { %v7535_v32 = vpop.eup %7534  ;;  %7554 = vrcp.f32 %v4310_v60  ;;  %v4341_v41 = vadd.f32 1.0, %v7533_v59  ;;  %6859 = vmatprep.subr.bf16.mxu1 %v6858_v1  ;;  %6853 = vmatpush1.bf16.msra.mxu0 %v6852_v54 }
 0x294   : > { %v7537_v8 = vpop.eup %7536  ;;  %v9655_v0 = vadd.f32 %v8566_v24, %v4723_v33  ;;  %v4340_v17 = vadd.f32 1.0, %v7535_v32  ;;  %6861 = vmatpush1.bf16.msra.mxu1 %v6860_v22 }
 0x295   : > { %v7539_v9 = vpop.eup %7538  ;;  %7556 = vrcp.f32 %v4341_v41  ;;  %v4342_v47 = vadd.f32 1.0, %v7537_v8 }
 0x296   : > { %v7541_v5 = vpop.eup %7540  ;;  %v6864_v42 = vpack.c.bf16 %v9655_v0, %v9652_v26  ;;  %7558 = vrcp.f32 %v4340_v17  ;;  %v4371_v29 = vadd.f32 1.0, %v7539_v9  ;;  %6739 = vmatmul.mubr.msk.f32.vlgmr.msra.gmra.mrb[76].mxu0 %vm4944_vm4, %v9263_v4 }
 0x297   : > { %v7543_v18 = vpop.eup %7542  ;;  %7560 = vrcp.f32 %v4342_v47  ;;  %v4373_v6 = vadd.f32 1.0, %v7541_v5  ;;  %6740 = vmatmul.mubr.msk.f32.vlgmr.msra.gmra.mrb[76].mxu1 %vm4944_vm4, %v9263_v4  ;;  %6006 = vmatprep.mubr.f32.mxu0 %v9829_v15 }
 0x298   : > { %v7545_v63 = vpop.eup %7544  ;;  %7562 = vrcp.f32 %v4371_v29  ;;  %v4372_v16 = vadd.f32 1.0, %v7543_v18  ;;  %6077 = vmatprep.mubr.f32.mxu1 %v9829_v15  ;;  %v4692_v15 = vmul.f32 %v7529_v49, %v9530_v38  ;;  %v7579_v29 = vld [vmem:[%s7764_s17] sm:$0xff] }
 0x299   : > { %v7547_v23 = vpop.eup %7546  ;;  %7564 = vrcp.f32 %v4373_v6  ;;  %v4374_v45 = vadd.f32 1.0, %v7545_v63  ;;  %v6100_v18 = vcombine.high %v7579_v29, %v7579_v29  ;;  %v7580_v6 = vld [vmem:[%s7764_s17 + $0x8] sm:$0xff] }
 0x29a   : > { %v7549_v12 = vpop.eup %7548  ;;  %7566 = vrcp.f32 %v4372_v16  ;;  %v4403_v44 = vadd.f32 1.0, %v7547_v23  ;;  %v4844_v22 = vadd.f32 %v8564_v3, %v4692_v15  ;;  %v7581_v16 = vld [vmem:[%s9762_s9] sm:$0xf] }
 0x29b   : > { %v7551_v19 = vpop.eup %7550  ;;  %7568 = vrcp.f32 %v4374_v45  ;;  %v4405_v57 = vadd.f32 1.0, %v7549_v12 }
 0x29c   : > { %v7553_v60 = vpop.eup %7552  ;;  %7570 = vrcp.f32 %v4403_v44  ;;  %v4404_v52 = vadd.f32 1.0, %v7551_v19 }
 0x29d   : > { %v7555_v4 = vpop.eup %7554  ;;  %7572 = vrcp.f32 %v4405_v57  ;;  %v4406_v7 = vadd.f32 1.0, %v7553_v60 }
 0x29e   : > { %7574 = vrcp.f32 %v4404_v52  ;;  %v4694_v25 = vmul.f32 %v7555_v4, %v9535_v11 }
 0x29f   : > { %v7557_v58 = vpop.eup %7556  ;;  %7576 = vrcp.f32 %v4406_v7 }
 0x2a0   : > { %v7559_v51 = vpop.eup %7558  ;;  %v4725_v46 = vmul.f32 %v7557_v58, %v9580_v48  ;;  %v4846_v11 = vadd.f32 %v8564_v3, %v4694_v25 }
 0x2a1   : > { %v7561_v56 = vpop.eup %7560  ;;  %v4724_v14 = vmul.f32 %v7559_v51, %v9584_v62 }
 0x2a2   : > { %v7563_v54 = vpop.eup %7562  ;;  %v4877_v34 = vadd.f32 %v8566_v24, %v4725_v46  ;;  %v4726_v21 = vmul.f32 %v7561_v56, %v9588_v13  ;;  %v7582_v56 = vld [vmem:[%s7764_s17 + $0x10] sm:$0xff] }
 0x2a3   : > { %v7565_v27 = vpop.eup %7564  ;;  %v4876_v38 = vadd.f32 %v8566_v24, %v4724_v14  ;;  %v4755_v62 = vmul.f32 %v7563_v54, %v9592_v55  ;;  %v6102_v14 = vcombine.high %v7582_v56, %v7582_v56 }
 0x2a4   : > { %v7567_v31 = vpop.eup %7566  ;;  %v6872_v49 = vpack.c.bf16 %v4877_v34, %v4845_v35  ;;  %v4878_v48 = vadd.f32 %v8566_v24, %v4726_v21  ;;  %v4757_v1 = vmul.f32 %v7565_v27, %v9596_v20  ;;  %v7583_v21 = vld [vmem:[%s7764_s17 + $0x18] sm:$0xff] }
 0x2a5   : > { %v7569_v37 = vpop.eup %7568  ;;  %v6862_v39 = vpack.c.bf16 %v4876_v38, %v4844_v22  ;;  %v4756_v33 = vmul.f32 %v7567_v31, %v9600_v43  ;;  %v4907_v55 = vadd.f32 %v8668_v30, %v4755_v62  ;;  %v6103_v27 = vcombine.high %v7583_v21, %v7583_v21 }
 0x2a6   : > { %v7571_v50 = vpop.eup %7570  ;;  %v6870_v59 = vpack.c.bf16 %v4878_v48, %v4846_v11  ;;  %v4758_v3 = vmul.f32 %v7569_v37, %v9606_v28  ;;  %v4909_v43 = vadd.f32 %v8668_v30, %v4757_v1 }
 0x2a7   : > { %v7573_v13 = vpop.eup %7572  ;;  %v4787_v32 = vmul.f32 %v7571_v50, %v9610_v36  ;;  %6863 = vmatprep.subr.bf16.mxu0 %v6862_v39 }
 0x2a8   : > { %v7575_v41 = vpop.eup %7574  ;;  %v4789_v8 = vmul.f32 %v7573_v13, %v9614_v2  ;;  %6871 = vmatprep.subr.bf16.mxu1 %v6870_v59  ;;  %6865 = vmatpush1.bf16.msra.mxu0 %v6864_v42  ;;  %v4908_v2 = vadd.f32 %v8668_v30, %v4756_v33  ;;  %v4910_v9 = vadd.f32 %v8668_v30, %v4758_v3 }
 0x2a9   : > { %v7577_v24 = vpop.eup %7576  ;;  %v4939_v26 = vadd.f32 %v8670_v40, %v4787_v32  ;;  %v4788_v20 = vmul.f32 %v7575_v41, %v9618_v61  ;;  %6873 = vmatpush1.bf16.msra.mxu1 %v6872_v49 }
 0x2aa   : > { %v4941_v36 = vadd.f32 %v8670_v40, %v4789_v8  ;;  %v4790_v28 = vmul.f32 %v7577_v24, %v9623_v10  ;;  %v6101_v10 = vcombine.high %v7580_v6, %v7580_v6  ;;  %v7584_v8 = vld [vmem:[%s7764_s17 + $0x20] sm:$0xff] }
 0x2ab   : > { %v6868_v0 = vpack.c.bf16 %v4939_v26, %v4907_v55  ;;  %v4940_v17 = vadd.f32 %v8670_v40, %v4788_v20  ;;  %v6104_v24 = vcombine.high %v7584_v8, %v7584_v8  ;;  %v7585_v55 = vld [vmem:[%s7764_s17 + $0x28] sm:$0xff] }
 0x2ac   : > { %v6876_v47 = vpack.c.bf16 %v4941_v36, %v4909_v43  ;;  %v4942_v5 = vadd.f32 %v8670_v40, %v4790_v28  ;;  %v6105_v26 = vcombine.high %v7585_v55, %v7585_v55 }
 0x2ad   : > { %v6866_v61 = vpack.c.bf16 %v4940_v17, %v4908_v2 }
 0x2ae   : > { %v6874_v42 = vpack.c.bf16 %v4942_v5, %v4910_v9 }
 0x2af   : > { %6867 = vmatprep.subr.bf16.mxu0 %v6866_v61  ;;  %v5014_v63 = vpop.f32.mrb[64].mxu0 }
 0x2b0   : > { %6875 = vmatprep.subr.bf16.mxu1 %v6874_v42  ;;  %6869 = vmatpush1.bf16.msra.mxu0 %v6868_v0  ;;  %v6132_v30 = vsub.f32 %v5014_v63, %v7579_v29  ;;  %v5016_v23 = vpop.f32.mrb[65].mxu0  ;;  %v5085_v40 = vpop.f32.mrb[64].mxu1 }
 0x2b1   : > { %6877 = vmatpush1.bf16.msra.mxu1 %v6876_v47  ;;  %v6133_v45 = vsub.f32 %v5016_v23, %v6100_v18  ;;  %v6134_v12 = vsub.f32 %v5085_v40, %v7580_v6  ;;  %v5087_v44 = vpop.f32.mrb[65].mxu1  ;;  %v7586_v40 = vld [vmem:[%s7764_s17 + $0x30] sm:$0xff] }
 0x2b2   : > { %v6164_v19 = vmul.f32 %v6132_v30, %v6132_v30  ;;  %v6135_v57 = vsub.f32 %v5087_v44, %v6101_v10 }
 0x2b3   : > { %6741 = vmatmul.mubr.msk.f32.vlgmr.msra.gmra.mrb[78].mxu0 %vm4944_vm4, %v7581_v16  ;;  %v6165_v60 = vmul.f32 %v6133_v45, %v6133_v45  ;;  %v6166_v52 = vmul.f32 %v6134_v12, %v6134_v12  ;;  %v6106_v45 = vcombine.high %v7586_v40, %v7586_v40  ;;  %v7587_v12 = vld [vmem:[%s7764_s17 + $0x38] sm:$0xff] }
 0x2b4   : > { %6742 = vmatmul.mubr.msk.f32.vlgmr.msra.gmra.mrb[78].mxu1 %vm4944_vm4, %v7581_v16  ;;  %v6196_v4 = vsel %vm608_vm0, %v6164_v19, 0.0  ;;  %v6167_v7 = vmul.f32 %v6135_v57, %v6135_v57  ;;  %v6107_v44 = vcombine.high %v7587_v12, %v7587_v12 }
 0x2b5   : > { %v6197_v53 = vsel %vm608_vm0, %v6165_v60, 0.0  ;;  %v6199_v58 = vsel %vm608_vm0, %v6166_v52, 0.0 }
 0x2b6   : > { %v6198_v15 = vadd.f32 %v6197_v53, %v6196_v4  ;;  %v6201_v51 = vsel %vm608_vm0, %v6167_v7, 0.0 }
 0x2b8   : > { %v6200_v25 = vadd.f32 %v6199_v58, %v6198_v15 }
 0x2ba   : > { %v6202_v46 = vadd.f32 %v6201_v51, %v6200_v25 }
 0x2cf   : > { %v5156_v54 = vpop.f32.mrb[66].mxu0 }
 0x2d0   : > { %v6136_v35 = vsub.f32 %v5156_v54, %v7582_v56  ;;  %v5158_v34 = vpop.f32.mrb[67].mxu0 }
 0x2d1   : > { %v6137_v22 = vsub.f32 %v5158_v34, %v6102_v14 }
 0x2d2   : > { %v6168_v38 = vmul.f32 %v6136_v35, %v6136_v35  ;;  %v5227_v31 = vpop.f32.mrb[66].mxu1 }
 0x2d3   : > { %v6169_v11 = vmul.f32 %v6137_v22, %v6137_v22  ;;  %v6138_v49 = vsub.f32 %v5227_v31, %v7583_v21  ;;  %v5229_v48 = vpop.f32.mrb[67].mxu1 }
 0x2d4   : > { %v6203_v37 = vsel %vm608_vm0, %v6168_v38, 0.0  ;;  %v6139_v62 = vsub.f32 %v5229_v48, %v6103_v27  ;;  %v7588_v38 = vld [vmem:[%s7764_s17 + $0x40] sm:$0xff] }
 0x2d5   : > { %v6204_v39 = vadd.f32 %v6203_v37, %v6202_v46  ;;  %v6205_v50 = vsel %vm608_vm0, %v6169_v11, 0.0  ;;  %v6170_v1 = vmul.f32 %v6138_v49, %v6138_v49  ;;  %v6108_v31 = vcombine.high %v7588_v38, %v7588_v38  ;;  %v7589_v11 = vld [vmem:[%s7764_s17 + $0x48] sm:$0xff] }
 0x2d6   : > { %v6171_v59 = vmul.f32 %v6139_v62, %v6139_v62  ;;  %v6109_v49 = vcombine.high %v7589_v11, %v7589_v11 }
 0x2d7   : > { %v6206_v13 = vadd.f32 %v6205_v50, %v6204_v39  ;;  %v6207_v33 = vsel %vm608_vm0, %v6170_v1, 0.0 }
 0x2d8   : > { %v6209_v32 = vsel %vm608_vm0, %v6171_v59, 0.0 }
 0x2d9   : > { %v6208_v41 = vadd.f32 %v6207_v33, %v6206_v13 }
 0x2db   : > { %v6210_v3 = vadd.f32 %v6209_v32, %v6208_v41 }
 0x2e8   : > { %v5298_v20 = vpop.f32.mrb[68].mxu0 }
 0x2e9   : > { %v6140_v43 = vsub.f32 %v5298_v20, %v7584_v8  ;;  %v5300_v36 = vpop.f32.mrb[69].mxu0  ;;  %v5369_v28 = vpop.f32.mrb[68].mxu1 }
 0x2ea   : > { %v6141_v2 = vsub.f32 %v5300_v36, %v6104_v24  ;;  %v6142_v0 = vsub.f32 %v5369_v28, %v7585_v55  ;;  %v5371_v17 = vpop.f32.mrb[69].mxu1 }
 0x2eb   : > { %v6172_v9 = vmul.f32 %v6140_v43, %v6140_v43  ;;  %v6143_v47 = vsub.f32 %v5371_v17, %v6105_v26  ;;  %v7591_v17 = vld [vmem:[%s7764_s17 + $0x58] sm:$0xff] }
 0x2ec   : > { %v6173_v5 = vmul.f32 %v6141_v2, %v6141_v2  ;;  %v6174_v61 = vmul.f32 %v6142_v0, %v6142_v0  ;;  %v7590_v2 = vld [vmem:[%s7764_s17 + $0x50] sm:$0xff] }
 0x2ed   : > { %v6211_v42 = vsel %vm608_vm0, %v6172_v9, 0.0  ;;  %v6175_v29 = vmul.f32 %v6143_v47, %v6143_v47  ;;  %v6110_v0 = vcombine.high %v7590_v2, %v7590_v2  ;;  %v6111_v9 = vcombine.high %v7591_v17, %v7591_v17 }
 0x2ee   : > { %v6212_v18 = vadd.f32 %v6211_v42, %v6210_v3  ;;  %v6213_v6 = vsel %vm608_vm0, %v6173_v5, 0.0  ;;  %v6215_v10 = vsel %vm608_vm0, %v6174_v61, 0.0 }
 0x2ef   : > { %v6217_v16 = vsel %vm608_vm0, %v6175_v29, 0.0 }
 0x2f0   : > { %v6214_v63 = vadd.f32 %v6213_v6, %v6212_v18 }
 0x2f2   : > { %v6216_v30 = vadd.f32 %v6215_v10, %v6214_v63 }
 0x2f4   : > { %v6218_v23 = vadd.f32 %v6217_v16, %v6216_v30 }
 0x305   : > { %v5440_v19 = vpop.f32.mrb[70].mxu0 }
 0x306   : > { %v6144_v57 = vsub.f32 %v5440_v19, %v7586_v40  ;;  %v5442_v60 = vpop.f32.mrb[71].mxu0  ;;  %v5511_v52 = vpop.f32.mrb[70].mxu1 }
 0x307   : > { %v6145_v4 = vsub.f32 %v5442_v60, %v6106_v45  ;;  %v6146_v7 = vsub.f32 %v5511_v52, %v7587_v12  ;;  %v5513_v53 = vpop.f32.mrb[71].mxu1 }
 0x308   : > { %v6176_v58 = vmul.f32 %v6144_v57, %v6144_v57  ;;  %v6147_v15 = vsub.f32 %v5513_v53, %v6107_v44  ;;  %v7593_v53 = vld [vmem:[%s7764_s17 + $0x68] sm:$0xff] }
 0x309   : > { %v6177_v51 = vmul.f32 %v6145_v4, %v6145_v4  ;;  %v6178_v25 = vmul.f32 %v6146_v7, %v6146_v7  ;;  %v7592_v4 = vld [vmem:[%s7764_s17 + $0x60] sm:$0xff] }
 0x30a   : > { %v6219_v46 = vsel %vm608_vm0, %v6176_v58, 0.0  ;;  %v6179_v56 = vmul.f32 %v6147_v15, %v6147_v15  ;;  %v6112_v7 = vcombine.high %v7592_v4, %v7592_v4  ;;  %v6113_v58 = vcombine.high %v7593_v53, %v7593_v53 }
 0x30b   : > { %v6220_v14 = vadd.f32 %v6219_v46, %v6218_v23  ;;  %v6221_v54 = vsel %vm608_vm0, %v6177_v51, 0.0  ;;  %v6223_v35 = vsel %vm608_vm0, %v6178_v25, 0.0 }
 0x30c   : > { %v6225_v21 = vsel %vm608_vm0, %v6179_v56, 0.0 }
 0x30d   : > { %v6222_v34 = vadd.f32 %v6221_v54, %v6220_v14 }
 0x30f   : > { %v6224_v27 = vadd.f32 %v6223_v35, %v6222_v34 }
 0x311   : > { %v6226_v22 = vadd.f32 %v6225_v21, %v6224_v27 }
 0x32f   : > { %v5582_v48 = vpop.f32.mrb[72].mxu0 }
 0x330   : > { %v6148_v37 = vsub.f32 %v5582_v48, %v7588_v38  ;;  %v5584_v62 = vpop.f32.mrb[73].mxu0  ;;  %v5653_v39 = vpop.f32.mrb[72].mxu1 }
 0x331   : > { %v6149_v50 = vsub.f32 %v5584_v62, %v6108_v31  ;;  %v6150_v1 = vsub.f32 %v5653_v39, %v7589_v11  ;;  %v5655_v59 = vpop.f32.mrb[73].mxu1 }
 0x332   : > { %v6180_v13 = vmul.f32 %v6148_v37, %v6148_v37  ;;  %v6151_v33 = vsub.f32 %v5655_v59, %v6109_v49  ;;  %v7595_v59 = vld [vmem:[%s7764_s17 + $0x78] sm:$0xff] }
 0x333   : > { %v6181_v32 = vmul.f32 %v6149_v50, %v6149_v50  ;;  %v6182_v41 = vmul.f32 %v6150_v1, %v6150_v1  ;;  %v7594_v50 = vld [vmem:[%s7764_s17 + $0x70] sm:$0xff] }
 0x334   : > { %v6227_v3 = vsel %vm608_vm0, %v6180_v13, 0.0  ;;  %v6183_v8 = vmul.f32 %v6151_v33, %v6151_v33  ;;  %v6114_v1 = vcombine.high %v7594_v50, %v7594_v50  ;;  %v6115_v13 = vcombine.high %v7595_v59, %v7595_v59 }
 0x335   : > { %v6228_v24 = vadd.f32 %v6227_v3, %v6226_v22  ;;  %v6229_v55 = vsel %vm608_vm0, %v6181_v32, 0.0  ;;  %v6231_v26 = vsel %vm608_vm0, %v6182_v41, 0.0 }
 0x336   : > { %v6233_v43 = vsel %vm608_vm0, %v6183_v8, 0.0 }
 0x337   : > { %v6230_v20 = vadd.f32 %v6229_v55, %v6228_v24 }
 0x339   : > { %v6232_v36 = vadd.f32 %v6231_v26, %v6230_v20 }
 0x33b   : > { %v6234_v28 = vadd.f32 %v6233_v43, %v6232_v36 }
 0x34c   : > { %v5724_v47 = vpop.f32.mrb[74].mxu0 }
 0x34d   : > { %v6152_v5 = vsub.f32 %v5724_v47, %v7590_v2  ;;  %v5726_v61 = vpop.f32.mrb[75].mxu0  ;;  %v5795_v42 = vpop.f32.mrb[74].mxu1 }
 0x34e   : > { %v6153_v29 = vsub.f32 %v5726_v61, %v6110_v0  ;;  %v6154_v18 = vsub.f32 %v5795_v42, %v7591_v17  ;;  %v5797_v6 = vpop.f32.mrb[75].mxu1 }
 0x34f   : > { %v6184_v10 = vmul.f32 %v6152_v5, %v6152_v5  ;;  %v6155_v63 = vsub.f32 %v5797_v6, %v6111_v9 }
 0x350   : > { %v6185_v16 = vmul.f32 %v6153_v29, %v6153_v29  ;;  %v6186_v30 = vmul.f32 %v6154_v18, %v6154_v18 }
 0x351   : > { %v6235_v23 = vsel %vm608_vm0, %v6184_v10, 0.0  ;;  %v6187_v40 = vmul.f32 %v6155_v63, %v6155_v63 }
 0x352   : > { %v6236_v45 = vadd.f32 %v6235_v23, %v6234_v28  ;;  %v6237_v12 = vsel %vm608_vm0, %v6185_v16, 0.0  ;;  %v6239_v44 = vsel %vm608_vm0, %v6186_v30, 0.0 }
 0x353   : > { %v6241_v57 = vsel %vm608_vm0, %v6187_v40, 0.0 }
 0x354   : > { %v6238_v19 = vadd.f32 %v6237_v12, %v6236_v45 }
 0x356   : > { %v6240_v60 = vadd.f32 %v6239_v44, %v6238_v19 }
 0x358   : > { %v6242_v52 = vadd.f32 %v6241_v57, %v6240_v60 }
 0x369   : > { %v5866_v15 = vpop.f32.mrb[76].mxu0 }
 0x36a   : > { %v6156_v51 = vsub.f32 %v5866_v15, %v7592_v4  ;;  %v5868_v25 = vpop.f32.mrb[77].mxu0  ;;  %v5937_v46 = vpop.f32.mrb[76].mxu1 }
 0x36b   : > { %v6157_v56 = vsub.f32 %v5868_v25, %v6112_v7  ;;  %v6158_v14 = vsub.f32 %v5937_v46, %v7593_v53  ;;  %v5939_v54 = vpop.f32.mrb[77].mxu1 }
 0x36c   : > { %v6188_v35 = vmul.f32 %v6156_v51, %v6156_v51  ;;  %v6159_v34 = vsub.f32 %v5939_v54, %v6113_v58 }
 0x36d   : > { %v6189_v21 = vmul.f32 %v6157_v56, %v6157_v56  ;;  %v6190_v27 = vmul.f32 %v6158_v14, %v6158_v14 }
 0x36e   : > { %v6243_v22 = vsel %vm608_vm0, %v6188_v35, 0.0  ;;  %v6191_v38 = vmul.f32 %v6159_v34, %v6159_v34 }
 0x36f   : > { %v6244_v31 = vadd.f32 %v6243_v22, %v6242_v52  ;;  %v6245_v11 = vsel %vm608_vm0, %v6189_v21, 0.0  ;;  %v6247_v49 = vsel %vm608_vm0, %v6190_v27, 0.0 }
 0x370   : > { %v6249_v37 = vsel %vm608_vm0, %v6191_v38, 0.0 }
 0x371   : > { %v6246_v48 = vadd.f32 %v6245_v11, %v6244_v31 }
 0x373   : > { %v6248_v62 = vadd.f32 %v6247_v49, %v6246_v48 }
 0x375   : > { %v6250_v39 = vadd.f32 %v6249_v37, %v6248_v62 }
 0x386   : > { %v6008_v33 = vpop.f32.mrb[78].mxu0 }
 0x387   : > { %v6160_v32 = vsub.f32 %v6008_v33, %v7594_v50  ;;  %v6010_v41 = vpop.f32.mrb[79].mxu0  ;;  %v6079_v3 = vpop.f32.mrb[78].mxu1 }
 0x388   : > { %v6161_v8 = vsub.f32 %v6010_v41, %v6114_v1  ;;  %v6162_v24 = vsub.f32 %v6079_v3, %v7595_v59  ;;  %v6081_v55 = vpop.f32.mrb[79].mxu1 }
 0x389   : > { %v6192_v26 = vmul.f32 %v6160_v32, %v6160_v32  ;;  %v6163_v20 = vsub.f32 %v6081_v55, %v6115_v13 }
 0x38a   : > { %v6193_v43 = vmul.f32 %v6161_v8, %v6161_v8  ;;  %v6194_v36 = vmul.f32 %v6162_v24, %v6162_v24 }
 0x38b   : > { %v6251_v28 = vsel %vm608_vm0, %v6192_v26, 0.0  ;;  %v6195_v9 = vmul.f32 %v6163_v20, %v6163_v20 }
 0x38c   : > { %v6252_v2 = vadd.f32 %v6251_v28, %v6250_v39  ;;  %v6253_v0 = vsel %vm608_vm0, %v6193_v43, 0.0  ;;  %v6255_v17 = vsel %vm608_vm0, %v6194_v36, 0.0 }
 0x38d   : > { %v6257_v61 = vsel %vm608_vm0, %v6195_v9, 0.0 }
 0x38e   : > { %v6254_v47 = vadd.f32 %v6253_v0, %v6252_v2 }
 0x390   : > { %v6256_v5 = vadd.f32 %v6255_v17, %v6254_v47 }
 0x392   : > { %v6258_v42 = vadd.f32 %v6257_v61, %v6256_v5 }
 0x394   : > { %6259 = vadd.xlane.f32.xlu0 %v6258_v42 }
 0x421   : > { %v6260_v29 = vpop.xlane.xlu0 %6259 }
 0x422   : > { %v6261_v18 = vrot.slane %v6260_v29, 4 }
 0x424   : > { %v6262_v6 = vadd.f32 %v6261_v18, %v6260_v29 }
 0x426   : > { %v6263_v10 = vrot.slane %v6262_v6, 2 }
 0x428   : > { %v6264_v63 = vadd.f32 %v6263_v10, %v6262_v6 }
 0x42a   : > { %v6265_v16 = vrot.slane %v6264_v63, 1 }
 0x42c   : > { %v6266_v30 = vadd.f32 %v6265_v16, %v6264_v63 }
 0x42e   : > { %7006 = vpush %v6266_v30 }
 0x45f   : > { %s7007_s19 = spop %7006 }
 0x460   : > { %v6268_v23 = vstv %s7007_s19 }
 0x461   : > { %6270 = vst.msk [vmem:[%s462_s18] sm:$0x1] %vm6269_vm5, %v6268_v23 }
 0x462 PF: > { %s22_s13 = sadd.s32 1, %s7640_s13  }
 0x463   : > { %p19_p5 = scmp.ge.s32.totalorder %s22_s13, 4  }
 0x465   :  { %21 = sbr.rel (!%p19_p5) target bundleno = 2 (0x2), region = 111 }
 0x46c   :  { %6288 = vsyncpa [#allocation3], 1 }
 0x46d   :  { %6290 = vsyncpa [#allocation3 + $0x1], 1 }
 0x46e   :  { %6291 = vsyncpa [#allocation5], 1 }

</bundles_post_ra>
